<compile_context>
chip_gen: v7x
topology: tpu7x:2x2x1
jax: 0.10.0
libtpu: 0.0.40
codegen_flags: <defaults>
</compile_context>

<pallas_src>
import functools
import math

import jax
import jax.numpy as jnp
from jax.experimental import pallas as pl
from jax.experimental.pallas import tpu as pltpu


# ----------------------------- configuration --------------------------------
CFG = dict(
    seq_len=32, pred_len=16, patch_len=8, stride=4,
    d_model=32, n_heads=4, d_llm=64, d_ff=32,
    num_tokens=64, vocab=128, llm_heads=4,
)
CFG["d_keys"] = CFG["d_model"] // CFG["n_heads"]
CFG["patch_nums"] = (CFG["seq_len"] - CFG["patch_len"]) // CFG["stride"] + 2
CFG["head_nf"] = CFG["d_ff"] * CFG["patch_nums"]

# 1-row parameter vectors (biases / LayerNorm affines), packed host-side into
# one (16, 256) f32 slab -> one DMA instead of thirteen.
_VEC_SPEC = (
    ("map_b",     CFG["num_tokens"]),
    ("rep_bq",    CFG["n_heads"] * CFG["d_keys"]),
    ("rep_bkv",   2 * CFG["n_heads"] * CFG["d_keys"]),
    ("rep_bo",    CFG["d_llm"]),
    ("ln1_g",     CFG["d_llm"]),
    ("ln1_b",     CFG["d_llm"]),
    ("attn_bqkv", 3 * CFG["d_llm"]),
    ("attn_bo",   CFG["d_llm"]),
    ("ln2_g",     CFG["d_llm"]),
    ("ln2_b",     CFG["d_llm"]),
    ("ffn_b1",    4 * CFG["d_llm"]),
    ("ffn_b2",    CFG["d_llm"]),
    ("head_b",    CFG["pred_len"]),
)
_VEC_ROW = {name: i for i, (name, _) in enumerate(_VEC_SPEC)}
_VEC_WIDTH = dict(_VEC_SPEC)
_VEC_PACK_W = 256          # widest vector (ffn_b1); lane-aligned
_VEC_PACK_ROWS = 16        # sublane-aligned row count

_MAT_ORDER = (
    "we_t", "map_w", "conv_w",
    "rep_wq", "rep_wkv", "rep_wo",
    "attn_wqkv", "attn_wo",
    "ffn_w1", "ffn_w2", "head_w",
)


# ------------------------------ parameters -----------------------------------
def init_params(key):
    cfg = CFG
    keys = iter(jax.random.split(key, 40))

    def dense(fan_in, fan_out):
        bound = 1.0 / math.sqrt(fan_in)
        w = jax.random.uniform(next(keys), (fan_in, fan_out), jnp.float32,
                               -bound, bound)
        b = jax.random.uniform(next(keys), (fan_out,), jnp.float32,
                               -bound, bound)
        return w, b

    p = {"cfg": cfg}
    p["word_embeddings"] = 0.02 * jax.random.normal(
        next(keys), (cfg["vocab"], cfg["d_llm"]), jnp.float32)
    p["map_w"], p["map_b"] = dense(cfg["vocab"], cfg["num_tokens"])
    # TokenEmbedding Conv1d(patch_len -> d_model, kernel=3, circular, no bias)
    p["token_conv_w"] = (jax.random.normal(
        next(keys), (cfg["d_model"], cfg["patch_len"], 3), jnp.float32)
        * math.sqrt(2.0 / (cfg["patch_len"] * 3)))
    dk = cfg["d_keys"] * cfg["n_heads"]
    p["rep_wq"], p["rep_bq"] = dense(cfg["d_model"], dk)
    p["rep_wk"], p["rep_bk"] = dense(cfg["d_llm"], dk)
    p["rep_wv"], p["rep_bv"] = dense(cfg["d_llm"], dk)
    p["rep_wo"], p["rep_bo"] = dense(dk, cfg["d_llm"])
    d = cfg["d_llm"]
    p["ln1_g"], p["ln1_b"] = jnp.ones((d,), jnp.float32), jnp.zeros((d,), jnp.float32)
    p["ln2_g"], p["ln2_b"] = jnp.ones((d,), jnp.float32), jnp.zeros((d,), jnp.float32)
    p["attn_wq"], p["attn_bq"] = dense(d, d)
    p["attn_wk"], p["attn_bk"] = dense(d, d)
    p["attn_wv"], p["attn_bv"] = dense(d, d)
    p["attn_wo"], p["attn_bo"] = dense(d, d)
    p["ffn_w1"], p["ffn_b1"] = dense(d, 4 * d)
    p["ffn_w2"], p["ffn_b2"] = dense(4 * d, d)
    p["head_w"], p["head_b"] = dense(cfg["head_nf"], cfg["pred_len"])
    return p


def prepare_kernel_params(params):
    """One-time host-side weight prep: fuse QKV / KV, regroup, pack vectors."""
    cfg = params["cfg"]
    P, d_ff, pred_len = cfg["patch_nums"], cfg["d_ff"], cfg["pred_len"]
    f32 = jnp.float32

    kp = {"cfg": cfg}
    kp["we_t"] = jnp.asarray(params["word_embeddings"], f32).T        # (d_llm, vocab)
    kp["map_w"] = jnp.asarray(params["map_w"], f32)
    # Conv1d weight as im2col rows grouped by kernel tap: [t=0 | t=1 | t=2],
    # each block (patch_len, d_model).
    kp["conv_w"] = jnp.transpose(
        jnp.asarray(params["token_conv_w"], f32), (2, 1, 0)).reshape(
        3 * cfg["patch_len"], cfg["d_model"])
    kp["rep_wq"] = jnp.asarray(params["rep_wq"], f32)
    kp["rep_wkv"] = jnp.concatenate(
        [params["rep_wk"], params["rep_wv"]], axis=1).astype(f32)
    kp["rep_wo"] = jnp.asarray(params["rep_wo"], f32)
    kp["attn_wqkv"] = jnp.concatenate(
        [params["attn_wq"], params["attn_wk"], params["attn_wv"]],
        axis=1).astype(f32)
    kp["attn_wo"] = jnp.asarray(params["attn_wo"], f32)
    kp["ffn_w1"] = jnp.asarray(params["ffn_w1"], f32)
    kp["ffn_w2"] = jnp.asarray(params["ffn_w2"], f32)
    # FlattenHead weight: torch flatten row order is f*P + p; regroup by patch
    # (p*d_ff + f) so the kernel accumulates per-patch contiguous row blocks.
    kp["head_w"] = jnp.asarray(params["head_w"], f32).reshape(
        d_ff, P, pred_len).transpose(1, 0, 2).reshape(P * d_ff, pred_len)

    named_vecs = {
        "map_b": params["map_b"],
        "rep_bq": params["rep_bq"],
        "rep_bkv": jnp.concatenate([params["rep_bk"], params["rep_bv"]]),
        "rep_bo": params["rep_bo"],
        "ln1_g": params["ln1_g"], "ln1_b": params["ln1_b"],
        "attn_bqkv": jnp.concatenate(
            [params["attn_bq"], params["attn_bk"], params["attn_bv"]]),
        "attn_bo": params["attn_bo"],
        "ln2_g": params["ln2_g"], "ln2_b": params["ln2_b"],
        "ffn_b1": params["ffn_b1"], "ffn_b2": params["ffn_b2"],
        "head_b": params["head_b"],
    }
    rows = []
    for name, w in _VEC_SPEC:
        v = jnp.asarray(named_vecs[name], f32).reshape(-1)
        assert v.shape[0] == w, (name, v.shape, w)
        rows.append(jnp.pad(v, (0, _VEC_PACK_W - w)))
    pack = jnp.stack(rows, axis=0)
    kp["vecs"] = jnp.pad(
        pack, ((0, _VEC_PACK_ROWS - pack.shape[0]), (0, 0)))
    return kp


# ------------------------------ fused kernel ---------------------------------
def _fused_timellm_kernel(
    xpad_ref, vecs_ref,
    we_t_ref, map_w_ref, conv_w_ref,
    rep_wq_ref, rep_wkv_ref, rep_wo_ref,
    attn_wqkv_ref, attn_wo_ref,
    ffn_w1_ref, ffn_w2_ref, head_w_ref,
    o_ref, *, cfg):
    f32 = jnp.float32
    T, P, stride = cfg["seq_len"], cfg["patch_nums"], cfg["stride"]
    patch_len = cfg["patch_len"]
    H, E, S = cfg["n_heads"], cfg["d_keys"], cfg["num_tokens"]
    D = cfg["d_llm"]
    Hl = cfg["llm_heads"]
    El = D // Hl
    d_ff = cfg["d_ff"]
    B = xpad_ref.shape[0]
    BP = B * P                      # token rows, patch-major: row = p*B + b

    vecs = vecs_ref[...]            # packed 1-row parameter vectors

    def vec(name):
        r = _VEC_ROW[name]
        return vecs[r:r + 1, :_VEC_WIDTH[name]]

    def mm(a, b):                   # a @ b on the MXU with f32 accumulation
        return jnp.dot(a, b, preferred_element_type=f32)

    def mm_nt(a, b):                # a @ b.T (contract both minor dims)
        return jax.lax.dot_general(a, b, (((1,), (1,)), ((), ())),
                                   preferred_element_type=f32)

    def softmax_rows(s):
        s = s - jnp.max(s, axis=-1, keepdims=True)
        e = jnp.exp(s)
        return e * pl.reciprocal(jnp.sum(e, axis=-1, keepdims=True), approx=True)

    def layer_norm(h, g, b, eps=1e-5):
        mu = jnp.mean(h, axis=-1, keepdims=True)
        var = jnp.mean(jnp.square(h - mu), axis=-1, keepdims=True)
        return (h - mu) * jax.lax.rsqrt(var + eps) * g + b

    # ---- 1) RevIN normalization (statistics over the original T steps). ----
    xpad = xpad_ref[...]                                     # (B, T+stride)
    x = xpad[:, :T]
    mean = jnp.mean(x, axis=1, keepdims=True)                # (B, 1)
    var = jnp.mean(jnp.square(x - mean), axis=1, keepdims=True)
    std = jnp.sqrt(var + 1e-5)
    xn = (xpad - mean) / std                                 # (B, T+stride)

    # ---- 2) Word prototypes: src = (W_e^T @ W_map + b_map)^T  -> (S, D). ---
    src = (mm(we_t_ref[...], map_w_ref[...]) + vec("map_b")).T    # (S, D)

    # ---- 3) Patching + circular Conv1d as three shifted matmuls. -----------
    cur = jnp.concatenate(
        [xn[:, p * stride:p * stride + patch_len] for p in range(P)], axis=0)
    prv = jnp.concatenate([cur[BP - B:, :], cur[:BP - B, :]], axis=0)
    nxt = jnp.concatenate([cur[B:, :], cur[:B, :]], axis=0)
    conv_w = conv_w_ref[...]                                 # (3*patch_len, d_model)
    enc = (mm(prv, conv_w[:patch_len, :]) +
           mm(cur, conv_w[patch_len:2 * patch_len, :]) +
           mm(nxt, conv_w[2 * patch_len:, :]))               # (BP, d_model)

    # ---- 4) Reprogramming cross-attention (K/V shared across the batch). ---
    q = mm(enc, rep_wq_ref[...]) + vec("rep_bq")             # (BP, H*E)
    kv = mm(src, rep_wkv_ref[...]) + vec("rep_bkv")          # (S, 2*H*E)
    k, v = kv[:, :H * E], kv[:, H * E:]
    rep_wo = rep_wo_ref[...]
    scale = 1.0 / math.sqrt(E)
    xe = None
    for h in range(H):
        sl = slice(h * E, (h + 1) * E)
        s_h = mm_nt(q[:, sl], k[:, sl]) * scale              # (BP, S)
        o_h = mm(softmax_rows(s_h), v[:, sl])                # (BP, E)
        c_h = mm(o_h, rep_wo[sl, :])                         # (BP, D)
        xe = c_h if xe is None else xe + c_h
    xe = xe + vec("rep_bo")                                  # (BP, D)

    # ---- 5) LLM backbone: synthetic pre-LN transformer block. --------------
    # TODO(synk): the frozen GPT-2/LLaMA backbone is replaced by one synthetic
    # transformer block with deterministic weights (no pretrained LLM here).
    # Block-diagonal additive mask generated in-kernel: rows are patch-major
    # (row = p*B + b), so two rows may attend iff (row % B) matches.
    rid = jax.lax.broadcasted_iota(jnp.int32, (BP, BP), 0)
    cid = jax.lax.broadcasted_iota(jnp.int32, (BP, BP), 1)
    mask = jnp.where((rid % B) == (cid % B), 0.0, -1e30).astype(f32)

    h1 = layer_norm(xe, vec("ln1_g"), vec("ln1_b"))
    qkv = mm(h1, attn_wqkv_ref[...]) + vec("attn_bqkv")      # (BP, 3*D)
    qs, ks, vs = qkv[:, :D], qkv[:, D:2 * D], qkv[:, 2 * D:]
    attn_wo = attn_wo_ref[...]
    scale_l = 1.0 / math.sqrt(El)
    att = None
    for h in range(Hl):
        sl = slice(h * El, (h + 1) * El)
        s_h = mm_nt(qs[:, sl], ks[:, sl]) * scale_l + mask   # (BP, BP)
        o_h = mm(softmax_rows(s_h), vs[:, sl])               # (BP, El)
        c_h = mm(o_h, attn_wo[sl, :])                        # (BP, D)
        att = c_h if att is None else att + c_h
    xe = xe + att + vec("attn_bo")
    h2 = layer_norm(xe, vec("ln2_g"), vec("ln2_b"))
    ff = jax.nn.gelu(mm(h2, ffn_w1_ref[...]) + vec("ffn_b1"))
    ff = mm(ff, ffn_w2_ref[...]) + vec("ffn_b2")
    xe = xe + ff                                             # (BP, D)

    # ---- 6) FlattenHead: per-patch row blocks @ regrouped head weight. -----
    dec = xe[:, :d_ff]                                       # (BP, d_ff)
    head_w = head_w_ref[...]                                 # (P*d_ff, pred_len)
    out = None
    for p in range(P):
        c_p = mm(dec[p * B:(p + 1) * B, :],
                 head_w[p * d_ff:(p + 1) * d_ff, :])         # (B, pred_len)
        out = c_p if out is None else out + c_p
    out = out + vec("head_b")

    # ---- 7) RevIN de-normalization; wrapper's squeeze(-1). -----------------
    o_ref[...] = out * std + mean


# ------------------------------- forward pass --------------------------------
def timellm_starcaster_forward(kparams, past_time, context=None):
    """Mirrors TimeLLMStarCasterWrapper.forward:
    x_enc = past_time.unsqueeze(-1); return model(x_enc, ...).squeeze(-1).
    The whole TimeLLM forward runs as a single fused Pallas TPU kernel."""
    cfg = kparams["cfg"]
    B, _ = past_time.shape
    stride = cfg["stride"]

    # TODO(synk): `context` is tokenized with the frozen LLM tokenizer and
    # embedded as a prompt in TimeLLM; string tokenization has no Pallas
    # equivalent, so the prompt-embedding branch is omitted.
    del context

    x = past_time.astype(jnp.float32)
    # ReplicationPad1d((0, stride)); normalization commutes with this pad, so
    # padding the raw series lets the kernel slice patches statically.
    xpad = jnp.concatenate([x, jnp.repeat(x[:, -1:], stride, axis=1)], axis=1)

    kernel = functools.partial(_fused_timellm_kernel, cfg=cfg)
    args = (xpad, kparams["vecs"]) + tuple(kparams[n] for n in _MAT_ORDER)
    vmem = pl.BlockSpec(memory_space=pltpu.MemorySpace.VMEM)
    # Single invocation (no grid): the entire working set (< 1 MiB of weights
    # and activations) lives in VMEM; there is nothing to pipeline.
    # TODO(synk): for batches large enough to matter on v7x, add a leading
    # "parallel" grid axis over B so both TensorCores get work.
    return pl.pallas_call(
        kernel,
        out_shape=jax.ShapeDtypeStruct((B, cfg["pred_len"]), jnp.float32),
        in_specs=[vmem] * len(args),
        out_specs=vmem,
    )(*args)


# ----------------------------------- main ------------------------------------
if __name__ == "__main__":
    key = jax.random.PRNGKey(0)
    kparam_key, kx = jax.random.split(key)
    params = init_params(kparam_key)
    kparams = prepare_kernel_params(params)

    B, T = 2, CFG["seq_len"]
    past_time = jax.random.normal(kx, (B, T), jnp.float32)
    context = "Synthetic time-series dataset description (tokenization omitted)."

    fwd = jax.jit(lambda pt: timellm_starcaster_forward(kparams, pt, context))
    y = jax.block_until_ready(fwd(past_time))

    assert y.shape == (B, CFG["pred_len"]), y.shape
    assert bool(jnp.all(jnp.isfinite(y)))
    print("KERNEL_OK")
</pallas_src>

<mosaic_0001>
module attributes {stable_mosaic.version = 11 : i64} {
  func.func @_fused_timellm_kernel(%arg0: memref<2x36xf32, #tpu.memory_space<vmem>>, %arg1: memref<16x256xf32, #tpu.memory_space<vmem>>, %arg2: memref<64x128xf32, #tpu.memory_space<vmem>>, %arg3: memref<128x64xf32, #tpu.memory_space<vmem>>, %arg4: memref<24x32xf32, #tpu.memory_space<vmem>>, %arg5: memref<32x32xf32, #tpu.memory_space<vmem>>, %arg6: memref<64x64xf32, #tpu.memory_space<vmem>>, %arg7: memref<32x64xf32, #tpu.memory_space<vmem>>, %arg8: memref<64x192xf32, #tpu.memory_space<vmem>>, %arg9: memref<64x64xf32, #tpu.memory_space<vmem>>, %arg10: memref<64x256xf32, #tpu.memory_space<vmem>>, %arg11: memref<256x64xf32, #tpu.memory_space<vmem>>, %arg12: memref<256x16xf32, #tpu.memory_space<vmem>>, %arg13: memref<2x16xf32, #tpu.memory_space<vmem>>) attributes {dimension_semantics = [], scalar_prefetch = 0 : i64, scratch_operands = 0 : i64, tpu.core_type = #tpu.core_type<tc>} {
    %c0 = arith.constant 0 : index
    %c0_0 = arith.constant 0 : index
    %0 = vector.load %arg1[%c0, %c0_0] : memref<16x256xf32, #tpu.memory_space<vmem>>, vector<16x256xf32>
    %c0_1 = arith.constant 0 : index
    %c0_2 = arith.constant 0 : index
    %1 = vector.load %arg0[%c0_1, %c0_2] : memref<2x36xf32, #tpu.memory_space<vmem>>, vector<2x36xf32>
    %2 = vector.extract_strided_slice %1 {offsets = [0, 0], sizes = [2, 32], strides = [1, 1]} : vector<2x36xf32> to vector<2x32xf32>
    %cst = arith.constant dense<0.000000e+00> : vector<2xf32>
    %3 = vector.multi_reduction <add>, %2, %cst [1] : vector<2x32xf32> to vector<2xf32>
    %4 = vector.shape_cast %3 : vector<2xf32> to vector<2x1xf32>
    %cst_3 = arith.constant 3.200000e+01 : f32
    %5 = vector.broadcast %cst_3 : f32 to vector<2x1xf32>
    %6 = arith.divf %4, %5 : vector<2x1xf32>
    %7 = vector.broadcast %6 : vector<2x1xf32> to vector<2x32xf32>
    %8 = arith.subf %2, %7 : vector<2x32xf32>
    %9 = arith.mulf %8, %8 : vector<2x32xf32>
    %cst_4 = arith.constant dense<0.000000e+00> : vector<2xf32>
    %10 = vector.multi_reduction <add>, %9, %cst_4 [1] : vector<2x32xf32> to vector<2xf32>
    %11 = vector.shape_cast %10 : vector<2xf32> to vector<2x1xf32>
    %cst_5 = arith.constant 3.200000e+01 : f32
    %12 = vector.broadcast %cst_5 : f32 to vector<2x1xf32>
    %13 = arith.divf %11, %12 : vector<2x1xf32>
    %cst_6 = arith.constant 9.99999974E-6 : f32
    %14 = vector.broadcast %cst_6 : f32 to vector<2x1xf32>
    %15 = arith.addf %13, %14 : vector<2x1xf32>
    %16 = math.sqrt %15 : vector<2x1xf32>
    %17 = vector.broadcast %6 : vector<2x1xf32> to vector<2x36xf32>
    %18 = arith.subf %1, %17 : vector<2x36xf32>
    %19 = vector.broadcast %16 : vector<2x1xf32> to vector<2x36xf32>
    %20 = arith.divf %18, %19 : vector<2x36xf32>
    %c0_7 = arith.constant 0 : index
    %c0_8 = arith.constant 0 : index
    %21 = vector.load %arg2[%c0_7, %c0_8] : memref<64x128xf32, #tpu.memory_space<vmem>>, vector<64x128xf32>
    %c0_9 = arith.constant 0 : index
    %c0_10 = arith.constant 0 : index
    %22 = vector.load %arg3[%c0_9, %c0_10] : memref<128x64xf32, #tpu.memory_space<vmem>>, vector<128x64xf32>
    %cst_11 = arith.constant dense<0.000000e+00> : vector<64x64xf32>
    %23 = tpu.matmul %21, %22, %cst_11 {dimension_numbers = #tpu.dot_dimension_numbers<[1], [0], [0], [1], [0, 0, 1, 1], [], []>} : vector<64x128xf32>, vector<128x64xf32>, vector<64x64xf32> -> vector<64x64xf32>
    %24 = vector.extract_strided_slice %0 {offsets = [0, 0], sizes = [1, 64], strides = [1, 1]} : vector<16x256xf32> to vector<1x64xf32>
    %25 = vector.broadcast %24 : vector<1x64xf32> to vector<64x64xf32>
    %26 = arith.addf %23, %25 : vector<64x64xf32>
    %27 = tpu.transpose %26, [1, 0] : vector<64x64xf32> -> vector<64x64xf32>
    %28 = vector.extract_strided_slice %20 {offsets = [0, 0], sizes = [2, 8], strides = [1, 1]} : vector<2x36xf32> to vector<2x8xf32>
    %29 = vector.extract_strided_slice %20 {offsets = [0, 4], sizes = [2, 8], strides = [1, 1]} : vector<2x36xf32> to vector<2x8xf32>
    %30 = vector.extract_strided_slice %20 {offsets = [0, 8], sizes = [2, 8], strides = [1, 1]} : vector<2x36xf32> to vector<2x8xf32>
    %31 = vector.extract_strided_slice %20 {offsets = [0, 12], sizes = [2, 8], strides = [1, 1]} : vector<2x36xf32> to vector<2x8xf32>
    %32 = vector.extract_strided_slice %20 {offsets = [0, 16], sizes = [2, 8], strides = [1, 1]} : vector<2x36xf32> to vector<2x8xf32>
    %33 = vector.extract_strided_slice %20 {offsets = [0, 20], sizes = [2, 8], strides = [1, 1]} : vector<2x36xf32> to vector<2x8xf32>
    %34 = vector.extract_strided_slice %20 {offsets = [0, 24], sizes = [2, 8], strides = [1, 1]} : vector<2x36xf32> to vector<2x8xf32>
    %35 = vector.extract_strided_slice %20 {offsets = [0, 28], sizes = [2, 8], strides = [1, 1]} : vector<2x36xf32> to vector<2x8xf32>
    %36 = tpu.concatenate %28, %29, %30, %31, %32, %33, %34, %35 in 0 : vector<2x8xf32>, vector<2x8xf32>, vector<2x8xf32>, vector<2x8xf32>, vector<2x8xf32>, vector<2x8xf32>, vector<2x8xf32>, vector<2x8xf32> -> vector<16x8xf32>
    %37 = vector.extract_strided_slice %36 {offsets = [14, 0], sizes = [2, 8], strides = [1, 1]} : vector<16x8xf32> to vector<2x8xf32>
    %38 = vector.extract_strided_slice %36 {offsets = [0, 0], sizes = [14, 8], strides = [1, 1]} : vector<16x8xf32> to vector<14x8xf32>
    %39 = tpu.concatenate %37, %38 in 0 : vector<2x8xf32>, vector<14x8xf32> -> vector<16x8xf32>
    %40 = vector.extract_strided_slice %36 {offsets = [2, 0], sizes = [14, 8], strides = [1, 1]} : vector<16x8xf32> to vector<14x8xf32>
    %41 = vector.extract_strided_slice %36 {offsets = [0, 0], sizes = [2, 8], strides = [1, 1]} : vector<16x8xf32> to vector<2x8xf32>
    %42 = tpu.concatenate %40, %41 in 0 : vector<14x8xf32>, vector<2x8xf32> -> vector<16x8xf32>
    %c0_12 = arith.constant 0 : index
    %c0_13 = arith.constant 0 : index
    %43 = vector.load %arg4[%c0_12, %c0_13] : memref<24x32xf32, #tpu.memory_space<vmem>>, vector<24x32xf32>
    %44 = vector.extract_strided_slice %43 {offsets = [0, 0], sizes = [8, 32], strides = [1, 1]} : vector<24x32xf32> to vector<8x32xf32>
    %cst_14 = arith.constant dense<0.000000e+00> : vector<16x32xf32>
    %45 = tpu.matmul %39, %44, %cst_14 {dimension_numbers = #tpu.dot_dimension_numbers<[1], [0], [0], [1], [0, 0, 1, 1], [], []>} : vector<16x8xf32>, vector<8x32xf32>, vector<16x32xf32> -> vector<16x32xf32>
    %46 = vector.extract_strided_slice %43 {offsets = [8, 0], sizes = [8, 32], strides = [1, 1]} : vector<24x32xf32> to vector<8x32xf32>
    %cst_15 = arith.constant dense<0.000000e+00> : vector<16x32xf32>
    %47 = tpu.matmul %36, %46, %cst_15 {dimension_numbers = #tpu.dot_dimension_numbers<[1], [0], [0], [1], [0, 0, 1, 1], [], []>} : vector<16x8xf32>, vector<8x32xf32>, vector<16x32xf32> -> vector<16x32xf32>
    %48 = arith.addf %45, %47 : vector<16x32xf32>
    %49 = vector.extract_strided_slice %43 {offsets = [16, 0], sizes = [8, 32], strides = [1, 1]} : vector<24x32xf32> to vector<8x32xf32>
    %cst_16 = arith.constant dense<0.000000e+00> : vector<16x32xf32>
    %50 = tpu.matmul %42, %49, %cst_16 {dimension_numbers = #tpu.dot_dimension_numbers<[1], [0], [0], [1], [0, 0, 1, 1], [], []>} : vector<16x8xf32>, vector<8x32xf32>, vector<16x32xf32> -> vector<16x32xf32>
    %51 = arith.addf %48, %50 : vector<16x32xf32>
    %c0_17 = arith.constant 0 : index
    %c0_18 = arith.constant 0 : index
    %52 = vector.load %arg5[%c0_17, %c0_18] : memref<32x32xf32, #tpu.memory_space<vmem>>, vector<32x32xf32>
    %cst_19 = arith.constant dense<0.000000e+00> : vector<16x32xf32>
    %53 = tpu.matmul %51, %52, %cst_19 {dimension_numbers = #tpu.dot_dimension_numbers<[1], [0], [0], [1], [0, 0, 1, 1], [], []>} : vector<16x32xf32>, vector<32x32xf32>, vector<16x32xf32> -> vector<16x32xf32>
    %54 = vector.extract_strided_slice %0 {offsets = [1, 0], sizes = [1, 32], strides = [1, 1]} : vector<16x256xf32> to vector<1x32xf32>
    %55 = vector.broadcast %54 : vector<1x32xf32> to vector<16x32xf32>
    %56 = arith.addf %53, %55 : vector<16x32xf32>
    %c0_20 = arith.constant 0 : index
    %c0_21 = arith.constant 0 : index
    %57 = vector.load %arg6[%c0_20, %c0_21] : memref<64x64xf32, #tpu.memory_space<vmem>>, vector<64x64xf32>
    %cst_22 = arith.constant dense<0.000000e+00> : vector<64x64xf32>
    %58 = tpu.matmul %27, %57, %cst_22 {dimension_numbers = #tpu.dot_dimension_numbers<[1], [0], [0], [1], [0, 0, 1, 1], [], []>} : vector<64x64xf32>, vector<64x64xf32>, vector<64x64xf32> -> vector<64x64xf32>
    %59 = vector.extract_strided_slice %0 {offsets = [2, 0], sizes = [1, 64], strides = [1, 1]} : vector<16x256xf32> to vector<1x64xf32>
    %60 = vector.broadcast %59 : vector<1x64xf32> to vector<64x64xf32>
    %61 = arith.addf %58, %60 : vector<64x64xf32>
    %62 = vector.extract_strided_slice %61 {offsets = [0, 0], sizes = [64, 32], strides = [1, 1]} : vector<64x64xf32> to vector<64x32xf32>
    %63 = vector.extract_strided_slice %61 {offsets = [0, 32], sizes = [64, 32], strides = [1, 1]} : vector<64x64xf32> to vector<64x32xf32>
    %c0_23 = arith.constant 0 : index
    %c0_24 = arith.constant 0 : index
    %64 = vector.load %arg7[%c0_23, %c0_24] : memref<32x64xf32, #tpu.memory_space<vmem>>, vector<32x64xf32>
    %65 = vector.extract_strided_slice %56 {offsets = [0, 0], sizes = [16, 8], strides = [1, 1]} : vector<16x32xf32> to vector<16x8xf32>
    %66 = vector.extract_strided_slice %62 {offsets = [0, 0], sizes = [64, 8], strides = [1, 1]} : vector<64x32xf32> to vector<64x8xf32>
    %cst_25 = arith.constant dense<0.000000e+00> : vector<16x64xf32>
    %67 = tpu.matmul %65, %66, %cst_25 {dimension_numbers = #tpu.dot_dimension_numbers<[1], [1], [0], [0], [0, 0, 1, 0], [], []>} : vector<16x8xf32>, vector<64x8xf32>, vector<16x64xf32> -> vector<16x64xf32>
    %cst_26 = arith.constant 0.353553385 : f32
    %68 = vector.broadcast %cst_26 : f32 to vector<16x64xf32>
    %69 = arith.mulf %67, %68 : vector<16x64xf32>
    %cst_27 = arith.constant dense<0xFF800000> : vector<16xf32>
    %70 = vector.multi_reduction <maximumf>, %69, %cst_27 [1] : vector<16x64xf32> to vector<16xf32>
    %71 = vector.shape_cast %70 : vector<16xf32> to vector<16x1xf32>
    %72 = vector.broadcast %71 : vector<16x1xf32> to vector<16x64xf32>
    %73 = arith.subf %69, %72 : vector<16x64xf32>
    %74 = math.exp %73 : vector<16x64xf32>
    %cst_28 = arith.constant dense<0.000000e+00> : vector<16xf32>
    %75 = vector.multi_reduction <add>, %74, %cst_28 [1] : vector<16x64xf32> to vector<16xf32>
    %76 = vector.shape_cast %75 : vector<16xf32> to vector<16x1xf32>
    %77 = tpu.reciprocal %76 {approx = true} : vector<16x1xf32> -> vector<16x1xf32>
    %78 = vector.broadcast %77 : vector<16x1xf32> to vector<16x64xf32>
    %79 = arith.mulf %74, %78 : vector<16x64xf32>
    %80 = vector.extract_strided_slice %63 {offsets = [0, 0], sizes = [64, 8], strides = [1, 1]} : vector<64x32xf32> to vector<64x8xf32>
    %cst_29 = arith.constant dense<0.000000e+00> : vector<16x8xf32>
    %81 = tpu.matmul %79, %80, %cst_29 {dimension_numbers = #tpu.dot_dimension_numbers<[1], [0], [0], [1], [0, 0, 1, 1], [], []>} : vector<16x64xf32>, vector<64x8xf32>, vector<16x8xf32> -> vector<16x8xf32>
    %82 = vector.extract_strided_slice %64 {offsets = [0, 0], sizes = [8, 64], strides = [1, 1]} : vector<32x64xf32> to vector<8x64xf32>
    %cst_30 = arith.constant dense<0.000000e+00> : vector<16x64xf32>
    %83 = tpu.matmul %81, %82, %cst_30 {dimension_numbers = #tpu.dot_dimension_numbers<[1], [0], [0], [1], [0, 0, 1, 1], [], []>} : vector<16x8xf32>, vector<8x64xf32>, vector<16x64xf32> -> vector<16x64xf32>
    %84 = vector.extract_strided_slice %56 {offsets = [0, 8], sizes = [16, 8], strides = [1, 1]} : vector<16x32xf32> to vector<16x8xf32>
    %85 = vector.extract_strided_slice %62 {offsets = [0, 8], sizes = [64, 8], strides = [1, 1]} : vector<64x32xf32> to vector<64x8xf32>
    %cst_31 = arith.constant dense<0.000000e+00> : vector<16x64xf32>
    %86 = tpu.matmul %84, %85, %cst_31 {dimension_numbers = #tpu.dot_dimension_numbers<[1], [1], [0], [0], [0, 0, 1, 0], [], []>} : vector<16x8xf32>, vector<64x8xf32>, vector<16x64xf32> -> vector<16x64xf32>
    %cst_32 = arith.constant 0.353553385 : f32
    %87 = vector.broadcast %cst_32 : f32 to vector<16x64xf32>
    %88 = arith.mulf %86, %87 : vector<16x64xf32>
    %cst_33 = arith.constant dense<0xFF800000> : vector<16xf32>
    %89 = vector.multi_reduction <maximumf>, %88, %cst_33 [1] : vector<16x64xf32> to vector<16xf32>
    %90 = vector.shape_cast %89 : vector<16xf32> to vector<16x1xf32>
    %91 = vector.broadcast %90 : vector<16x1xf32> to vector<16x64xf32>
    %92 = arith.subf %88, %91 : vector<16x64xf32>
    %93 = math.exp %92 : vector<16x64xf32>
    %cst_34 = arith.constant dense<0.000000e+00> : vector<16xf32>
    %94 = vector.multi_reduction <add>, %93, %cst_34 [1] : vector<16x64xf32> to vector<16xf32>
    %95 = vector.shape_cast %94 : vector<16xf32> to vector<16x1xf32>
    %96 = tpu.reciprocal %95 {approx = true} : vector<16x1xf32> -> vector<16x1xf32>
    %97 = vector.broadcast %96 : vector<16x1xf32> to vector<16x64xf32>
    %98 = arith.mulf %93, %97 : vector<16x64xf32>
    %99 = vector.extract_strided_slice %63 {offsets = [0, 8], sizes = [64, 8], strides = [1, 1]} : vector<64x32xf32> to vector<64x8xf32>
    %cst_35 = arith.constant dense<0.000000e+00> : vector<16x8xf32>
    %100 = tpu.matmul %98, %99, %cst_35 {dimension_numbers = #tpu.dot_dimension_numbers<[1], [0], [0], [1], [0, 0, 1, 1], [], []>} : vector<16x64xf32>, vector<64x8xf32>, vector<16x8xf32> -> vector<16x8xf32>
    %101 = vector.extract_strided_slice %64 {offsets = [8, 0], sizes = [8, 64], strides = [1, 1]} : vector<32x64xf32> to vector<8x64xf32>
    %cst_36 = arith.constant dense<0.000000e+00> : vector<16x64xf32>
    %102 = tpu.matmul %100, %101, %cst_36 {dimension_numbers = #tpu.dot_dimension_numbers<[1], [0], [0], [1], [0, 0, 1, 1], [], []>} : vector<16x8xf32>, vector<8x64xf32>, vector<16x64xf32> -> vector<16x64xf32>
    %103 = arith.addf %83, %102 : vector<16x64xf32>
    %104 = vector.extract_strided_slice %56 {offsets = [0, 16], sizes = [16, 8], strides = [1, 1]} : vector<16x32xf32> to vector<16x8xf32>
    %105 = vector.extract_strided_slice %62 {offsets = [0, 16], sizes = [64, 8], strides = [1, 1]} : vector<64x32xf32> to vector<64x8xf32>
    %cst_37 = arith.constant dense<0.000000e+00> : vector<16x64xf32>
    %106 = tpu.matmul %104, %105, %cst_37 {dimension_numbers = #tpu.dot_dimension_numbers<[1], [1], [0], [0], [0, 0, 1, 0], [], []>} : vector<16x8xf32>, vector<64x8xf32>, vector<16x64xf32> -> vector<16x64xf32>
    %cst_38 = arith.constant 0.353553385 : f32
    %107 = vector.broadcast %cst_38 : f32 to vector<16x64xf32>
    %108 = arith.mulf %106, %107 : vector<16x64xf32>
    %cst_39 = arith.constant dense<0xFF800000> : vector<16xf32>
    %109 = vector.multi_reduction <maximumf>, %108, %cst_39 [1] : vector<16x64xf32> to vector<16xf32>
    %110 = vector.shape_cast %109 : vector<16xf32> to vector<16x1xf32>
    %111 = vector.broadcast %110 : vector<16x1xf32> to vector<16x64xf32>
    %112 = arith.subf %108, %111 : vector<16x64xf32>
    %113 = math.exp %112 : vector<16x64xf32>
    %cst_40 = arith.constant dense<0.000000e+00> : vector<16xf32>
    %114 = vector.multi_reduction <add>, %113, %cst_40 [1] : vector<16x64xf32> to vector<16xf32>
    %115 = vector.shape_cast %114 : vector<16xf32> to vector<16x1xf32>
    %116 = tpu.reciprocal %115 {approx = true} : vector<16x1xf32> -> vector<16x1xf32>
    %117 = vector.broadcast %116 : vector<16x1xf32> to vector<16x64xf32>
    %118 = arith.mulf %113, %117 : vector<16x64xf32>
    %119 = vector.extract_strided_slice %63 {offsets = [0, 16], sizes = [64, 8], strides = [1, 1]} : vector<64x32xf32> to vector<64x8xf32>
    %cst_41 = arith.constant dense<0.000000e+00> : vector<16x8xf32>
    %120 = tpu.matmul %118, %119, %cst_41 {dimension_numbers = #tpu.dot_dimension_numbers<[1], [0], [0], [1], [0, 0, 1, 1], [], []>} : vector<16x64xf32>, vector<64x8xf32>, vector<16x8xf32> -> vector<16x8xf32>
    %121 = vector.extract_strided_slice %64 {offsets = [16, 0], sizes = [8, 64], strides = [1, 1]} : vector<32x64xf32> to vector<8x64xf32>
    %cst_42 = arith.constant dense<0.000000e+00> : vector<16x64xf32>
    %122 = tpu.matmul %120, %121, %cst_42 {dimension_numbers = #tpu.dot_dimension_numbers<[1], [0], [0], [1], [0, 0, 1, 1], [], []>} : vector<16x8xf32>, vector<8x64xf32>, vector<16x64xf32> -> vector<16x64xf32>
    %123 = arith.addf %103, %122 : vector<16x64xf32>
    %124 = vector.extract_strided_slice %56 {offsets = [0, 24], sizes = [16, 8], strides = [1, 1]} : vector<16x32xf32> to vector<16x8xf32>
    %125 = vector.extract_strided_slice %62 {offsets = [0, 24], sizes = [64, 8], strides = [1, 1]} : vector<64x32xf32> to vector<64x8xf32>
    %cst_43 = arith.constant dense<0.000000e+00> : vector<16x64xf32>
    %126 = tpu.matmul %124, %125, %cst_43 {dimension_numbers = #tpu.dot_dimension_numbers<[1], [1], [0], [0], [0, 0, 1, 0], [], []>} : vector<16x8xf32>, vector<64x8xf32>, vector<16x64xf32> -> vector<16x64xf32>
    %cst_44 = arith.constant 0.353553385 : f32
    %127 = vector.broadcast %cst_44 : f32 to vector<16x64xf32>
    %128 = arith.mulf %126, %127 : vector<16x64xf32>
    %cst_45 = arith.constant dense<0xFF800000> : vector<16xf32>
    %129 = vector.multi_reduction <maximumf>, %128, %cst_45 [1] : vector<16x64xf32> to vector<16xf32>
    %130 = vector.shape_cast %129 : vector<16xf32> to vector<16x1xf32>
    %131 = vector.broadcast %130 : vector<16x1xf32> to vector<16x64xf32>
    %132 = arith.subf %128, %131 : vector<16x64xf32>
    %133 = math.exp %132 : vector<16x64xf32>
    %cst_46 = arith.constant dense<0.000000e+00> : vector<16xf32>
    %134 = vector.multi_reduction <add>, %133, %cst_46 [1] : vector<16x64xf32> to vector<16xf32>
    %135 = vector.shape_cast %134 : vector<16xf32> to vector<16x1xf32>
    %136 = tpu.reciprocal %135 {approx = true} : vector<16x1xf32> -> vector<16x1xf32>
    %137 = vector.broadcast %136 : vector<16x1xf32> to vector<16x64xf32>
    %138 = arith.mulf %133, %137 : vector<16x64xf32>
    %139 = vector.extract_strided_slice %63 {offsets = [0, 24], sizes = [64, 8], strides = [1, 1]} : vector<64x32xf32> to vector<64x8xf32>
    %cst_47 = arith.constant dense<0.000000e+00> : vector<16x8xf32>
    %140 = tpu.matmul %138, %139, %cst_47 {dimension_numbers = #tpu.dot_dimension_numbers<[1], [0], [0], [1], [0, 0, 1, 1], [], []>} : vector<16x64xf32>, vector<64x8xf32>, vector<16x8xf32> -> vector<16x8xf32>
    %141 = vector.extract_strided_slice %64 {offsets = [24, 0], sizes = [8, 64], strides = [1, 1]} : vector<32x64xf32> to vector<8x64xf32>
    %cst_48 = arith.constant dense<0.000000e+00> : vector<16x64xf32>
    %142 = tpu.matmul %140, %141, %cst_48 {dimension_numbers = #tpu.dot_dimension_numbers<[1], [0], [0], [1], [0, 0, 1, 1], [], []>} : vector<16x8xf32>, vector<8x64xf32>, vector<16x64xf32> -> vector<16x64xf32>
    %143 = arith.addf %123, %142 : vector<16x64xf32>
    %144 = vector.extract_strided_slice %0 {offsets = [3, 0], sizes = [1, 64], strides = [1, 1]} : vector<16x256xf32> to vector<1x64xf32>
    %145 = vector.broadcast %144 : vector<1x64xf32> to vector<16x64xf32>
    %146 = arith.addf %143, %145 : vector<16x64xf32>
    %147 = tpu.iota {dimensions = array<i32: 0>} : vector<16x16xi32>
    %148 = tpu.iota {dimensions = array<i32: 1>} : vector<16x16xi32>
    %c2_i32 = arith.constant 2 : i32
    %c0_i32 = arith.constant 0 : i32
    %149 = arith.cmpi eq, %c2_i32, %c0_i32 : i32
    %c1_i32 = arith.constant 1 : i32
    %150 = arith.select %149, %c1_i32, %c2_i32 : i32
    %151 = vector.broadcast %150 : i32 to vector<16x16xi32>
    %152 = arith.remsi %147, %151 : vector<16x16xi32>
    %c0_i32_49 = arith.constant 0 : i32
    %153 = vector.broadcast %c0_i32_49 : i32 to vector<16x16xi32>
    %154 = arith.cmpi ne, %152, %153 : vector<16x16xi32>
    %c0_i32_50 = arith.constant 0 : i32
    %155 = vector.broadcast %c0_i32_50 : i32 to vector<16x16xi32>
    %156 = arith.cmpi slt, %152, %155 : vector<16x16xi32>
    %c0_i32_51 = arith.constant 0 : i32
    %157 = arith.cmpi slt, %150, %c0_i32_51 : i32
    %158 = vector.broadcast %157 : i1 to vector<16x16xi1>
    %159 = vector.broadcast %158 : vector<16x16xi1> to vector<16x16xi1>
    %160 = arith.xori %156, %159 : vector<16x16xi1>
    %161 = arith.andi %160, %154 : vector<16x16xi1>
    %162 = vector.broadcast %150 : i32 to vector<16x16xi32>
    %163 = arith.addi %152, %162 : vector<16x16xi32>
    %164 = arith.select %161, %163, %152 : vector<16x16xi1>, vector<16x16xi32>
    %c2_i32_52 = arith.constant 2 : i32
    %c0_i32_53 = arith.constant 0 : i32
    %165 = arith.cmpi eq, %c2_i32_52, %c0_i32_53 : i32
    %c1_i32_54 = arith.constant 1 : i32
    %166 = arith.select %165, %c1_i32_54, %c2_i32_52 : i32
    %167 = vector.broadcast %166 : i32 to vector<16x16xi32>
    %168 = arith.remsi %148, %167 : vector<16x16xi32>
    %c0_i32_55 = arith.constant 0 : i32
    %169 = vector.broadcast %c0_i32_55 : i32 to vector<16x16xi32>
    %170 = arith.cmpi ne, %168, %169 : vector<16x16xi32>
    %c0_i32_56 = arith.constant 0 : i32
    %171 = vector.broadcast %c0_i32_56 : i32 to vector<16x16xi32>
    %172 = arith.cmpi slt, %168, %171 : vector<16x16xi32>
    %c0_i32_57 = arith.constant 0 : i32
    %173 = arith.cmpi slt, %166, %c0_i32_57 : i32
    %174 = vector.broadcast %173 : i1 to vector<16x16xi1>
    %175 = vector.broadcast %174 : vector<16x16xi1> to vector<16x16xi1>
    %176 = arith.xori %172, %175 : vector<16x16xi1>
    %177 = arith.andi %176, %170 : vector<16x16xi1>
    %178 = vector.broadcast %166 : i32 to vector<16x16xi32>
    %179 = arith.addi %168, %178 : vector<16x16xi32>
    %180 = arith.select %177, %179, %168 : vector<16x16xi1>, vector<16x16xi32>
    %181 = arith.cmpi eq, %164, %180 : vector<16x16xi32>
    %cst_58 = arith.constant 0.000000e+00 : f32
    %cst_59 = arith.constant -1.000000e+30 : f32
    %182 = vector.broadcast %cst_58 : f32 to vector<16x16xf32>
    %183 = vector.broadcast %cst_59 : f32 to vector<16x16xf32>
    %184 = arith.select %181, %182, %183 : vector<16x16xi1>, vector<16x16xf32>
    %185 = vector.extract_strided_slice %0 {offsets = [4, 0], sizes = [1, 64], strides = [1, 1]} : vector<16x256xf32> to vector<1x64xf32>
    %186 = vector.extract_strided_slice %0 {offsets = [5, 0], sizes = [1, 64], strides = [1, 1]} : vector<16x256xf32> to vector<1x64xf32>
    %cst_60 = arith.constant dense<0.000000e+00> : vector<16xf32>
    %187 = vector.multi_reduction <add>, %146, %cst_60 [1] : vector<16x64xf32> to vector<16xf32>
    %188 = vector.shape_cast %187 : vector<16xf32> to vector<16x1xf32>
    %cst_61 = arith.constant 6.400000e+01 : f32
    %189 = vector.broadcast %cst_61 : f32 to vector<16x1xf32>
    %190 = arith.divf %188, %189 : vector<16x1xf32>
    %191 = vector.broadcast %190 : vector<16x1xf32> to vector<16x64xf32>
    %192 = arith.subf %146, %191 : vector<16x64xf32>
    %193 = arith.mulf %192, %192 : vector<16x64xf32>
    %cst_62 = arith.constant dense<0.000000e+00> : vector<16xf32>
    %194 = vector.multi_reduction <add>, %193, %cst_62 [1] : vector<16x64xf32> to vector<16xf32>
    %195 = vector.shape_cast %194 : vector<16xf32> to vector<16x1xf32>
    %cst_63 = arith.constant 6.400000e+01 : f32
    %196 = vector.broadcast %cst_63 : f32 to vector<16x1xf32>
    %197 = arith.divf %195, %196 : vector<16x1xf32>
    %198 = vector.broadcast %190 : vector<16x1xf32> to vector<16x64xf32>
    %199 = arith.subf %146, %198 : vector<16x64xf32>
    %cst_64 = arith.constant 9.99999974E-6 : f32
    %200 = vector.broadcast %cst_64 : f32 to vector<16x1xf32>
    %201 = arith.addf %197, %200 : vector<16x1xf32>
    %202 = math.rsqrt %201 : vector<16x1xf32>
    %203 = vector.broadcast %202 : vector<16x1xf32> to vector<16x64xf32>
    %204 = arith.mulf %199, %203 : vector<16x64xf32>
    %205 = vector.broadcast %185 : vector<1x64xf32> to vector<16x64xf32>
    %206 = arith.mulf %204, %205 : vector<16x64xf32>
    %207 = vector.broadcast %186 : vector<1x64xf32> to vector<16x64xf32>
    %208 = arith.addf %206, %207 : vector<16x64xf32>
    %c0_65 = arith.constant 0 : index
    %c0_66 = arith.constant 0 : index
    %209 = vector.load %arg8[%c0_65, %c0_66] : memref<64x192xf32, #tpu.memory_space<vmem>>, vector<64x192xf32>
    %cst_67 = arith.constant dense<0.000000e+00> : vector<16x192xf32>
    %210 = tpu.matmul %208, %209, %cst_67 {dimension_numbers = #tpu.dot_dimension_numbers<[1], [0], [0], [1], [0, 0, 1, 1], [], []>} : vector<16x64xf32>, vector<64x192xf32>, vector<16x192xf32> -> vector<16x192xf32>
    %211 = vector.extract_strided_slice %0 {offsets = [6, 0], sizes = [1, 192], strides = [1, 1]} : vector<16x256xf32> to vector<1x192xf32>
    %212 = vector.broadcast %211 : vector<1x192xf32> to vector<16x192xf32>
    %213 = arith.addf %210, %212 : vector<16x192xf32>
    %214 = vector.extract_strided_slice %213 {offsets = [0, 0], sizes = [16, 64], strides = [1, 1]} : vector<16x192xf32> to vector<16x64xf32>
    %215 = vector.extract_strided_slice %213 {offsets = [0, 64], sizes = [16, 64], strides = [1, 1]} : vector<16x192xf32> to vector<16x64xf32>
    %216 = vector.extract_strided_slice %213 {offsets = [0, 128], sizes = [16, 64], strides = [1, 1]} : vector<16x192xf32> to vector<16x64xf32>
    %c0_68 = arith.constant 0 : index
    %c0_69 = arith.constant 0 : index
    %217 = vector.load %arg9[%c0_68, %c0_69] : memref<64x64xf32, #tpu.memory_space<vmem>>, vector<64x64xf32>
    %218 = vector.extract_strided_slice %214 {offsets = [0, 0], sizes = [16, 16], strides = [1, 1]} : vector<16x64xf32> to vector<16x16xf32>
    %219 = vector.extract_strided_slice %215 {offsets = [0, 0], sizes = [16, 16], strides = [1, 1]} : vector<16x64xf32> to vector<16x16xf32>
    %cst_70 = arith.constant dense<0.000000e+00> : vector<16x16xf32>
    %220 = tpu.matmul %218, %219, %cst_70 {dimension_numbers = #tpu.dot_dimension_numbers<[1], [1], [0], [0], [0, 0, 1, 0], [], []>} : vector<16x16xf32>, vector<16x16xf32>, vector<16x16xf32> -> vector<16x16xf32>
    %cst_71 = arith.constant 2.500000e-01 : f32
    %221 = vector.broadcast %cst_71 : f32 to vector<16x16xf32>
    %222 = arith.mulf %220, %221 : vector<16x16xf32>
    %223 = arith.addf %222, %184 : vector<16x16xf32>
    %cst_72 = arith.constant dense<0xFF800000> : vector<16xf32>
    %224 = vector.multi_reduction <maximumf>, %223, %cst_72 [1] : vector<16x16xf32> to vector<16xf32>
    %225 = vector.shape_cast %224 : vector<16xf32> to vector<16x1xf32>
    %226 = vector.broadcast %225 : vector<16x1xf32> to vector<16x16xf32>
    %227 = arith.subf %223, %226 : vector<16x16xf32>
    %228 = math.exp %227 : vector<16x16xf32>
    %cst_73 = arith.constant dense<0.000000e+00> : vector<16xf32>
    %229 = vector.multi_reduction <add>, %228, %cst_73 [1] : vector<16x16xf32> to vector<16xf32>
    %230 = vector.shape_cast %229 : vector<16xf32> to vector<16x1xf32>
    %231 = tpu.reciprocal %230 {approx = true} : vector<16x1xf32> -> vector<16x1xf32>
    %232 = vector.broadcast %231 : vector<16x1xf32> to vector<16x16xf32>
    %233 = arith.mulf %228, %232 : vector<16x16xf32>
    %234 = vector.extract_strided_slice %216 {offsets = [0, 0], sizes = [16, 16], strides = [1, 1]} : vector<16x64xf32> to vector<16x16xf32>
    %cst_74 = arith.constant dense<0.000000e+00> : vector<16x16xf32>
    %235 = tpu.matmul %233, %234, %cst_74 {dimension_numbers = #tpu.dot_dimension_numbers<[1], [0], [0], [1], [0, 0, 1, 1], [], []>} : vector<16x16xf32>, vector<16x16xf32>, vector<16x16xf32> -> vector<16x16xf32>
    %236 = vector.extract_strided_slice %217 {offsets = [0, 0], sizes = [16, 64], strides = [1, 1]} : vector<64x64xf32> to vector<16x64xf32>
    %cst_75 = arith.constant dense<0.000000e+00> : vector<16x64xf32>
    %237 = tpu.matmul %235, %236, %cst_75 {dimension_numbers = #tpu.dot_dimension_numbers<[1], [0], [0], [1], [0, 0, 1, 1], [], []>} : vector<16x16xf32>, vector<16x64xf32>, vector<16x64xf32> -> vector<16x64xf32>
    %238 = vector.extract_strided_slice %214 {offsets = [0, 16], sizes = [16, 16], strides = [1, 1]} : vector<16x64xf32> to vector<16x16xf32>
    %239 = vector.extract_strided_slice %215 {offsets = [0, 16], sizes = [16, 16], strides = [1, 1]} : vector<16x64xf32> to vector<16x16xf32>
    %cst_76 = arith.constant dense<0.000000e+00> : vector<16x16xf32>
    %240 = tpu.matmul %238, %239, %cst_76 {dimension_numbers = #tpu.dot_dimension_numbers<[1], [1], [0], [0], [0, 0, 1, 0], [], []>} : vector<16x16xf32>, vector<16x16xf32>, vector<16x16xf32> -> vector<16x16xf32>
    %cst_77 = arith.constant 2.500000e-01 : f32
    %241 = vector.broadcast %cst_77 : f32 to vector<16x16xf32>
    %242 = arith.mulf %240, %241 : vector<16x16xf32>
    %243 = arith.addf %242, %184 : vector<16x16xf32>
    %cst_78 = arith.constant dense<0xFF800000> : vector<16xf32>
    %244 = vector.multi_reduction <maximumf>, %243, %cst_78 [1] : vector<16x16xf32> to vector<16xf32>
    %245 = vector.shape_cast %244 : vector<16xf32> to vector<16x1xf32>
    %246 = vector.broadcast %245 : vector<16x1xf32> to vector<16x16xf32>
    %247 = arith.subf %243, %246 : vector<16x16xf32>
    %248 = math.exp %247 : vector<16x16xf32>
    %cst_79 = arith.constant dense<0.000000e+00> : vector<16xf32>
    %249 = vector.multi_reduction <add>, %248, %cst_79 [1] : vector<16x16xf32> to vector<16xf32>
    %250 = vector.shape_cast %249 : vector<16xf32> to vector<16x1xf32>
    %251 = tpu.reciprocal %250 {approx = true} : vector<16x1xf32> -> vector<16x1xf32>
    %252 = vector.broadcast %251 : vector<16x1xf32> to vector<16x16xf32>
    %253 = arith.mulf %248, %252 : vector<16x16xf32>
    %254 = vector.extract_strided_slice %216 {offsets = [0, 16], sizes = [16, 16], strides = [1, 1]} : vector<16x64xf32> to vector<16x16xf32>
    %cst_80 = arith.constant dense<0.000000e+00> : vector<16x16xf32>
    %255 = tpu.matmul %253, %254, %cst_80 {dimension_numbers = #tpu.dot_dimension_numbers<[1], [0], [0], [1], [0, 0, 1, 1], [], []>} : vector<16x16xf32>, vector<16x16xf32>, vector<16x16xf32> -> vector<16x16xf32>
    %256 = vector.extract_strided_slice %217 {offsets = [16, 0], sizes = [16, 64], strides = [1, 1]} : vector<64x64xf32> to vector<16x64xf32>
    %cst_81 = arith.constant dense<0.000000e+00> : vector<16x64xf32>
    %257 = tpu.matmul %255, %256, %cst_81 {dimension_numbers = #tpu.dot_dimension_numbers<[1], [0], [0], [1], [0, 0, 1, 1], [], []>} : vector<16x16xf32>, vector<16x64xf32>, vector<16x64xf32> -> vector<16x64xf32>
    %258 = arith.addf %237, %257 : vector<16x64xf32>
    %259 = vector.extract_strided_slice %214 {offsets = [0, 32], sizes = [16, 16], strides = [1, 1]} : vector<16x64xf32> to vector<16x16xf32>
    %260 = vector.extract_strided_slice %215 {offsets = [0, 32], sizes = [16, 16], strides = [1, 1]} : vector<16x64xf32> to vector<16x16xf32>
    %cst_82 = arith.constant dense<0.000000e+00> : vector<16x16xf32>
    %261 = tpu.matmul %259, %260, %cst_82 {dimension_numbers = #tpu.dot_dimension_numbers<[1], [1], [0], [0], [0, 0, 1, 0], [], []>} : vector<16x16xf32>, vector<16x16xf32>, vector<16x16xf32> -> vector<16x16xf32>
    %cst_83 = arith.constant 2.500000e-01 : f32
    %262 = vector.broadcast %cst_83 : f32 to vector<16x16xf32>
    %263 = arith.mulf %261, %262 : vector<16x16xf32>
    %264 = arith.addf %263, %184 : vector<16x16xf32>
    %cst_84 = arith.constant dense<0xFF800000> : vector<16xf32>
    %265 = vector.multi_reduction <maximumf>, %264, %cst_84 [1] : vector<16x16xf32> to vector<16xf32>
    %266 = vector.shape_cast %265 : vector<16xf32> to vector<16x1xf32>
    %267 = vector.broadcast %266 : vector<16x1xf32> to vector<16x16xf32>
    %268 = arith.subf %264, %267 : vector<16x16xf32>
    %269 = math.exp %268 : vector<16x16xf32>
    %cst_85 = arith.constant dense<0.000000e+00> : vector<16xf32>
    %270 = vector.multi_reduction <add>, %269, %cst_85 [1] : vector<16x16xf32> to vector<16xf32>
    %271 = vector.shape_cast %270 : vector<16xf32> to vector<16x1xf32>
    %272 = tpu.reciprocal %271 {approx = true} : vector<16x1xf32> -> vector<16x1xf32>
    %273 = vector.broadcast %272 : vector<16x1xf32> to vector<16x16xf32>
    %274 = arith.mulf %269, %273 : vector<16x16xf32>
    %275 = vector.extract_strided_slice %216 {offsets = [0, 32], sizes = [16, 16], strides = [1, 1]} : vector<16x64xf32> to vector<16x16xf32>
    %cst_86 = arith.constant dense<0.000000e+00> : vector<16x16xf32>
    %276 = tpu.matmul %274, %275, %cst_86 {dimension_numbers = #tpu.dot_dimension_numbers<[1], [0], [0], [1], [0, 0, 1, 1], [], []>} : vector<16x16xf32>, vector<16x16xf32>, vector<16x16xf32> -> vector<16x16xf32>
    %277 = vector.extract_strided_slice %217 {offsets = [32, 0], sizes = [16, 64], strides = [1, 1]} : vector<64x64xf32> to vector<16x64xf32>
    %cst_87 = arith.constant dense<0.000000e+00> : vector<16x64xf32>
    %278 = tpu.matmul %276, %277, %cst_87 {dimension_numbers = #tpu.dot_dimension_numbers<[1], [0], [0], [1], [0, 0, 1, 1], [], []>} : vector<16x16xf32>, vector<16x64xf32>, vector<16x64xf32> -> vector<16x64xf32>
    %279 = arith.addf %258, %278 : vector<16x64xf32>
    %280 = vector.extract_strided_slice %214 {offsets = [0, 48], sizes = [16, 16], strides = [1, 1]} : vector<16x64xf32> to vector<16x16xf32>
    %281 = vector.extract_strided_slice %215 {offsets = [0, 48], sizes = [16, 16], strides = [1, 1]} : vector<16x64xf32> to vector<16x16xf32>
    %cst_88 = arith.constant dense<0.000000e+00> : vector<16x16xf32>
    %282 = tpu.matmul %280, %281, %cst_88 {dimension_numbers = #tpu.dot_dimension_numbers<[1], [1], [0], [0], [0, 0, 1, 0], [], []>} : vector<16x16xf32>, vector<16x16xf32>, vector<16x16xf32> -> vector<16x16xf32>
    %cst_89 = arith.constant 2.500000e-01 : f32
    %283 = vector.broadcast %cst_89 : f32 to vector<16x16xf32>
    %284 = arith.mulf %282, %283 : vector<16x16xf32>
    %285 = arith.addf %284, %184 : vector<16x16xf32>
    %cst_90 = arith.constant dense<0xFF800000> : vector<16xf32>
    %286 = vector.multi_reduction <maximumf>, %285, %cst_90 [1] : vector<16x16xf32> to vector<16xf32>
    %287 = vector.shape_cast %286 : vector<16xf32> to vector<16x1xf32>
    %288 = vector.broadcast %287 : vector<16x1xf32> to vector<16x16xf32>
    %289 = arith.subf %285, %288 : vector<16x16xf32>
    %290 = math.exp %289 : vector<16x16xf32>
    %cst_91 = arith.constant dense<0.000000e+00> : vector<16xf32>
    %291 = vector.multi_reduction <add>, %290, %cst_91 [1] : vector<16x16xf32> to vector<16xf32>
    %292 = vector.shape_cast %291 : vector<16xf32> to vector<16x1xf32>
    %293 = tpu.reciprocal %292 {approx = true} : vector<16x1xf32> -> vector<16x1xf32>
    %294 = vector.broadcast %293 : vector<16x1xf32> to vector<16x16xf32>
    %295 = arith.mulf %290, %294 : vector<16x16xf32>
    %296 = vector.extract_strided_slice %216 {offsets = [0, 48], sizes = [16, 16], strides = [1, 1]} : vector<16x64xf32> to vector<16x16xf32>
    %cst_92 = arith.constant dense<0.000000e+00> : vector<16x16xf32>
    %297 = tpu.matmul %295, %296, %cst_92 {dimension_numbers = #tpu.dot_dimension_numbers<[1], [0], [0], [1], [0, 0, 1, 1], [], []>} : vector<16x16xf32>, vector<16x16xf32>, vector<16x16xf32> -> vector<16x16xf32>
    %298 = vector.extract_strided_slice %217 {offsets = [48, 0], sizes = [16, 64], strides = [1, 1]} : vector<64x64xf32> to vector<16x64xf32>
    %cst_93 = arith.constant dense<0.000000e+00> : vector<16x64xf32>
    %299 = tpu.matmul %297, %298, %cst_93 {dimension_numbers = #tpu.dot_dimension_numbers<[1], [0], [0], [1], [0, 0, 1, 1], [], []>} : vector<16x16xf32>, vector<16x64xf32>, vector<16x64xf32> -> vector<16x64xf32>
    %300 = arith.addf %279, %299 : vector<16x64xf32>
    %301 = arith.addf %146, %300 : vector<16x64xf32>
    %302 = vector.extract_strided_slice %0 {offsets = [7, 0], sizes = [1, 64], strides = [1, 1]} : vector<16x256xf32> to vector<1x64xf32>
    %303 = vector.broadcast %302 : vector<1x64xf32> to vector<16x64xf32>
    %304 = arith.addf %301, %303 : vector<16x64xf32>
    %305 = vector.extract_strided_slice %0 {offsets = [8, 0], sizes = [1, 64], strides = [1, 1]} : vector<16x256xf32> to vector<1x64xf32>
    %306 = vector.extract_strided_slice %0 {offsets = [9, 0], sizes = [1, 64], strides = [1, 1]} : vector<16x256xf32> to vector<1x64xf32>
    %cst_94 = arith.constant dense<0.000000e+00> : vector<16xf32>
    %307 = vector.multi_reduction <add>, %304, %cst_94 [1] : vector<16x64xf32> to vector<16xf32>
    %308 = vector.shape_cast %307 : vector<16xf32> to vector<16x1xf32>
    %cst_95 = arith.constant 6.400000e+01 : f32
    %309 = vector.broadcast %cst_95 : f32 to vector<16x1xf32>
    %310 = arith.divf %308, %309 : vector<16x1xf32>
    %311 = vector.broadcast %310 : vector<16x1xf32> to vector<16x64xf32>
    %312 = arith.subf %304, %311 : vector<16x64xf32>
    %313 = arith.mulf %312, %312 : vector<16x64xf32>
    %cst_96 = arith.constant dense<0.000000e+00> : vector<16xf32>
    %314 = vector.multi_reduction <add>, %313, %cst_96 [1] : vector<16x64xf32> to vector<16xf32>
    %315 = vector.shape_cast %314 : vector<16xf32> to vector<16x1xf32>
    %cst_97 = arith.constant 6.400000e+01 : f32
    %316 = vector.broadcast %cst_97 : f32 to vector<16x1xf32>
    %317 = arith.divf %315, %316 : vector<16x1xf32>
    %318 = vector.broadcast %310 : vector<16x1xf32> to vector<16x64xf32>
    %319 = arith.subf %304, %318 : vector<16x64xf32>
    %cst_98 = arith.constant 9.99999974E-6 : f32
    %320 = vector.broadcast %cst_98 : f32 to vector<16x1xf32>
    %321 = arith.addf %317, %320 : vector<16x1xf32>
    %322 = math.rsqrt %321 : vector<16x1xf32>
    %323 = vector.broadcast %322 : vector<16x1xf32> to vector<16x64xf32>
    %324 = arith.mulf %319, %323 : vector<16x64xf32>
    %325 = vector.broadcast %305 : vector<1x64xf32> to vector<16x64xf32>
    %326 = arith.mulf %324, %325 : vector<16x64xf32>
    %327 = vector.broadcast %306 : vector<1x64xf32> to vector<16x64xf32>
    %328 = arith.addf %326, %327 : vector<16x64xf32>
    %c0_99 = arith.constant 0 : index
    %c0_100 = arith.constant 0 : index
    %329 = vector.load %arg10[%c0_99, %c0_100] : memref<64x256xf32, #tpu.memory_space<vmem>>, vector<64x256xf32>
    %cst_101 = arith.constant dense<0.000000e+00> : vector<16x256xf32>
    %330 = tpu.matmul %328, %329, %cst_101 {dimension_numbers = #tpu.dot_dimension_numbers<[1], [0], [0], [1], [0, 0, 1, 1], [], []>} : vector<16x64xf32>, vector<64x256xf32>, vector<16x256xf32> -> vector<16x256xf32>
    %331 = vector.extract_strided_slice %0 {offsets = [10, 0], sizes = [1, 256], strides = [1, 1]} : vector<16x256xf32> to vector<1x256xf32>
    %332 = vector.broadcast %331 : vector<1x256xf32> to vector<16x256xf32>
    %333 = arith.addf %330, %332 : vector<16x256xf32>
    %334 = arith.mulf %333, %333 : vector<16x256xf32>
    %335 = arith.mulf %333, %334 : vector<16x256xf32>
    %cst_102 = arith.constant 4.471500e-02 : f32
    %336 = vector.broadcast %cst_102 : f32 to vector<16x256xf32>
    %337 = arith.mulf %336, %335 : vector<16x256xf32>
    %338 = arith.addf %333, %337 : vector<16x256xf32>
    %cst_103 = arith.constant 0.797884583 : f32
    %339 = vector.broadcast %cst_103 : f32 to vector<16x256xf32>
    %340 = arith.mulf %339, %338 : vector<16x256xf32>
    %341 = math.tanh %340 : vector<16x256xf32>
    %cst_104 = arith.constant 1.000000e+00 : f32
    %342 = vector.broadcast %cst_104 : f32 to vector<16x256xf32>
    %343 = arith.addf %342, %341 : vector<16x256xf32>
    %cst_105 = arith.constant 5.000000e-01 : f32
    %344 = vector.broadcast %cst_105 : f32 to vector<16x256xf32>
    %345 = arith.mulf %344, %343 : vector<16x256xf32>
    %346 = arith.mulf %333, %345 : vector<16x256xf32>
    %c0_106 = arith.constant 0 : index
    %c0_107 = arith.constant 0 : index
    %347 = vector.load %arg11[%c0_106, %c0_107] : memref<256x64xf32, #tpu.memory_space<vmem>>, vector<256x64xf32>
    %cst_108 = arith.constant dense<0.000000e+00> : vector<16x64xf32>
    %348 = tpu.matmul %346, %347, %cst_108 {dimension_numbers = #tpu.dot_dimension_numbers<[1], [0], [0], [1], [0, 0, 1, 1], [], []>} : vector<16x256xf32>, vector<256x64xf32>, vector<16x64xf32> -> vector<16x64xf32>
    %349 = vector.extract_strided_slice %0 {offsets = [11, 0], sizes = [1, 64], strides = [1, 1]} : vector<16x256xf32> to vector<1x64xf32>
    %350 = vector.broadcast %349 : vector<1x64xf32> to vector<16x64xf32>
    %351 = arith.addf %348, %350 : vector<16x64xf32>
    %352 = arith.addf %304, %351 : vector<16x64xf32>
    %353 = vector.extract_strided_slice %352 {offsets = [0, 0], sizes = [16, 32], strides = [1, 1]} : vector<16x64xf32> to vector<16x32xf32>
    %c0_109 = arith.constant 0 : index
    %c0_110 = arith.constant 0 : index
    %354 = vector.load %arg12[%c0_109, %c0_110] : memref<256x16xf32, #tpu.memory_space<vmem>>, vector<256x16xf32>
    %355 = vector.extract_strided_slice %353 {offsets = [0, 0], sizes = [2, 32], strides = [1, 1]} : vector<16x32xf32> to vector<2x32xf32>
    %356 = vector.extract_strided_slice %354 {offsets = [0, 0], sizes = [32, 16], strides = [1, 1]} : vector<256x16xf32> to vector<32x16xf32>
    %cst_111 = arith.constant dense<0.000000e+00> : vector<2x16xf32>
    %357 = tpu.matmul %355, %356, %cst_111 {dimension_numbers = #tpu.dot_dimension_numbers<[1], [0], [0], [1], [0, 0, 1, 1], [], []>} : vector<2x32xf32>, vector<32x16xf32>, vector<2x16xf32> -> vector<2x16xf32>
    %358 = vector.extract_strided_slice %353 {offsets = [2, 0], sizes = [2, 32], strides = [1, 1]} : vector<16x32xf32> to vector<2x32xf32>
    %359 = vector.extract_strided_slice %354 {offsets = [32, 0], sizes = [32, 16], strides = [1, 1]} : vector<256x16xf32> to vector<32x16xf32>
    %cst_112 = arith.constant dense<0.000000e+00> : vector<2x16xf32>
    %360 = tpu.matmul %358, %359, %cst_112 {dimension_numbers = #tpu.dot_dimension_numbers<[1], [0], [0], [1], [0, 0, 1, 1], [], []>} : vector<2x32xf32>, vector<32x16xf32>, vector<2x16xf32> -> vector<2x16xf32>
    %361 = arith.addf %357, %360 : vector<2x16xf32>
    %362 = vector.extract_strided_slice %353 {offsets = [4, 0], sizes = [2, 32], strides = [1, 1]} : vector<16x32xf32> to vector<2x32xf32>
    %363 = vector.extract_strided_slice %354 {offsets = [64, 0], sizes = [32, 16], strides = [1, 1]} : vector<256x16xf32> to vector<32x16xf32>
    %cst_113 = arith.constant dense<0.000000e+00> : vector<2x16xf32>
    %364 = tpu.matmul %362, %363, %cst_113 {dimension_numbers = #tpu.dot_dimension_numbers<[1], [0], [0], [1], [0, 0, 1, 1], [], []>} : vector<2x32xf32>, vector<32x16xf32>, vector<2x16xf32> -> vector<2x16xf32>
    %365 = arith.addf %361, %364 : vector<2x16xf32>
    %366 = vector.extract_strided_slice %353 {offsets = [6, 0], sizes = [2, 32], strides = [1, 1]} : vector<16x32xf32> to vector<2x32xf32>
    %367 = vector.extract_strided_slice %354 {offsets = [96, 0], sizes = [32, 16], strides = [1, 1]} : vector<256x16xf32> to vector<32x16xf32>
    %cst_114 = arith.constant dense<0.000000e+00> : vector<2x16xf32>
    %368 = tpu.matmul %366, %367, %cst_114 {dimension_numbers = #tpu.dot_dimension_numbers<[1], [0], [0], [1], [0, 0, 1, 1], [], []>} : vector<2x32xf32>, vector<32x16xf32>, vector<2x16xf32> -> vector<2x16xf32>
    %369 = arith.addf %365, %368 : vector<2x16xf32>
    %370 = vector.extract_strided_slice %353 {offsets = [8, 0], sizes = [2, 32], strides = [1, 1]} : vector<16x32xf32> to vector<2x32xf32>
    %371 = vector.extract_strided_slice %354 {offsets = [128, 0], sizes = [32, 16], strides = [1, 1]} : vector<256x16xf32> to vector<32x16xf32>
    %cst_115 = arith.constant dense<0.000000e+00> : vector<2x16xf32>
    %372 = tpu.matmul %370, %371, %cst_115 {dimension_numbers = #tpu.dot_dimension_numbers<[1], [0], [0], [1], [0, 0, 1, 1], [], []>} : vector<2x32xf32>, vector<32x16xf32>, vector<2x16xf32> -> vector<2x16xf32>
    %373 = arith.addf %369, %372 : vector<2x16xf32>
    %374 = vector.extract_strided_slice %353 {offsets = [10, 0], sizes = [2, 32], strides = [1, 1]} : vector<16x32xf32> to vector<2x32xf32>
    %375 = vector.extract_strided_slice %354 {offsets = [160, 0], sizes = [32, 16], strides = [1, 1]} : vector<256x16xf32> to vector<32x16xf32>
    %cst_116 = arith.constant dense<0.000000e+00> : vector<2x16xf32>
    %376 = tpu.matmul %374, %375, %cst_116 {dimension_numbers = #tpu.dot_dimension_numbers<[1], [0], [0], [1], [0, 0, 1, 1], [], []>} : vector<2x32xf32>, vector<32x16xf32>, vector<2x16xf32> -> vector<2x16xf32>
    %377 = arith.addf %373, %376 : vector<2x16xf32>
    %378 = vector.extract_strided_slice %353 {offsets = [12, 0], sizes = [2, 32], strides = [1, 1]} : vector<16x32xf32> to vector<2x32xf32>
    %379 = vector.extract_strided_slice %354 {offsets = [192, 0], sizes = [32, 16], strides = [1, 1]} : vector<256x16xf32> to vector<32x16xf32>
    %cst_117 = arith.constant dense<0.000000e+00> : vector<2x16xf32>
    %380 = tpu.matmul %378, %379, %cst_117 {dimension_numbers = #tpu.dot_dimension_numbers<[1], [0], [0], [1], [0, 0, 1, 1], [], []>} : vector<2x32xf32>, vector<32x16xf32>, vector<2x16xf32> -> vector<2x16xf32>
    %381 = arith.addf %377, %380 : vector<2x16xf32>
    %382 = vector.extract_strided_slice %353 {offsets = [14, 0], sizes = [2, 32], strides = [1, 1]} : vector<16x32xf32> to vector<2x32xf32>
    %383 = vector.extract_strided_slice %354 {offsets = [224, 0], sizes = [32, 16], strides = [1, 1]} : vector<256x16xf32> to vector<32x16xf32>
    %cst_118 = arith.constant dense<0.000000e+00> : vector<2x16xf32>
    %384 = tpu.matmul %382, %383, %cst_118 {dimension_numbers = #tpu.dot_dimension_numbers<[1], [0], [0], [1], [0, 0, 1, 1], [], []>} : vector<2x32xf32>, vector<32x16xf32>, vector<2x16xf32> -> vector<2x16xf32>
    %385 = arith.addf %381, %384 : vector<2x16xf32>
    %386 = vector.extract_strided_slice %0 {offsets = [12, 0], sizes = [1, 16], strides = [1, 1]} : vector<16x256xf32> to vector<1x16xf32>
    %387 = vector.broadcast %386 : vector<1x16xf32> to vector<2x16xf32>
    %388 = arith.addf %385, %387 : vector<2x16xf32>
    %389 = vector.broadcast %16 : vector<2x1xf32> to vector<2x16xf32>
    %390 = arith.mulf %388, %389 : vector<2x16xf32>
    %391 = vector.broadcast %6 : vector<2x1xf32> to vector<2x16xf32>
    %392 = arith.addf %390, %391 : vector<2x16xf32>
    %c0_119 = arith.constant 0 : index
    %c0_120 = arith.constant 0 : index
    %393 = vector.load %arg13[%c0_119, %c0_120] : memref<2x16xf32, #tpu.memory_space<vmem>>, vector<2x16xf32>
    tpu.vector_store %arg13[%c0_119, %c0_120], %392 {strides = array<i32>} : memref<2x16xf32, #tpu.memory_space<vmem>>, vector<2x16xf32>,
    return
  }
}

</mosaic_0001>

<bundles_post_ra>
// kernel: _lambda_.1
= control target key start
LH: loop header
LB: loop body
LE: loop exit
PB: predicated region body
PF: predicated region fallthrough
CT: control target
= control target key end

     0   :  { %18 = vsyncpa [#allocation3], 0  ;;  %s7100_s0 = inlined_call_operand.vmem [shape: f32[2,36], index: 0, kind: input, shape index: {}]   ;;  %s7101_s1 = inlined_call_operand.hbm [shape: f32[16,256], index: 1, kind: input, shape index: {}]   ;;  %s7102_s2 = inlined_call_operand.hbm [shape: f32[64,128], index: 2, kind: input, shape index: {}]   ;;  %s7103_s3 = inlined_call_operand.hbm [shape: f32[128,64], index: 3, kind: input, shape index: {}]   ;;  %s7104_s4 = inlined_call_operand.hbm [shape: f32[24,32], index: 4, kind: input, shape index: {}]   ;;  %s7105_s5 = inlined_call_operand.hbm [shape: f32[32,32], index: 5, kind: input, shape index: {}]   ;;  %s7106_s6 = inlined_call_operand.hbm [shape: f32[64,64], index: 6, kind: input, shape index: {}]   ;;  %s7107_s7 = inlined_call_operand.vmem [shape: f32[32,64], index: 7, kind: input, shape index: {}]   ;;  %s7108_s8 = inlined_call_operand.hbm [shape: f32[64,192], index: 8, kind: input, shape index: {}]   ;;  %s7109_s9 = inlined_call_operand.hbm [shape: f32[64,64], index: 9, kind: input, shape index: {}]   ;;  %s7110_s10 = inlined_call_operand.hbm [shape: f32[64,256], index: 10, kind: input, shape index: {}]   ;;  %s7111_s11 = inlined_call_operand.hbm [shape: f32[256,64], index: 11, kind: input, shape index: {}]   ;;  %s7112_s12 = inlined_call_operand.hbm [shape: f32[256,16], index: 12, kind: input, shape index: {}]   ;;  %s7113_s13 = inlined_call_operand.hbm [shape: f32[2,16], index: 13, kind: output, shape index: {}]  }
   0x1   :  { %19 = vsyncpa [#allocation6], 0 }
   0x2   :  { %20 = vsyncpa [#allocation9], 0 }
   0x3   :  { %21 = vsyncpa [#allocation12], 0 }
   0x4   :  { %22 = vsyncpa [#allocation15], 0 }
   0x5   :  { %23 = vsyncpa [#allocation18], 0 }
   0x6   :  { %24 = vsyncpa [#allocation4], 0  ;;  %s6309_s25 = smov [#allocation5]   ;;  %s6031_s29 = scalar_lea.hbm %s7102_s2, 1024 }
   0x7   :  { %s44_s26 = sshll.u32 %s6309_s25, 4  ;;  %p6032_p0 = scmp.ne.s32.totalorder %s7102_s2, %s6031_s29  ;;  %s45_s26 = int_to_ptr.vmem [resolvable:$true] %s44_s26 }
   0x8   :  { %p6035_p1 = scmp.lt.u32.totalorder %s6031_s29, %s7102_s2 }
   0xa   :  { %p6037_p2 = pnand %p6035_p1, %p6032_p0 }
   0xc   :  { %6040 = shalt.err (!%p6037_p2)
}
   0xd   :  { %s6041_s17 = scalar_lea.vmem %s45_s26, 1024  ;;  %p6046_p4 = scmp.lt.s32.totalorder %s45_s26, %s45_s26 }
   0xe   :  { %p6042_p3 = scmp.ne.s32.totalorder %s45_s26, %s6041_s17  ;;  %p6047_p5 = scmp.lt.s32.totalorder %s6041_s17, %s6041_s17 }
  0x10   :  { %p6048_p6 = por %p6047_p5, %p6046_p4 }
  0x12   :  { %p6049_p7 = pnand %p6048_p6, %p6042_p3 }
  0x14   :  { %6052 = shalt.err (!%p6049_p7)
}
  0x15   :  { %s6310_s18 = smov 128   ;;  %s6311_s19 = smov 8  }
  0x16   :  { %50 = dma.hbm_to_vmem [thread:$0]  %s7102_s2, 1024, %s45_s26, [#allocation6], %s6310_s18, %s6310_s18, %s6311_s19  }
  0x17   :  { %s6312_s22 = smov [#allocation8]   ;;  %s6313_s24 = smov [#allocation11]  }
  0x18   :  { %s68_s23 = sshll.u32 %s6312_s22, 4  ;;  %s92_s25 = sshll.u32 %s6313_s24, 4  ;;  %s69_s23 = int_to_ptr.vmem [resolvable:$true] %s68_s23  ;;  %s93_s25 = int_to_ptr.vmem [resolvable:$true] %s92_s25 }
  0x19   :  { %s6053_s29 = scalar_lea.hbm %s7104_s4, 384 }
  0x1a   :  { %p6054_p8 = scmp.ne.s32.totalorder %s7104_s4, %s6053_s29  ;;  %p6057_p9 = scmp.lt.u32.totalorder %s6053_s29, %s7104_s4 }
  0x1c   :  { %p6059_p10 = pnand %p6057_p9, %p6054_p8 }
  0x1e   :  { %6062 = shalt.err (!%p6059_p10)
}
  0x1f   :  { %s6063_s2 = scalar_lea.vmem %s69_s23, 384  ;;  %p6068_p12 = scmp.lt.s32.totalorder %s69_s23, %s69_s23 }
  0x20   :  { %p6064_p11 = scmp.ne.s32.totalorder %s69_s23, %s6063_s2  ;;  %p6069_p13 = scmp.lt.s32.totalorder %s6063_s2, %s6063_s2 }
  0x22   :  { %p6070_p0 = por %p6069_p13, %p6068_p12 }
  0x24   :  { %p6071_p1 = pnand %p6070_p0, %p6064_p11 }
  0x26   :  { %6074 = shalt.err (!%p6071_p1)
}
  0x27   :  { %74 = dma.hbm_to_vmem [thread:$0]  %s7104_s4, 384, %s69_s23, [#allocation9], %s6310_s18, %s6310_s18, %s6311_s19  }
  0x28   :  { %s6075_s22 = scalar_lea.hbm %s7106_s6, 1024 }
  0x29   :  { %p6076_p2 = scmp.ne.s32.totalorder %s7106_s6, %s6075_s22  ;;  %p6079_p3 = scmp.lt.u32.totalorder %s6075_s22, %s7106_s6 }
  0x2b   :  { %p6081_p4 = pnand %p6079_p3, %p6076_p2 }
  0x2d   :  { %6084 = shalt.err (!%p6081_p4)
}
  0x2e   :  { %s6085_s30 = scalar_lea.vmem %s93_s25, 1024  ;;  %p6090_p6 = scmp.lt.s32.totalorder %s93_s25, %s93_s25 }
  0x2f   :  { %p6086_p5 = scmp.ne.s32.totalorder %s93_s25, %s6085_s30  ;;  %p6091_p7 = scmp.lt.s32.totalorder %s6085_s30, %s6085_s30 }
  0x31   :  { %p6092_p8 = por %p6091_p7, %p6090_p6 }
  0x33   :  { %p6093_p9 = pnand %p6092_p8, %p6086_p5 }
  0x35   :  { %6096 = shalt.err (!%p6093_p9)
}
  0x36   :  { %98 = dma.hbm_to_vmem [thread:$0]  %s7106_s6, 1024, %s93_s25, [#allocation12], %s6310_s18, %s6310_s18, %s6311_s19  }
  0x37   :  { %s6314_s14 = smov [#allocation14]   ;;  %s6315_s16 = smov [#allocation17]  }
  0x38   :  { %s118_s15 = sshll.u32 %s6314_s14, 4  ;;  %s142_s2 = sshll.u32 %s6315_s16, 4  ;;  %s119_s15 = int_to_ptr.vmem [resolvable:$true] %s118_s15  ;;  %s143_s2 = int_to_ptr.vmem [resolvable:$true] %s142_s2 }
  0x39   :  { %s6097_s20 = scalar_lea.hbm %s7109_s9, 1024 }
  0x3a   :  { %p6098_p10 = scmp.ne.s32.totalorder %s7109_s9, %s6097_s20  ;;  %p6101_p11 = scmp.lt.u32.totalorder %s6097_s20, %s7109_s9 }
  0x3c   :  { %p6103_p12 = pnand %p6101_p11, %p6098_p10 }
  0x3e   :  { %6106 = shalt.err (!%p6103_p12)
}
  0x3f   :  { %s6107_s6 = scalar_lea.vmem %s119_s15, 1024  ;;  %p6112_p0 = scmp.lt.s32.totalorder %s119_s15, %s119_s15 }
  0x40   :  { %p6108_p13 = scmp.ne.s32.totalorder %s119_s15, %s6107_s6  ;;  %p6113_p1 = scmp.lt.s32.totalorder %s6107_s6, %s6107_s6 }
  0x42   :  { %p6114_p2 = por %p6113_p1, %p6112_p0 }
  0x44   :  { %p6115_p3 = pnand %p6114_p2, %p6108_p13 }
  0x46   :  { %6118 = shalt.err (!%p6115_p3)
}
  0x47   :  { %124 = dma.hbm_to_vmem [thread:$0]  %s7109_s9, 1024, %s119_s15, [#allocation15], %s6310_s18, %s6310_s18, %s6311_s19  }
  0x48   :  { %s6119_s4 = scalar_lea.hbm %s7111_s11, 4096 }
  0x49   :  { %p6120_p4 = scmp.ne.s32.totalorder %s7111_s11, %s6119_s4  ;;  %p6123_p5 = scmp.lt.u32.totalorder %s6119_s4, %s7111_s11 }
  0x4b   :  { %p6125_p6 = pnand %p6123_p5, %p6120_p4 }
  0x4d   :  { %6128 = shalt.err (!%p6125_p6)
}
  0x4e   :  { %s6129_s17 = scalar_lea.vmem %s143_s2, 4096  ;;  %p6134_p8 = scmp.lt.s32.totalorder %s143_s2, %s143_s2 }
  0x4f   :  { %p6130_p7 = scmp.ne.s32.totalorder %s143_s2, %s6129_s17  ;;  %p6135_p9 = scmp.lt.s32.totalorder %s6129_s17, %s6129_s17 }
  0x51   :  { %p6136_p10 = por %p6135_p9, %p6134_p8 }
  0x53   :  { %p6137_p11 = pnand %p6136_p10, %p6130_p7 }
  0x55   :  { %6140 = shalt.err (!%p6137_p11)
}
  0x56   :  { %148 = dma.hbm_to_vmem [thread:$0]  %s7111_s11, 4096, %s143_s2, [#allocation18], %s6310_s18, %s6310_s18, %s6311_s19  }
  0x57   :  { %s6316_s20 = smov [#allocation2]   ;;  %s6141_s27 = scalar_lea.hbm %s7101_s1, 512 }
  0x58   :  { %s32_s21 = sshll.u32 %s6316_s20, 4  ;;  %p6142_p12 = scmp.ne.s32.totalorder %s7101_s1, %s6141_s27  ;;  %s33_s21 = int_to_ptr.vmem [resolvable:$true] %s32_s21 }
  0x59   :  { %p6145_p13 = scmp.lt.u32.totalorder %s6141_s27, %s7101_s1 }
  0x5b   :  { %p6147_p0 = pnand %p6145_p13, %p6142_p12 }
  0x5d   :  { %6150 = shalt.err (!%p6147_p0)
}
  0x5e   :  { %s6151_s30 = scalar_lea.vmem %s33_s21, 512  ;;  %p6156_p2 = scmp.lt.s32.totalorder %s33_s21, %s33_s21 }
  0x5f   :  { %p6152_p1 = scmp.ne.s32.totalorder %s33_s21, %s6151_s30  ;;  %p6157_p3 = scmp.lt.s32.totalorder %s6151_s30, %s6151_s30 }
  0x61   :  { %p6158_p4 = por %p6157_p3, %p6156_p2 }
  0x63   :  { %p6159_p5 = pnand %p6158_p4, %p6152_p1 }
  0x65   :  { %6162 = shalt.err (!%p6159_p5)
}
  0x66   :  { %s6317_s11 = smov 256   ;;  %s6318_s2 = smov 16  }
  0x67   :  { %38 = dma.hbm_to_vmem [thread:$0]  %s7101_s1, 512, %s33_s21, [#allocation3], %s6317_s11, %s6317_s11, %s6318_s2  }
  0x68   :  { %s6319_s14 = smov [#allocation7]   ;;  %s6320_s26 = smov [#allocation10]  }
  0x69   :  { %s56_s16 = sshll.u32 %s6319_s14, 4  ;;  %s80_s17 = sshll.u32 %s6320_s26, 4  ;;  %s57_s16 = int_to_ptr.vmem [resolvable:$true] %s56_s16  ;;  %s6503_s17 = int_to_ptr.vmem [resolvable:$true] %s80_s17 }
  0x6a   :  { %s6163_s20 = scalar_lea.hbm %s7103_s3, 2048 }
  0x6b   :  { %p6164_p6 = scmp.ne.s32.totalorder %s7103_s3, %s6163_s20  ;;  %p6167_p7 = scmp.lt.u32.totalorder %s6163_s20, %s7103_s3 }
  0x6d   :  { %p6169_p8 = pnand %p6167_p7, %p6164_p6 }
  0x6f   :  { %6172 = shalt.err (!%p6169_p8)
}
  0x70   :  { %s6173_s1 = scalar_lea.vmem %s57_s16, 2048  ;;  %p6178_p10 = scmp.lt.s32.totalorder %s57_s16, %s57_s16 }
  0x71   :  { %p6174_p9 = scmp.ne.s32.totalorder %s57_s16, %s6173_s1  ;;  %p6179_p11 = scmp.lt.s32.totalorder %s6173_s1, %s6173_s1 }
  0x73   :  { %p6180_p12 = por %p6179_p11, %p6178_p10 }
  0x75   :  { %p6181_p13 = pnand %p6180_p12, %p6174_p9 }
  0x77   :  { %6184 = shalt.err (!%p6181_p13)
}
  0x78   :  { %62 = dma.hbm_to_vmem [thread:$0]  %s7103_s3, 2048, %s57_s16, [#allocation6], %s6310_s18, %s6310_s18, %s6311_s19  }
  0x79   :  { %s6185_s30 = scalar_lea.hbm %s7105_s5, 512 }
  0x7a   :  { %p6186_p0 = scmp.ne.s32.totalorder %s7105_s5, %s6185_s30  ;;  %p6189_p1 = scmp.lt.u32.totalorder %s6185_s30, %s7105_s5 }
  0x7c   :  { %p6191_p2 = pnand %p6189_p1, %p6186_p0 }
  0x7e   :  { %6194 = shalt.err (!%p6191_p2)
}
  0x7f   :  { %s6195_s9 = scalar_lea.vmem %s6503_s17, 512  ;;  %p6200_p4 = scmp.lt.s32.totalorder %s6503_s17, %s6503_s17 }
  0x80   :  { %p6196_p3 = scmp.ne.s32.totalorder %s6503_s17, %s6195_s9  ;;  %p6201_p5 = scmp.lt.s32.totalorder %s6195_s9, %s6195_s9 }
  0x82   :  { %p6202_p6 = por %p6201_p5, %p6200_p4 }
  0x84   :  { %p6203_p7 = pnand %p6202_p6, %p6196_p3 }
  0x86   :  { %6206 = shalt.err (!%p6203_p7)
}
  0x87   :  { %86 = dma.hbm_to_vmem [thread:$0]  %s7105_s5, 512, %s6503_s17, [#allocation9], %s6310_s18, %s6310_s18, %s6311_s19  }
  0x88   :  { %s6321_s15 = smov [#allocation13]   ;;  %s6322_s22 = smov [#allocation16]  }
  0x89   :  { %s106_s20 = sshll.u32 %s6321_s15, 4  ;;  %s130_s24 = sshll.u32 %s6322_s22, 4  ;;  %s107_s20 = int_to_ptr.vmem [resolvable:$true] %s106_s20  ;;  %s6540_s24 = int_to_ptr.vmem [resolvable:$true] %s130_s24 }
  0x8a   :  { %s6207_s1 = scalar_lea.hbm %s7108_s8, 2048 }
  0x8b   :  { %p6208_p8 = scmp.ne.s32.totalorder %s7108_s8, %s6207_s1  ;;  %p6211_p9 = scmp.lt.u32.totalorder %s6207_s1, %s7108_s8 }
  0x8d   :  { %p6213_p10 = pnand %p6211_p9, %p6208_p8 }
  0x8f   :  { %6216 = shalt.err (!%p6213_p10)
}
  0x90   :  { %s6217_s5 = scalar_lea.vmem %s107_s20, 2048  ;;  %p6222_p12 = scmp.lt.s32.totalorder %s107_s20, %s107_s20 }
  0x91   :  { %p6218_p11 = scmp.ne.s32.totalorder %s107_s20, %s6217_s5  ;;  %p6223_p13 = scmp.lt.s32.totalorder %s6217_s5, %s6217_s5 }
  0x93   :  { %p6224_p0 = por %p6223_p13, %p6222_p12 }
  0x95   :  { %p6225_p1 = pnand %p6224_p0, %p6218_p11 }
  0x97   :  { %6228 = shalt.err (!%p6225_p1)
}
  0x98   :  { %112 = dma.hbm_to_vmem [thread:$0]  %s7108_s8, 2048, %s107_s20, [#allocation12], %s6317_s11, %s6317_s11, %s6318_s2  }
  0x99   :  { %s6229_s14 = scalar_lea.hbm %s7110_s10, 2048 }
  0x9a   :  { %p6230_p2 = scmp.ne.s32.totalorder %s7110_s10, %s6229_s14  ;;  %p6233_p3 = scmp.lt.u32.totalorder %s6229_s14, %s7110_s10 }
  0x9c   :  { %p6235_p4 = pnand %p6233_p3, %p6230_p2 }
  0x9e   :  { %6238 = shalt.err (!%p6235_p4)
}
  0x9f   :  { %s6239_s15 = scalar_lea.vmem %s6540_s24, 2048  ;;  %p6244_p6 = scmp.lt.s32.totalorder %s6540_s24, %s6540_s24 }
  0xa0   :  { %p6240_p5 = scmp.ne.s32.totalorder %s6540_s24, %s6239_s15  ;;  %p6245_p7 = scmp.lt.s32.totalorder %s6239_s15, %s6239_s15 }
  0xa2   :  { %p6246_p8 = por %p6245_p7, %p6244_p6 }
  0xa4   :  { %p6247_p9 = pnand %p6246_p8, %p6240_p5 }
  0xa6   :  { %6250 = shalt.err (!%p6247_p9)
}
  0xa7   :  { %136 = dma.hbm_to_vmem [thread:$0]  %s7110_s10, 2048, %s6540_s24, [#allocation15], %s6317_s11, %s6317_s11, %s6318_s2  }
  0xa8   :  { %s6323_s22 = smov [#allocation19]   ;;  %s6251_s21 = scalar_lea.hbm %s7112_s12, 4096 }
  0xa9   :  { %s154_s27 = sshll.u32 %s6323_s22, 4  ;;  %p6252_p10 = scmp.ne.s32.totalorder %s7112_s12, %s6251_s21  ;;  %s155_s27 = int_to_ptr.vmem [resolvable:$true] %s154_s27 }
  0xaa   :  { %p6255_p11 = scmp.lt.u32.totalorder %s6251_s21, %s7112_s12 }
  0xac   :  { %p6257_p12 = pnand %p6255_p11, %p6252_p10 }
  0xae   :  { %6260 = shalt.err (!%p6257_p12)
}
  0xaf   :  { %s6261_s17 = scalar_lea.vmem %s155_s27, 4096  ;;  %p6266_p0 = scmp.lt.s32.totalorder %s155_s27, %s155_s27 }
  0xb0   :  { %p6262_p13 = scmp.ne.s32.totalorder %s155_s27, %s6261_s17  ;;  %p6267_p1 = scmp.lt.s32.totalorder %s6261_s17, %s6261_s17 }
  0xb2   :  { %p6268_p2 = por %p6267_p1, %p6266_p0 }
  0xb4   :  { %p6269_p3 = pnand %p6268_p2, %p6262_p13 }
  0xb6   :  { %6272 = shalt.err (!%p6269_p3)
}
  0xb7   :  { %160 = dma.hbm_to_vmem [thread:$0]  %s7112_s12, 4096, %s155_s27, [#allocation18], %s6310_s18, %s6310_s18, %s6311_s19  }
  0xb8   :  { %6295 = dma.done.wait [#allocation3], 512  }
  0xb9   :  { %6296 = vsyncadd [#allocation3], 4294966784 }
  0xba   :  { %6297 = dma.done.wait [#allocation6], 3072  }
  0xbb   :  { %6298 = vsyncadd [#allocation6], 4294964224 }
  0xbc   :  { %6299 = dma.done.wait [#allocation9], 896  }
  0xbd   :  { %6300 = vsyncadd [#allocation9], 4294966400 }
  0xbe   :  { %6301 = dma.done.wait [#allocation12], 3072  }
  0xbf   :  { %6302 = vsyncadd [#allocation12], 4294964224 }
  0xc0   :  { %6303 = dma.done.wait [#allocation15], 3072  }
  0xc1   :  { %6304 = vsyncadd [#allocation15], 4294964224 }
  0xc2   :  { %6305 = dma.done.wait [#allocation18], 8192  }
  0xc3   :  { %6306 = vsyncadd [#allocation18], 4294959104  ;;  %vm199_vm0 = vcmask 254976   ;;  %v198_v0 = vld [vmem:[%s7100_s0] sm:$0x3]  ;;  %v230_v8 = vld [vmem:[#allocation7 + $0x8] sm:$0xff]  ;;  %v245_v54 = vlaneseq }
  0xc4   :  { %v200_v1 = vsel %vm199_vm0, %v198_v0, 0.0  ;;  %v229_v7 = vld [vmem:[#allocation7] sm:$0xff]  ;;  %v231_v10 = vld [vmem:[#allocation7 + $0x10] sm:$0xff]  ;;  %v232_v11 = vld [vmem:[#allocation7 + $0x18] sm:$0xff]  ;;  %s6324_s0 = smov 112   ;;  %s6325_s12 = smov 124  }
  0xc5   :  { %201 = vadd.xlane.f32.xlu0 %v200_v1  ;;  %v5337_v9 = vpack.c.bf16 %v230_v8, %v229_v7  ;;  %v5341_v12 = vpack.c.bf16 %v232_v11, %v231_v10  ;;  %v233_v13 = vld [vmem:[#allocation7 + $0x20] sm:$0xff]  ;;  %v234_v14 = vld [vmem:[#allocation7 + $0x28] sm:$0xff]  ;;  %v235_v16 = vld [vmem:[#allocation7 + $0x30] sm:$0xff]  ;;  %s6326_s18 = smov 120   ;;  %s6327_s19 = smov 108   ;;  %v6610_v55 = vshrl.u32 %v245_v54, 7 }
  0xc6   :  { %v5345_v15 = vpack.c.bf16 %v234_v14, %v233_v13  ;;  %v236_v17 = vld [vmem:[#allocation7 + $0x38] sm:$0xff]  ;;  %v237_v19 = vld [vmem:[#allocation7 + $0x40] sm:$0xff]  ;;  %v238_v20 = vld [vmem:[#allocation7 + $0x48] sm:$0xff]  ;;  %s6328_s4 = smov 116   ;;  %s6329_s23 = smov 104   ;;  %vm411_vm3 = vcmask 1041408  }
  0xc7   :  { %5338 = vmatprep.subr.bf16.mxu0 %v5337_v9  ;;  %v5349_v18 = vpack.c.bf16 %v236_v17, %v235_v16  ;;  %v5353_v21 = vpack.c.bf16 %v238_v20, %v237_v19  ;;  %v239_v22 = vld [vmem:[#allocation7 + $0x50] sm:$0xff]  ;;  %v240_v23 = vld [vmem:[#allocation7 + $0x58] sm:$0xff]  ;;  %v241_v25 = vld [vmem:[#allocation7 + $0x60] sm:$0xff]  ;;  %s6330_s14 = smov 100   ;;  %v247_v56 = vsub.s32 0, %v6610_v55  ;;  %vm413_vm4 = vcmask 1043456  }
  0xc8   :  { %5340 = vmatpush3.bf16.msra.mxu0 %v5337_v9  ;;  %v5357_v24 = vpack.c.bf16 %v240_v23, %v239_v22  ;;  %v242_v26 = vld [vmem:[#allocation7 + $0x68] sm:$0xff]  ;;  %v243_v28 = vld [vmem:[#allocation7 + $0x70] sm:$0xff]  ;;  %v244_v29 = vld [vmem:[#allocation7 + $0x78] sm:$0xff]  ;;  %vm415_vm5 = vcmask 1045504   ;;  %vm437_vm6 = vcmask 64512   ;;  %vm687_vm7 = vcmask 261120  }
  0xc9   :  { %5342 = vmatprep.subr.bf16.mxu0 %v5341_v12  ;;  %v5361_v27 = vpack.c.bf16 %v242_v26, %v241_v25  ;;  %v221_v30 = vld [vmem:[#allocation5] sm:$0xff]  ;;  %v5365_v31 = vpack.c.bf16 %v244_v29, %v243_v28  ;;  %v222_v32 = vld [vmem:[#allocation5 + $0x8] sm:$0xff]  ;;  %v223_v33 = vld [vmem:[#allocation5 + $0x10] sm:$0xff]  ;;  %vm781_vm8 = vcmask 523264   ;;  %s6331_s26 = smov 96   ;;  %s6332_s9 = smov 88  }
  0xca   :  { %4927 = vmatprep.mubr.f32.mxu0 %v221_v30  ;;  %v224_v34 = vld [vmem:[#allocation5 + $0x18] sm:$0xff]  ;;  %v225_v35 = vld [vmem:[#allocation5 + $0x20] sm:$0xff]  ;;  %v226_v36 = vld [vmem:[#allocation5 + $0x28] sm:$0xff]  ;;  %s6333_s3 = smov 80   ;;  %s6334_s6 = smov 72   ;;  %vm2420_vm10 = vcmask 130048  }
  0xcb   :  { %v227_v37 = vld [vmem:[#allocation5 + $0x30] sm:$0xff]  ;;  %v228_v38 = vld [vmem:[#allocation5 + $0x38] sm:$0xff]  ;;  %v435_v51 = vld [vmem:[#allocation8 + $0x8] sm:$0xff]  ;;  %s6337_s25 = smov 32   ;;  %s6339_s28 = smov 48   ;;  %vm6341_vm14 = vmmov 0  }
  0xcc   :  { %5344 = vmatpush3.bf16.msra.mxu0 %v5341_v12  ;;  %4939 = vmatprep.subr.mxu1 %v435_v51  ;;  %v434_v52 = vld [vmem:[#allocation8] sm:$0xff]  ;;  %v436_v23 = vld [vmem:[#allocation8 + $0x10] sm:$0xff]  ;;  %v679_v29 = vld [vmem:[#allocation10] sm:$0xff]  ;;  %vm4484_vm15 = vcmask 123904  }
  0xcd   :  { %5346 = vmatprep.subr.bf16.mxu0 %v5345_v15  ;;  %4940 = vmatpush3.msra.mxu1 %v435_v51  ;;  %v6613_v57 = vld [vmem:[#allocation2] sm:$0xff]  ;;  %vm6659_vm9 = vmpackc.low %vm437_vm6, %vm437_vm6 }
  0xce   :  { %4944 = vmatprep.subr.mxu1 %v434_v52  ;;  %v248_v58 = vrot.slane %v6613_v57, %v247_v56  ;;  %v680_v30 = vld [vmem:[#allocation10 + $0x8] sm:$0xff]  ;;  %vm6911_vm11 = vmpackc.low %vm2420_vm10, %vm2420_vm10 }
  0xd0   :  { %5348 = vmatpush3.bf16.msra.mxu0 %v5345_v15 }
  0xd1   :  { %5350 = vmatprep.subr.bf16.mxu0 %v5349_v18 }
  0xd4   :  { %5352 = vmatpush3.bf16.msra.mxu0 %v5349_v18 }
  0xd5   :  { %5354 = vmatprep.subr.bf16.mxu0 %v5353_v21 }
  0xd8   :  { %5356 = vmatpush3.bf16.msra.mxu0 %v5353_v21 }
  0xd9   :  { %5358 = vmatprep.subr.bf16.mxu0 %v5357_v24 }
  0xdc   :  { %5360 = vmatpush3.bf16.msra.mxu0 %v5357_v24 }
  0xdd   :  { %5362 = vmatprep.subr.bf16.mxu0 %v5361_v27 }
  0xe0   :  { %5364 = vmatpush3.bf16.msra.mxu0 %v5361_v27 }
  0xe1   :  { %5366 = vmatprep.subr.bf16.mxu0 %v5365_v31 }
  0xe4   :  { %5368 = vmatpush3.bf16.msra.mxu0 %v5365_v31 }
  0xe7   :  { %4928 = vmatmul.mubr.f32.vlgmr.msra.gmra.mrb[0].mxu0 %v222_v32 }
  0xe8   :  { %4930 = vmatprep.mubr.f32.mxu0 %v223_v33  ;;  %v5369_v33 = vpack.c.bf16 %v680_v30, %v679_v29 }
  0xeb   :  { %4931 = vmatmul.mubr.f32.gmra.mrb[2].mxu0 %v224_v34 }
  0xec   :  { %4933 = vmatprep.mubr.f32.mxu0 %v225_v35 }
  0xef   :  { %4934 = vmatmul.mubr.f32.gmra.mrb[4].mxu0 %v226_v36  ;;  %v681_v36 = vld [vmem:[#allocation10 + $0x10] sm:$0xff] }
  0xf0   :  { %4936 = vmatprep.mubr.f32.mxu0 %v227_v37  ;;  %v682_v37 = vld [vmem:[#allocation10 + $0x18] sm:$0xff] }
  0xf3   :  { %4937 = vmatmul.mubr.f32.gmra.mrb[6].mxu0 %v228_v38  ;;  %v5373_v38 = vpack.c.bf16 %v682_v37, %v681_v36 }
 0x152   :  { %v202_v2 = vpop.xlane.xlu0 %201 }
 0x153   :  { %v6595_v3 = vmul.f32 0.03125, %v202_v2 }
 0x155   :  { %v6598_v4 = vsub.f32 %v198_v0, %v6595_v3 }
 0x157   :  { %v206_v5 = vmul.f32 %v6598_v4, %v6598_v4 }
 0x159   :  { %v207_v6 = vsel %vm199_vm0, %v206_v5, 0.0 }
 0x15a   :  { %208 = vadd.xlane.f32.xlu0 %v207_v6 }
 0x1ba   :  { %v4929_v59 = vpop.f32.mrb[0].mxu0 }
 0x1bb   :  { %v315_v60 = vpop.f32.mrb[1].mxu0  ;;  %v321_v63 = vadd.f32 %v4929_v59, %v248_v58  ;;  %v775_v59 = vld [vmem:[#allocation11 + $0x30] sm:$0xff] }
 0x1bc   :  { %v316_v61 = vadd.f32 %v315_v60, %v248_v58  ;;  %v776_v60 = vld [vmem:[#allocation11 + $0x38] sm:$0xff] }
 0x1be   :  { %v4932_v0 = vpop.f32.mrb[2].mxu0 }
 0x1bf   :  { %v325_v1 = vpop.f32.mrb[3].mxu0  ;;  %v331_v8 = vadd.f32 %v4932_v0, %v248_v58 }
 0x1c2   :  { %v4935_v5 = vpop.f32.mrb[4].mxu0 }
 0x1c3   :  { %v335_v6 = vpop.f32.mrb[5].mxu0  ;;  %v341_v17 = vadd.f32 %v4935_v5, %v248_v58 }
 0x1c4   :  { %v336_v15 = vadd.f32 %v335_v6, %v248_v58 }
 0x1c6   :  { %v4938_v9 = vpop.f32.mrb[6].mxu0 }
 0x1c7   :  { %v345_v10 = vpop.f32.mrb[7].mxu0  ;;  %v351_v28 = vadd.f32 %v4938_v9, %v248_v58  ;;  %v6653_v9 = vsub.s32 2, %v6610_v55 }
 0x1c8   :  { %v346_v24 = vadd.f32 %v345_v10, %v248_v58 }
 0x1c9   :  { %v780_v10 = vrot.slane %v6613_v57, %v6653_v9 }
 0x1e7   :  { %v209_v39 = vpop.xlane.xlu0 %208 }
 0x1e8   :  { %v210_v40 = vmul.f32 0.03125, %v209_v39 }
 0x1ea   :  { %v211_v41 = vadd.f32 1e-05, %v210_v40  ;;  %v769_v40 = vld [vmem:[#allocation11] sm:$0xff] }
 0x1ec   :  { %5946 = vrsqrt.f32 %v211_v41  ;;  %vm214_vm1 = vcmp.eq.f32.partialorder %v211_v41, inf  ;;  %v217_v44 = vand.u32 2147483648, %v211_v41  ;;  %vm216_vm2 = vcmp.eq.f32.partialorder %v211_v41, 0.0 }
 0x1f6   :  { %v5947_v42 = vpop.eup %5946 }
 0x1f7   :  { %v213_v43 = vmul.f32 %v5947_v42, %v211_v41 }
 0x1f9   :  { %v215_v45 = vsel %vm214_vm1, %v211_v41, %v213_v43  ;;  %v770_v41 = vld [vmem:[#allocation11 + $0x8] sm:$0xff] }
 0x1fa   :  { %v6602_v46 = vsel %vm216_vm2, %v217_v44, %v215_v45  ;;  %v5377_v42 = vpack.c.bf16 %v770_v41, %v769_v40  ;;  %v771_v45 = vld [vmem:[#allocation11 + $0x10] sm:$0xff] }
 0x1fb   :  { %5948 = vrcp.f32 %v6602_v46 }
 0x205   :  { %v5949_v47 = vpop.eup %5948 }
 0x206   :  { %v220_v48 = vmul.f32 %v5949_v47, %v6598_v4  ;;  %v326_v4 = vadd.f32 %v325_v1, %v248_v58  ;;  %v772_v47 = vld [vmem:[#allocation11 + $0x18] sm:$0xff] }
 0x207   :  { %v5381_v51 = vpack.c.bf16 %v772_v47, %v771_v45 }
 0x208   :  { %399 = vrot.lane.b32.xlu0 %v220_v48, %s6324_s0  ;;  %v387_v49 = vrot.slane %v220_v48, 6  ;;  %v391_v50 = vrot.slane %v220_v48, 4  ;;  %v395_v53 = vrot.slane %v220_v48, 2 }
 0x20a   :  { %388 = vrot.lane.b32.xlu1 %v387_v49, %s6325_s12 }
 0x20e   :  { %392 = vrot.lane.b32.xlu1 %v391_v50, %s6326_s18 }
 0x212   :  { %402 = vrot.lane.b32.xlu1 %v387_v49, %s6327_s19 }
 0x216   :  { %396 = vrot.lane.b32.xlu1 %v395_v53, %s6328_s4 }
 0x21a   :  { %405 = vrot.lane.b32.xlu1 %v391_v50, %s6329_s23 }
 0x21e   :  { %408 = vrot.lane.b32.xlu1 %v395_v53, %s6330_s14  ;;  %v774_v53 = vld [vmem:[#allocation11 + $0x28] sm:$0xff] }
 0x247   :  { %354 = vxpose.xlu1.b32.start [1/8] (short) (narrow) %v316_v61, 64 }
 0x24b   :  { %355 = vxpose.xlu1.b32.cont [2/8] (short) (narrow) %v321_v63, 64 }
 0x24f   :  { %356 = vxpose.xlu1.b32.cont [3/8] (short) (narrow) %v326_v4, 64  ;;  %v685_v4 = vsub.s32 1, %v6610_v55 }
 0x251   :  { %v686_v5 = vrot.slane %v6613_v57, %v685_v4 }
 0x253   :  { %357 = vxpose.xlu1.b32.cont [4/8] (short) (narrow) %v331_v8, 64 }
 0x257   :  { %358 = vxpose.xlu1.b32.cont [5/8] (short) (narrow) %v336_v15, 64 }
 0x25b   :  { %359 = vxpose.xlu1.b32.cont [6/8] (short) (narrow) %v341_v17, 64 }
 0x25f   :  { %360 = vxpose.xlu1.b32.cont [7/8] (short) (narrow) %v346_v24, 64 }
 0x263   :  { %361 = vxpose.xlu1.b32.end [8/8] (short) (narrow) %v351_v28, 64 }
 0x27a   :  { %v400_v18 = vpop.permute.xlu0 %399 }
 0x27c   :  { %v389_v62 = vpop.permute.xlu1 %388 }
 0x27d   :  { %v412_v11 = vsel %vm411_vm3, %v220_v48, %v389_v62  ;;  %v5389_v62 = vpack.c.bf16 %v776_v60, %v775_v59 }
 0x280   :  { %v393_v2 = vpop.permute.xlu1 %392 }
 0x281   :  { %v414_v12 = vsel %vm413_vm4, %v412_v11, %v393_v2 }
 0x284   :  { %v403_v7 = vpop.permute.xlu1 %402 }
 0x285   :  { %v417_v19 = vsel %vm411_vm3, %v400_v18, %v403_v7 }
 0x288   :  { %v397_v13 = vpop.permute.xlu1 %396 }
 0x289   :  { %v416_v14 = vsel %vm415_vm5, %v414_v12, %v397_v13 }
 0x28a   :  { %4941 = vmatprep.mubr.msk.f32.mxu1 %vm437_vm6, %v416_v14  ;;  %v424_v25 = vrot.slane %v416_v14, 6  ;;  %v428_v32 = vrot.slane %v416_v14, 2 }
 0x28c   :  { %v406_v16 = vpop.permute.xlu1 %405 }
 0x28d   :  { %v418_v20 = vsel %vm413_vm4, %v417_v19, %v406_v16 }
 0x290   :  { %v409_v21 = vpop.permute.xlu1 %408 }
 0x291   :  { %v419_v22 = vsel %vm415_vm5, %v418_v20, %v409_v21 }
 0x292   :  { %v421_v26 = vrot.slane %v419_v22, 6  ;;  %4942 = vmatmul.mubr.msk.f32.vlgmr.msra.gmra.mrb[0].mxu1 %vm437_vm6, %v419_v22  ;;  %v429_v31 = vrot.slane %v419_v22, 2 }
 0x293   :  { %4945 = vmatpush3.msra.mxu1 %v434_v52  ;;  %v773_v52 = vld [vmem:[#allocation11 + $0x20] sm:$0xff] }
 0x294   :  { %v427_v27 = vsel %vm411_vm3, %v421_v26, %v424_v25  ;;  %4949 = vmatprep.subr.mxu1 %v436_v23  ;;  %v425_v34 = vsel %vm411_vm3, %v424_v25, %v421_v26  ;;  %v430_v35 = vsel %vm415_vm5, %v428_v32, %v429_v31  ;;  %v433_v39 = vsel %vm415_vm5, %v429_v31, %v428_v32 }
 0x295   :  { %4946 = vmatprep.mubr.msk.f32.mxu1 %vm437_vm6, %v427_v27  ;;  %v5385_v58 = vpack.c.bf16 %v774_v53, %v773_v52 }
 0x29a   :  { %4947 = vmatmul.mubr.msk.f32.vlgmr.msra.gmra.mrb[0].mxu1 %vm437_vm6, %v425_v34 }
 0x29b   :  { %4950 = vmatpush3.msra.mxu1 %v436_v23  ;;  %4951 = vmatprep.mubr.msk.f32.mxu1 %vm437_vm6, %v430_v35 }
 0x29c   :  { %5370 = vmatprep.subr.bf16.mxu1 %v5369_v33 }
 0x2a2   :  { %4952 = vmatmul.mubr.msk.f32.vlgmr.msra.gmra.mrb[0].mxu1 %vm437_vm6, %v433_v39 }
 0x2a3   :  { %5372 = vmatpush3.bf16.msra.mxu1 %v5369_v33 }
 0x2a4   :  { %5374 = vmatprep.subr.bf16.mxu1 %v5373_v38 }
 0x2a7   :  { %5376 = vmatpush3.bf16.msra.mxu1 %v5373_v38 }
 0x2a8   :  { %5378 = vmatprep.subr.bf16.mxu1 %v5377_v42 }
 0x2c7   :  { %v370_v43 = vpop.trf.xlu1 }
 0x2cb   :  { %v371_v44 = vpop.trf.xlu1 }
 0x2cf   :  { %v372_v49 = vpop.trf.xlu1 }
 0x2d3   :  { %v373_v61 = vpop.trf.xlu1 }
 0x2d7   :  { %v374_v63 = vpop.trf.xlu1 }
 0x2db   :  { %v375_v0 = vpop.trf.xlu1 }
 0x2df   :  { %v376_v1 = vpop.trf.xlu1 }
 0x2e3   :  { %v377_v2 = vpop.trf.xlu1 }
 0x375   :  { %v4953_v48 = vpop.f32.mrb[0].mxu1 }
 0x376   :  { %v668_v50 = vpop.f32.mrb[1].mxu1 }
 0x377   :  { %4962 = vmatprep.mubr.msk.f32.mxu1 %vm687_vm7, %v668_v50 }
 0x378   :  { %4963 = vmatmul.mubr.msk.f32.vlgmr.msra.gmra.mrb[2].mxu1 %vm687_vm7, %v4953_v48 }
 0x379   :  { %5380 = vmatpush3.bf16.msra.mxu1 %v5377_v42  ;;  %4981 = vmatprep.mubr.msk.f32.mxu1 %vm781_vm8, %v370_v43 }
 0x37a   :  { %5382 = vmatprep.subr.bf16.mxu1 %v5381_v51 }
 0x37d   :  { %5384 = vmatpush3.bf16.msra.mxu1 %v5381_v51 }
 0x37e   :  { %5386 = vmatprep.subr.bf16.mxu1 %v5385_v58 }
 0x381   :  { %5388 = vmatpush3.bf16.msra.mxu1 %v5385_v58 }
 0x382   :  { %5390 = vmatprep.subr.bf16.mxu1 %v5389_v62 }
 0x385   :  { %5392 = vmatpush3.bf16.msra.mxu1 %v5389_v62 }
 0x388   :  { %4982 = vmatmul.mubr.msk.f32.vlgmr.msra.gmra.mrb[4].mxu1 %vm781_vm8, %v371_v44 }
 0x389   :  { %4984 = vmatprep.mubr.msk.f32.mxu1 %vm781_vm8, %v372_v49 }
 0x38c   :  { %4985 = vmatmul.mubr.msk.f32.gmra.mrb[6].mxu1 %vm781_vm8, %v373_v61 }
 0x38d   :  { %4987 = vmatprep.mubr.msk.f32.mxu1 %vm781_vm8, %v374_v63 }
 0x390   :  { %4988 = vmatmul.mubr.msk.f32.gmra.mrb[8].mxu1 %vm781_vm8, %v375_v0 }
 0x391   :  { %4990 = vmatprep.mubr.msk.f32.mxu1 %vm781_vm8, %v376_v1 }
 0x394   :  { %4991 = vmatmul.mubr.msk.f32.gmra.mrb[10].mxu1 %vm781_vm8, %v377_v2 }
 0x44b   :  { %v4964_v6 = vpop.f32.mrb[2].mxu1 }
 0x44c   :  { %v760_v7 = vpop.f32.mrb[3].mxu1  ;;  %v6695_v35 = vadd.f32 %v4964_v6, %v686_v5 }
 0x44d   :  { %v6648_v8 = vadd.f32 %v760_v7, %v686_v5 }
 0x44f   :  { %5009 = vmatprep.mubr.msk.f32.mxu0 %vm437_vm6, %v6648_v8 }
 0x45b   :  { %v4983_v11 = vpop.f32.mrb[4].mxu1 }
 0x45c   :  { %v878_v12 = vadd.f32 %v4983_v11, %v780_v10  ;;  %v872_v13 = vpop.f32.mrb[5].mxu1 }
 0x45d   :  { %v873_v14 = vadd.f32 %v872_v13, %v780_v10 }
 0x45f   :  { %v4986_v16 = vpop.f32.mrb[6].mxu1  ;;  %v5393_v17 = vpack.c.bf16 %v878_v12, %v873_v14  ;;  %v6663_v18 = vpack.i.bf16 %v878_v12, %v873_v14 }
 0x460   :  { %v888_v19 = vadd.f32 %v4986_v16, %v780_v10  ;;  %v882_v20 = vpop.f32.mrb[7].mxu1 }
 0x461   :  { %v883_v21 = vadd.f32 %v882_v20, %v780_v10  ;;  %5395 = vmatprep.subr.msk.bf16.mxu0 %vm6659_vm9, %v5393_v17 }
 0x462   :  { %5398 = vmatpush3.bf16.xpose.msk.msra.mxu0 %vm6659_vm9, %v5393_v17 }
 0x463   :  { %v6669_v57 = vpack.i.bf16 %v888_v19, %v883_v21  ;;  %v4989_v22 = vpop.f32.mrb[8].mxu1  ;;  %v5399_v23 = vpack.c.bf16 %v888_v19, %v883_v21 }
 0x464   :  { %v898_v24 = vadd.f32 %v4989_v22, %v780_v10  ;;  %v892_v25 = vpop.f32.mrb[9].mxu1 }
 0x465   :  { %5777 = vrot.lane.b32.xlu1 %v6669_v57, %s6331_s26  ;;  %v893_v26 = vadd.f32 %v892_v25, %v780_v10  ;;  %5401 = vmatprep.subr.msk.bf16.mxu0 %vm6659_vm9, %v5399_v23 }
 0x467   :  { %v6675_v27 = vpack.i.bf16 %v898_v24, %v893_v26  ;;  %v5405_v28 = vpack.c.bf16 %v898_v24, %v893_v26  ;;  %v4992_v29 = vpop.f32.mrb[10].mxu1 }
 0x468   :  { %v908_v30 = vadd.f32 %v4992_v29, %v780_v10  ;;  %v902_v31 = vpop.f32.mrb[11].mxu1 }
 0x469   :  { %5812 = vrot.lane.b32.xlu1 %v6663_v18, %s6324_s0  ;;  %v903_v32 = vadd.f32 %v902_v31, %v780_v10 }
 0x46a   :  { %5404 = vmatpush3.bf16.xpose.msk.msra.mxu0 %vm6659_vm9, %v5399_v23 }
 0x46b   :  { %5407 = vmatprep.subr.msk.bf16.mxu0 %vm6659_vm9, %v5405_v28  ;;  %v5411_v33 = vpack.c.bf16 %v908_v30, %v903_v32  ;;  %v6683_v34 = vpack.i.bf16 %v908_v30, %v903_v32 }
 0x46d   :  { %5822 = vrot.lane.b32.xlu1 %v6675_v27, %s6324_s0 }
 0x471   :  { %1555 = vrot.lane.b32.xlu1 %v6648_v8, %s6324_s0 }
 0x472   :  { %5410 = vmatpush3.bf16.xpose.msk.msra.mxu0 %vm6659_vm9, %v5405_v28 }
 0x473   :  { %5413 = vmatprep.subr.msk.bf16.mxu0 %vm6659_vm9, %v5411_v33 }
 0x47a   :  { %5416 = vmatpush3.bf16.xpose.msk.msra.mxu0 %vm6659_vm9, %v5411_v33 }
 0x481   :  { %5010 = vmatmul.mubr.msk.f32.vlgmr.msra.gmra.mrb[8].mxu0 %vm437_vm6, %v6695_v35 }
 0x4d7   :  { %v5778_v47 = vpop.permute.xlu1 %5777 }
 0x4d8   :  { %v5780_v50 = vunpack.i.h.bf16 %v5778_v47  ;;  %v5779_v52 = vunpack.i.l.bf16 %v5778_v47 }
 0x4da   :  { %v5421_v61 = vpack.c.bf16 %v5780_v50, %v5779_v52 }
 0x554   :  { %v5011_v36 = vpop.f32.mrb[8].mxu0 }
 0x555   :  { %v1011_v37 = vpop.f32.mrb[9].mxu0  ;;  %v1021_v39 = vmul.f32 0.35355338, %v5011_v36 }
 0x556   :  { %v1020_v38 = vmul.f32 0.35355338, %v1011_v37 }
 0x557   :  { %v1025_v41 = vsel %vm781_vm8, %v1021_v39, -inf }
 0x558   :  { %v1022_v40 = vsel %vm781_vm8, %v1020_v38, -inf }
 0x559   :  { %1023 = vmax.xlane.f32.xlu0 %v1022_v40 }
 0x55d   :  { %1026 = vmax.xlane.f32.xlu0 %v1025_v41  ;;  %v5813_v41 = vpop.permute.xlu1 %5812 }
 0x573   :  { %5772 = vrot.lane.b32.xlu0 %v6663_v18, %s6331_s26 }
 0x577   :  { %5782 = vrot.lane.b32.xlu0 %v6675_v27, %s6331_s26 }
 0x57b   :  { %5787 = vrot.lane.b32.xlu0 %v6683_v34, %s6331_s26 }
 0x5e6   :  { %v1024_v42 = vpop.xlane.xlu0 %1023 }
 0x5e7   :  { %v1028_v43 = vsub.f32 %v1020_v38, %v1024_v42 }
 0x5e9   :  { %v1030_v48 = vmul.f32 1.442695, %v1028_v43  ;;  %v5815_v43 = vunpack.i.h.bf16 %v5813_v41 }
 0x5ea   :  { %v1027_v44 = vpop.xlane.xlu0 %1026 }
 0x5eb   :  { %v1029_v45 = vsub.f32 %v1021_v39, %v1027_v44  ;;  %v5814_v44 = vunpack.i.l.bf16 %v5813_v41 }
 0x5ed   :  { %v1032_v49 = vmul.f32 1.442695, %v1029_v45  ;;  %v5473_v45 = vpack.c.bf16 %v5815_v43, %v5814_v44 }
 0x5ee   :  { %v5773_v51 = vpop.permute.xlu0 %5772 }
 0x5ef   :  { %5950 = vpow2.f32 %v1032_v49  ;;  %v5775_v53 = vunpack.i.h.bf16 %v5773_v51  ;;  %v5774_v58 = vunpack.i.l.bf16 %v5773_v51 }
 0x5f0   :  { %5952 = vpow2.f32 %v1030_v48  ;;  %v5823_v48 = vpop.permute.xlu1 %5822 }
 0x5f1   :  { %v5417_v59 = vpack.c.bf16 %v5775_v53, %v5774_v58  ;;  %v5825_v53 = vunpack.i.h.bf16 %v5823_v48  ;;  %v5824_v58 = vunpack.i.l.bf16 %v5823_v48 }
 0x5f2   :  { %v5783_v60 = vpop.permute.xlu0 %5782 }
 0x5f3   :  { %v5785_v62 = vunpack.i.h.bf16 %v5783_v60  ;;  %v5784_v63 = vunpack.i.l.bf16 %v5783_v60  ;;  %5418 = vmatprep.subr.bf16.mxu1 %v5417_v59 }
 0x5f4   :  { %5420 = vmatpush3.bf16.msra.mxu1 %v5417_v59  ;;  %v1556_v51 = vpop.permute.xlu1 %1555  ;;  %v5485_v59 = vpack.c.bf16 %v5825_v53, %v5824_v58 }
 0x5f5   :  { %5422 = vmatprep.subr.bf16.mxu1 %v5421_v61  ;;  %v5425_v1 = vpack.c.bf16 %v5785_v62, %v5784_v63 }
 0x5f6   :  { %v5788_v0 = vpop.permute.xlu0 %5787 }
 0x5f7   :  { %v5790_v2 = vunpack.i.h.bf16 %v5788_v0  ;;  %v5789_v5 = vunpack.i.l.bf16 %v5788_v0 }
 0x5f8   :  { %5424 = vmatpush3.bf16.msra.mxu1 %v5421_v61 }
 0x5f9   :  { %v5951_v6 = vpop.eup %5950  ;;  %5426 = vmatprep.subr.bf16.mxu1 %v5425_v1  ;;  %v5429_v11 = vpack.c.bf16 %v5790_v2, %v5789_v5 }
 0x5fa   :  { %v1037_v7 = vsel %vm781_vm8, %v5951_v6, 0.0  ;;  %v5953_v10 = vpop.eup %5952 }
 0x5fb   :  { %1038 = vadd.xlane.f32.xlu0 %v1037_v7  ;;  %v1034_v12 = vsel %vm781_vm8, %v5953_v10, 0.0 }
 0x5fc   :  { %5428 = vmatpush3.bf16.msra.mxu1 %v5425_v1 }
 0x5fd   :  { %5430 = vmatprep.subr.bf16.mxu1 %v5429_v11 }
 0x5ff   :  { %1035 = vadd.xlane.f32.xlu0 %v1034_v12 }
 0x600   :  { %5432 = vmatpush3.bf16.msra.mxu1 %v5429_v11 }
 0x615   :  { %5792 = vrot.lane.b32.xlu0 %v6663_v18, %s6326_s18 }
 0x619   :  { %5797 = vrot.lane.b32.xlu0 %v6669_v57, %s6326_s18 }
 0x61d   :  { %5802 = vrot.lane.b32.xlu0 %v6675_v27, %s6326_s18 }
 0x621   :  { %5807 = vrot.lane.b32.xlu0 %v6683_v34, %s6326_s18 }
 0x625   :  { %1149 = vrot.lane.b32.xlu0 %v6648_v8, %s6326_s18 }
 0x629   :  { %1151 = vrot.lane.b32.xlu0 %v6695_v35, %s6326_s18 }
 0x62d   :  { %5817 = vrot.lane.b32.xlu0 %v6669_v57, %s6324_s0 }
 0x631   :  { %5827 = vrot.lane.b32.xlu0 %v6683_v34, %s6324_s0 }
 0x635   :  { %1557 = vrot.lane.b32.xlu0 %v6695_v35, %s6324_s0 }
 0x688   :  { %v1039_v13 = vpop.xlane.xlu0 %1038 }
 0x689   :  { %5954 = vrcp.f32 %v1039_v13 }
 0x68c   :  { %v1036_v14 = vpop.xlane.xlu0 %1035 }
 0x68d   :  { %5956 = vrcp.f32 %v1036_v14 }
 0x690   :  { %v5793_v16 = vpop.permute.xlu0 %5792 }
 0x691   :  { %v5795_v17 = vunpack.i.h.bf16 %v5793_v16  ;;  %v5794_v19 = vunpack.i.l.bf16 %v5793_v16 }
 0x693   :  { %v5433_v20 = vpack.c.bf16 %v5795_v17, %v5794_v19  ;;  %v5955_v22 = vpop.eup %5954 }
 0x694   :  { %v5798_v21 = vpop.permute.xlu0 %5797  ;;  %v1043_v29 = vmul.f32 %v5955_v22, %v5951_v6 }
 0x695   :  { %5435 = vmatprep.subr.msk.bf16.mxu1 %vm6659_vm9, %v5433_v20  ;;  %v5800_v24 = vunpack.i.h.bf16 %v5798_v21  ;;  %v5799_v25 = vunpack.i.l.bf16 %v5798_v21 }
 0x697   :  { %v5957_v23 = vpop.eup %5956  ;;  %v5439_v30 = vpack.c.bf16 %v5800_v24, %v5799_v25 }
 0x698   :  { %v5803_v26 = vpop.permute.xlu0 %5802  ;;  %v1042_v28 = vmul.f32 %v5957_v23, %v5953_v10 }
 0x699   :  { %v5805_v32 = vunpack.i.h.bf16 %v5803_v26  ;;  %v5804_v33 = vunpack.i.l.bf16 %v5803_v26 }
 0x69a   :  { %5028 = vmatprep.mubr.msk.f32.mxu1 %vm781_vm8, %v1042_v28 }
 0x69b   :  { %5029 = vmatmul.mubr.msk.f32.vlgmr.msra.gmra.mrb[12].mxu1 %vm781_vm8, %v1043_v29  ;;  %v5445_v37 = vpack.c.bf16 %v5805_v32, %v5804_v33 }
 0x69c   :  { %5438 = vmatpush3.bf16.xpose.msk.msra.mxu1 %vm6659_vm9, %v5433_v20  ;;  %v5808_v31 = vpop.permute.xlu0 %5807 }
 0x69d   :  { %5441 = vmatprep.subr.msk.bf16.mxu1 %vm6659_vm9, %v5439_v30  ;;  %v5810_v38 = vunpack.i.h.bf16 %v5808_v31  ;;  %v5809_v39 = vunpack.i.l.bf16 %v5808_v31 }
 0x69f   :  { %v5451_v40 = vpack.c.bf16 %v5810_v38, %v5809_v39 }
 0x6a0   :  { %v1150_v36 = vpop.permute.xlu0 %1149 }
 0x6a1   :  { %5047 = vmatprep.mubr.msk.f32.mxu1 %vm437_vm6, %v1150_v36 }
 0x6a4   :  { %5444 = vmatpush3.bf16.xpose.msk.msra.mxu1 %vm6659_vm9, %v5439_v30  ;;  %v1152_v42 = vpop.permute.xlu0 %1151 }
 0x6a5   :  { %5447 = vmatprep.subr.msk.bf16.mxu1 %vm6659_vm9, %v5445_v37 }
 0x6a8   :  { %v5818_v47 = vpop.permute.xlu0 %5817 }
 0x6a9   :  { %v5820_v49 = vunpack.i.h.bf16 %v5818_v47  ;;  %v5819_v50 = vunpack.i.l.bf16 %v5818_v47 }
 0x6ab   :  { %v5479_v52 = vpack.c.bf16 %v5820_v49, %v5819_v50 }
 0x6ac   :  { %5450 = vmatpush3.bf16.xpose.msk.msra.mxu1 %vm6659_vm9, %v5445_v37  ;;  %v5828_v60 = vpop.permute.xlu0 %5827 }
 0x6ad   :  { %5453 = vmatprep.subr.msk.bf16.mxu1 %vm6659_vm9, %v5451_v40  ;;  %v5830_v61 = vunpack.i.h.bf16 %v5828_v60  ;;  %v5829_v62 = vunpack.i.l.bf16 %v5828_v60 }
 0x6af   :  { %v5491_v63 = vpack.c.bf16 %v5830_v61, %v5829_v62 }
 0x6b0   :  { %v1558_v0 = vpop.permute.xlu0 %1557 }
 0x6b4   :  { %5456 = vmatpush3.bf16.xpose.msk.msra.mxu1 %vm6659_vm9, %v5451_v40 }
 0x6b5   :  { %5475 = vmatprep.subr.msk.bf16.mxu1 %vm6659_vm9, %v5473_v45 }
 0x6bb   :  { %5048 = vmatmul.mubr.msk.f32.vlgmr.msra.gmra.mrb[14].mxu1 %vm437_vm6, %v1152_v42 }
 0x6bc   :  { %5478 = vmatpush3.bf16.xpose.msk.msra.mxu1 %vm6659_vm9, %v5473_v45  ;;  %5095 = vmatprep.mubr.msk.f32.mxu1 %vm437_vm6, %v1556_v51 }
 0x6bd   :  { %5481 = vmatprep.subr.msk.bf16.mxu1 %vm6659_vm9, %v5479_v52 }
 0x6c4   :  { %5484 = vmatpush3.bf16.xpose.msk.msra.mxu1 %vm6659_vm9, %v5479_v52 }
 0x6c5   :  { %5487 = vmatprep.subr.msk.bf16.mxu1 %vm6659_vm9, %v5485_v59 }
 0x6cc   :  { %5490 = vmatpush3.bf16.xpose.msk.msra.mxu1 %vm6659_vm9, %v5485_v59 }
 0x6cd   :  { %5493 = vmatprep.subr.msk.bf16.mxu1 %vm6659_vm9, %v5491_v63 }
 0x6d4   :  { %5496 = vmatpush3.bf16.xpose.msk.msra.mxu1 %vm6659_vm9, %v5491_v63 }
 0x6db   :  { %5096 = vmatmul.mubr.msk.f32.vlgmr.msra.gmra.mrb[16].mxu1 %vm437_vm6, %v1558_v0 }
 0x76e   :  { %v6765_v1 = vpop.f32.mrb[12].mxu1 }
 0x76f   :  { %v6767_v2 = vpop.f32.mrb[13].mxu1 }
 0x78e   :  { %v5049_v5 = vpop.f32.mrb[14].mxu1 }
 0x78f   :  { %v1265_v6 = vmul.f32 0.35355338, %v5049_v5  ;;  %v1255_v7 = vpop.f32.mrb[15].mxu1 }
 0x790   :  { %v1264_v10 = vmul.f32 0.35355338, %v1255_v7 }
 0x791   :  { %v1269_v11 = vsel %vm781_vm8, %v1265_v6, -inf }
 0x792   :  { %1270 = vmax.xlane.f32.xlu0 %v1269_v11  ;;  %v1266_v12 = vsel %vm781_vm8, %v1264_v10, -inf }
 0x793   :  { %1267 = vmax.xlane.f32.xlu1 %v1266_v12 }
 0x7a4   :  { %5837 = vrot.lane.b32.xlu1 %v6669_v57, %s6332_s9 }
 0x7a8   :  { %5832 = vrot.lane.b32.xlu0 %v6663_v18, %s6332_s9 }
 0x7ae   :  { %v5097_v13 = vpop.f32.mrb[16].mxu1 }
 0x7af   :  { %v1661_v14 = vpop.f32.mrb[17].mxu1  ;;  %v1671_v39 = vmul.f32 0.35355338, %v5097_v13  ;;  %v912_v13 = vld [vmem:[%s7107_s7 + $0x8] sm:$0xff] }
 0x7b0   :  { %v1670_v38 = vmul.f32 0.35355338, %v1661_v14  ;;  %v911_v14 = vld [vmem:[%s7107_s7] sm:$0xff] }
 0x7b1   :  { %v1675_v41 = vsel %vm781_vm8, %v1671_v39, -inf }
 0x7b2   :  { %v1672_v40 = vsel %vm781_vm8, %v1670_v38, -inf }
 0x81f   :  { %v1271_v16 = vpop.xlane.xlu0 %1270 }
 0x820   :  { %v1273_v17 = vsub.f32 %v1265_v6, %v1271_v16  ;;  %v1268_v19 = vpop.xlane.xlu1 %1267 }
 0x821   :  { %v1272_v20 = vsub.f32 %v1264_v10, %v1268_v19 }
 0x822   :  { %v1276_v21 = vmul.f32 1.442695, %v1273_v17 }
 0x823   :  { %v1274_v22 = vmul.f32 1.442695, %v1272_v20  ;;  %v5833_v23 = vpop.permute.xlu0 %5832 }
 0x824   :  { %5958 = vpow2.f32 %v1276_v21  ;;  %v5835_v24 = vunpack.i.h.bf16 %v5833_v23  ;;  %v5834_v25 = vunpack.i.l.bf16 %v5833_v23  ;;  %v5838_v26 = vpop.permute.xlu1 %5837 }
 0x825   :  { %5960 = vpow2.f32 %v1274_v22  ;;  %v5840_v28 = vunpack.i.h.bf16 %v5838_v26  ;;  %v5839_v29 = vunpack.i.l.bf16 %v5838_v26 }
 0x826   :  { %v5457_v30 = vpack.c.bf16 %v5835_v24, %v5834_v25 }
 0x827   :  { %v5461_v31 = vpack.c.bf16 %v5840_v28, %v5839_v29 }
 0x828   :  { %5458 = vmatprep.subr.bf16.mxu0 %v5457_v30 }
 0x829   :  { %5460 = vmatpush3.bf16.msra.mxu0 %v5457_v30 }
 0x82a   :  { %5462 = vmatprep.subr.bf16.mxu0 %v5461_v31 }
 0x82d   :  { %5464 = vmatpush3.bf16.msra.mxu0 %v5461_v31 }
 0x82e   :  { %v5959_v32 = vpop.eup %5958 }
 0x82f   :  { %v5961_v33 = vpop.eup %5960  ;;  %v1281_v36 = vsel %vm781_vm8, %v5959_v32, 0.0 }
 0x830   :  { %1282 = vadd.xlane.f32.xlu1 %v1281_v36  ;;  %v1278_v37 = vsel %vm781_vm8, %v5961_v33, 0.0 }
 0x831   :  { %1279 = vadd.xlane.f32.xlu0 %v1278_v37 }
 0x841   :  { %5842 = vrot.lane.b32.xlu1 %v6675_v27, %s6332_s9 }
 0x847   :  { %5847 = vrot.lane.b32.xlu0 %v6683_v34, %s6332_s9 }
 0x865   :  { %1673 = vmax.xlane.f32.xlu1 %v1672_v40 }
 0x866   :  { %1676 = vmax.xlane.f32.xlu0 %v1675_v41 }
 0x876   :  { %5857 = vrot.lane.b32.xlu1 %v6669_v57, %s6333_s3 }
 0x87c   :  { %5852 = vrot.lane.b32.xlu0 %v6663_v18, %s6333_s3 }
 0x8bd   :  { %v1283_v42 = vpop.xlane.xlu1 %1282 }
 0x8be   :  { %5962 = vrcp.f32 %v1283_v42  ;;  %v1280_v43 = vpop.xlane.xlu0 %1279 }
 0x8bf   :  { %5964 = vrcp.f32 %v1280_v43 }
 0x8c1   :  { %v5843_v44 = vpop.permute.xlu1 %5842 }
 0x8c2   :  { %v5845_v45 = vunpack.i.h.bf16 %v5843_v44  ;;  %v5844_v47 = vunpack.i.l.bf16 %v5843_v44  ;;  %v5848_v48 = vpop.permute.xlu0 %5847 }
 0x8c3   :  { %v5850_v49 = vunpack.i.h.bf16 %v5848_v48  ;;  %v5849_v50 = vunpack.i.l.bf16 %v5848_v48 }
 0x8c4   :  { %v5465_v51 = vpack.c.bf16 %v5845_v45, %v5844_v47 }
 0x8c5   :  { %v5469_v52 = vpack.c.bf16 %v5850_v49, %v5849_v50 }
 0x8c6   :  { %5466 = vmatprep.subr.bf16.mxu0 %v5465_v51 }
 0x8c7   :  { %5468 = vmatpush3.bf16.msra.mxu0 %v5465_v51 }
 0x8c8   :  { %v5963_v53 = vpop.eup %5962  ;;  %5470 = vmatprep.subr.bf16.mxu0 %v5469_v52 }
 0x8c9   :  { %v5965_v58 = vpop.eup %5964  ;;  %v1287_v60 = vmul.f32 %v5963_v53, %v5959_v32 }
 0x8ca   :  { %v1286_v59 = vmul.f32 %v5965_v58, %v5961_v33 }
 0x8cb   :  { %5472 = vmatpush3.bf16.msra.mxu0 %v5469_v52 }
 0x8cc   :  { %5066 = vmatprep.mubr.msk.f32.mxu0 %vm781_vm8, %v1286_v59  ;;  %5069 = vmatprep.subr.mxu0 %v912_v13 }
 0x8ce   :  { %5067 = vmatmul.mubr.msk.f32.vlgmr.msra.gmra.mrb[10].mxu0 %vm781_vm8, %v1287_v60 }
 0x8cf   :  { %5070 = vmatpush3.msra.mxu0 %v912_v13 }
 0x8d0   :  { %5074 = vmatprep.subr.mxu0 %v911_v14 }
 0x8f2   :  { %v1674_v61 = vpop.xlane.xlu1 %1673 }
 0x8f3   :  { %v1678_v62 = vsub.f32 %v1670_v38, %v1674_v61  ;;  %v1677_v63 = vpop.xlane.xlu0 %1676 }
 0x8f4   :  { %v1679_v0 = vsub.f32 %v1671_v39, %v1677_v63 }
 0x8f5   :  { %v1680_v5 = vmul.f32 1.442695, %v1678_v62 }
 0x8f6   :  { %v1682_v6 = vmul.f32 1.442695, %v1679_v0  ;;  %v5858_v19 = vpop.permute.xlu1 %5857 }
 0x8f7   :  { %5966 = vpow2.f32 %v1680_v5  ;;  %v5853_v16 = vpop.permute.xlu0 %5852  ;;  %v5860_v25 = vunpack.i.h.bf16 %v5858_v19  ;;  %v5859_v26 = vunpack.i.l.bf16 %v5858_v19 }
 0x8f8   :  { %5968 = vpow2.f32 %v1682_v6  ;;  %v5855_v20 = vunpack.i.h.bf16 %v5853_v16  ;;  %v5854_v21 = vunpack.i.l.bf16 %v5853_v16 }
 0x8f9   :  { %v5501_v30 = vpack.c.bf16 %v5860_v25, %v5859_v26 }
 0x8fa   :  { %v5497_v24 = vpack.c.bf16 %v5855_v20, %v5854_v21 }
 0x901   :  { %v5967_v7 = vpop.eup %5966 }
 0x902   :  { %v5969_v10 = vpop.eup %5968  ;;  %v1684_v11 = vsel %vm781_vm8, %v5967_v7, 0.0 }
 0x903   :  { %1685 = vadd.xlane.f32.xlu0 %v1684_v11  ;;  %v1687_v12 = vsel %vm781_vm8, %v5969_v10, 0.0 }
 0x904   :  { %1688 = vadd.xlane.f32.xlu1 %v1687_v12 }
 0x915   :  { %5862 = vrot.lane.b32.xlu1 %v6675_v27, %s6333_s3 }
 0x919   :  { %5872 = vrot.lane.b32.xlu1 %v6663_v18, %s6329_s23  ;;  %5867 = vrot.lane.b32.xlu0 %v6683_v34, %s6333_s3 }
 0x91d   :  { %5882 = vrot.lane.b32.xlu1 %v6675_v27, %s6329_s23  ;;  %5877 = vrot.lane.b32.xlu0 %v6669_v57, %s6329_s23 }
 0x921   :  { %1882 = vrot.lane.b32.xlu1 %v6648_v8, %s6329_s23  ;;  %5887 = vrot.lane.b32.xlu0 %v6683_v34, %s6329_s23 }
 0x925   :  { %1884 = vrot.lane.b32.xlu0 %v6695_v35, %s6329_s23 }
 0x990   :  { %v1686_v17 = vpop.xlane.xlu0 %1685 }
 0x991   :  { %5970 = vrcp.f32 %v1686_v17  ;;  %v1689_v23 = vpop.xlane.xlu1 %1688 }
 0x992   :  { %5972 = vrcp.f32 %v1689_v23 }
 0x994   :  { %v5868_v33 = vpop.permute.xlu0 %5867 }
 0x995   :  { %v5863_v28 = vpop.permute.xlu1 %5862  ;;  %v5870_v36 = vunpack.i.h.bf16 %v5868_v33 }
 0x996   :  { %v5865_v31 = vunpack.i.h.bf16 %v5863_v28  ;;  %v5864_v32 = vunpack.i.l.bf16 %v5863_v28 }
 0x998   :  { %v5505_v37 = vpack.c.bf16 %v5865_v31, %v5864_v32  ;;  %v5878_v45 = vpop.permute.xlu0 %5877 }
 0x999   :  { %v5873_v39 = vpop.permute.xlu1 %5872  ;;  %v5880_v48 = vunpack.i.h.bf16 %v5878_v45  ;;  %v5879_v49 = vunpack.i.l.bf16 %v5878_v45  ;;  %v2211_v45 = vsub.s32 3, %v6610_v55 }
 0x99a   :  { %v5875_v41 = vunpack.i.h.bf16 %v5873_v39  ;;  %v5874_v42 = vunpack.i.l.bf16 %v5873_v39 }
 0x99b   :  { %v5971_v35 = vpop.eup %5970  ;;  %v5519_v52 = vpack.c.bf16 %v5880_v48, %v5879_v49 }
 0x99c   :  { %v1692_v29 = vmul.f32 %v5971_v35, %v5967_v7  ;;  %v5973_v40 = vpop.eup %5972  ;;  %v5513_v44 = vpack.c.bf16 %v5875_v41, %v5874_v42  ;;  %v5888_v61 = vpop.permute.xlu0 %5887 }
 0x99d   :  { %v1693_v43 = vmul.f32 %v5973_v40, %v5969_v10  ;;  %v5883_v47 = vpop.permute.xlu1 %5882  ;;  %v5890_v62 = vunpack.i.h.bf16 %v5888_v61  ;;  %v5889_v63 = vunpack.i.l.bf16 %v5888_v61 }
 0x99e   :  { %v5885_v58 = vunpack.i.h.bf16 %v5883_v47  ;;  %v5884_v59 = vunpack.i.l.bf16 %v5883_v47  ;;  %v6860_v47 = vld [vmem:[#allocation2] sm:$0xff] }
 0x99f   :  { %v5531_v0 = vpack.c.bf16 %v5890_v62, %v5889_v63  ;;  %v2212_v48 = vrot.slane %v6860_v47, %v2211_v45 }
 0x9a0   :  { %v5525_v60 = vpack.c.bf16 %v5885_v58, %v5884_v59  ;;  %v1885_v5 = vpop.permute.xlu0 %1884 }
 0x9a1   :  { %v5068_v8 = vpop.f32.mrb[10].mxu0  ;;  %v1883_v53 = vpop.permute.xlu1 %1882 }
 0x9a2   :  { %v1384_v22 = vpop.f32.mrb[11].mxu0 }
 0x9a3   :  { %5071 = vmatprep.mubr.msk.f32.mxu0 %vm437_vm6, %v1384_v22 }
 0x9a4   :  { %5072 = vmatmul.mubr.msk.f32.vlgmr.msra.gmra.mrb[12].mxu0 %vm437_vm6, %v5068_v8 }
 0x9a5   :  { %5075 = vmatpush3.msra.mxu0 %v911_v14  ;;  %5076 = vmatprep.mubr.msk.f32.mxu0 %vm437_vm6, %v6767_v2  ;;  %v5869_v2 = vunpack.i.l.bf16 %v5868_v33 }
 0x9a6   :  { %5498 = vmatprep.subr.bf16.mxu0 %v5497_v24 }
 0x9a7   :  { %v5509_v38 = vpack.c.bf16 %v5870_v36, %v5869_v2 }
 0x9ac   :  { %5077 = vmatmul.mubr.msk.f32.vlgmr.msra.gmra.mrb[12].mxu0 %vm437_vm6, %v6765_v1  ;;  %v913_v1 = vld [vmem:[%s7107_s7 + $0x10] sm:$0xff] }
 0x9ad   :  { %5500 = vmatpush3.bf16.msra.mxu0 %v5497_v24  ;;  %5114 = vmatprep.mubr.msk.f32.mxu0 %vm781_vm8, %v1692_v29 }
 0x9ae   :  { %5502 = vmatprep.subr.bf16.mxu0 %v5501_v30 }
 0x9b1   :  { %5504 = vmatpush3.bf16.msra.mxu0 %v5501_v30  ;;  %v914_v30 = vld [vmem:[%s7107_s7 + $0x18] sm:$0xff]  ;;  %s6336_s7 = smov 64  }
 0x9b2   :  { %5506 = vmatprep.subr.bf16.mxu0 %v5505_v37 }
 0x9b5   :  { %5508 = vmatpush3.bf16.msra.mxu0 %v5505_v37 }
 0x9b6   :  { %5510 = vmatprep.subr.bf16.mxu0 %v5509_v38 }
 0x9b9   :  { %5512 = vmatpush3.bf16.msra.mxu0 %v5509_v38 }
 0x9ba   :  { %5117 = vmatprep.subr.mxu0 %v913_v1 }
 0x9bc   :  { %5115 = vmatmul.mubr.msk.f32.vlgmr.msra.gmra.mrb[14].mxu0 %vm781_vm8, %v1693_v43 }
 0x9bd   :  { %5118 = vmatpush3.msra.mxu0 %v913_v1 }
 0x9be   :  { %5515 = vmatprep.subr.msk.bf16.mxu0 %vm6659_vm9, %v5513_v44 }
 0xa8f   :  { %v5116_v50 = vpop.f32.mrb[14].mxu0 }
 0xa90   :  { %v1790_v51 = vpop.f32.mrb[15].mxu0 }
 0xa91   :  { %5119 = vmatprep.mubr.msk.f32.mxu0 %vm437_vm6, %v1790_v51 }
 0xa92   :  { %5120 = vmatmul.mubr.msk.f32.vlgmr.msra.gmra.mrb[12].mxu0 %vm437_vm6, %v5116_v50 }
 0xa93   :  { %5518 = vmatpush3.bf16.xpose.msk.msra.mxu0 %vm6659_vm9, %v5513_v44  ;;  %5138 = vmatprep.mubr.msk.f32.mxu0 %vm437_vm6, %v1883_v53 }
 0xa94   :  { %5521 = vmatprep.subr.msk.bf16.mxu0 %vm6659_vm9, %v5519_v52 }
 0xa9b   :  { %5524 = vmatpush3.bf16.xpose.msk.msra.mxu0 %vm6659_vm9, %v5519_v52 }
 0xa9c   :  { %5527 = vmatprep.subr.msk.bf16.mxu0 %vm6659_vm9, %v5525_v60 }
 0xaa3   :  { %5530 = vmatpush3.bf16.xpose.msk.msra.mxu0 %vm6659_vm9, %v5525_v60 }
 0xaa4   :  { %5533 = vmatprep.subr.msk.bf16.mxu0 %vm6659_vm9, %v5531_v0 }
 0xaab   :  { %5536 = vmatpush3.bf16.xpose.msk.msra.mxu0 %vm6659_vm9, %v5531_v0 }
 0xaac   :  { %5160 = vmatprep.subr.mxu0 %v914_v30 }
 0xab2   :  { %5139 = vmatmul.mubr.msk.f32.vlgmr.msra.gmra.mrb[16].mxu0 %vm437_vm6, %v1885_v5 }
 0xab3   :  { %5161 = vmatpush3.msra.mxu0 %v914_v30  ;;  %v2311_v30 = vld [vmem:[#allocation13 + $0x60] sm:$0xff] }
 0xb85   :  { %v5140_v6 = vpop.f32.mrb[16].mxu0 }
 0xb86   :  { %v1998_v7 = vmul.f32 0.35355338, %v5140_v6  ;;  %v1988_v10 = vpop.f32.mrb[17].mxu0 }
 0xb87   :  { %v1997_v11 = vmul.f32 0.35355338, %v1988_v10 }
 0xb88   :  { %v2002_v12 = vsel %vm781_vm8, %v1998_v7, -inf }
 0xb89   :  { %2003 = vmax.xlane.f32.xlu0 %v2002_v12  ;;  %v1999_v13 = vsel %vm781_vm8, %v1997_v11, -inf  ;;  %v2302_v12 = vld [vmem:[#allocation13 + $0x18] sm:$0xff] }
 0xb8a   :  { %2000 = vmax.xlane.f32.xlu1 %v1999_v13 }
 0xb9b   :  { %5897 = vrot.lane.b32.xlu1 %v6669_v57, %s6334_s6 }
 0xb9f   :  { %5892 = vrot.lane.b32.xlu0 %v6663_v18, %s6334_s6 }
 0xc16   :  { %v2004_v15 = vpop.xlane.xlu0 %2003 }
 0xc17   :  { %v2006_v14 = vsub.f32 %v1998_v7, %v2004_v15  ;;  %v2001_v16 = vpop.xlane.xlu1 %2000  ;;  %v2299_v15 = vld [vmem:[#allocation13] sm:$0xff] }
 0xc18   :  { %v2005_v17 = vsub.f32 %v1997_v11, %v2001_v16  ;;  %v2300_v11 = vld [vmem:[#allocation13 + $0x8] sm:$0xff] }
 0xc19   :  { %v2009_v19 = vmul.f32 1.442695, %v2006_v14  ;;  %v5553_v13 = vpack.c.bf16 %v2302_v12, %v2300_v11  ;;  %v2301_v14 = vld [vmem:[#allocation13 + $0x10] sm:$0xff] }
 0xc1a   :  { %v2007_v20 = vmul.f32 1.442695, %v2005_v17  ;;  %v5893_v21 = vpop.permute.xlu0 %5892  ;;  %v5555_v16 = vpack.c.bf16 %v2301_v14, %v2299_v15  ;;  %v2304_v17 = vld [vmem:[#allocation13 + $0x28] sm:$0xff] }
 0xc1b   :  { %5974 = vpow2.f32 %v2009_v19  ;;  %v5895_v8 = vunpack.i.h.bf16 %v5893_v21  ;;  %v5894_v22 = vunpack.i.l.bf16 %v5893_v21  ;;  %v5898_v23 = vpop.permute.xlu1 %5897  ;;  %v2306_v19 = vld [vmem:[#allocation13 + $0x38] sm:$0xff]  ;;  %v2303_v21 = vld [vmem:[#allocation13 + $0x20] sm:$0xff] }
 0xc1c   :  { %5976 = vpow2.f32 %v2007_v20  ;;  %v5900_v24 = vunpack.i.h.bf16 %v5898_v23  ;;  %v5899_v35 = vunpack.i.l.bf16 %v5898_v23  ;;  %v5557_v20 = vpack.c.bf16 %v2306_v19, %v2304_v17  ;;  %v2308_v23 = vld [vmem:[#allocation13 + $0x48] sm:$0xff] }
 0xc1d   :  { %v5537_v25 = vpack.c.bf16 %v5895_v8, %v5894_v22  ;;  %v2305_v8 = vld [vmem:[#allocation13 + $0x30] sm:$0xff] }
 0xc1e   :  { %v5541_v26 = vpack.c.bf16 %v5900_v24, %v5899_v35  ;;  %v5559_v22 = vpack.c.bf16 %v2305_v8, %v2303_v21  ;;  %v2310_v24 = vld [vmem:[#allocation13 + $0x58] sm:$0xff]  ;;  %v2219_v8 = vand.u32 127, %v245_v54 }
 0xc1f   :  { %5538 = vmatprep.subr.bf16.mxu1 %v5537_v25  ;;  %v5561_v35 = vpack.c.bf16 %v2310_v24, %v2308_v23  ;;  %v2224_v23 = vand.u32 1, %v6610_v55 }
 0xc20   :  { %5540 = vmatpush3.bf16.msra.mxu1 %v5537_v25  ;;  %v2307_v25 = vld [vmem:[#allocation13 + $0x40] sm:$0xff]  ;;  %v2248_v24 = vand.u32 1, %v2219_v8 }
 0xc21   :  { %5542 = vmatprep.subr.bf16.mxu1 %v5541_v26 }
 0xc22   :  { %vm2256_vm12 = vcmp.eq.s32.totalorder %v2224_v23, %v2248_v24 }
 0xc24   :  { %5544 = vmatpush3.bf16.msra.mxu1 %v5541_v26  ;;  %v2309_v26 = vld [vmem:[#allocation13 + $0x50] sm:$0xff] }
 0xc25   :  { %v5975_v18 = vpop.eup %5974 }
 0xc26   :  { %v5977_v57 = vpop.eup %5976  ;;  %v2014_v28 = vsel %vm781_vm8, %v5975_v18, 0.0 }
 0xc27   :  { %2015 = vadd.xlane.f32.xlu1 %v2014_v28  ;;  %v2011_v29 = vsel %vm781_vm8, %v5977_v57, 0.0  ;;  %v2314_v28 = vld [vmem:[#allocation13 + $0x78] sm:$0xff] }
 0xc28   :  { %2012 = vadd.xlane.f32.xlu0 %v2011_v29 }
 0xc38   :  { %5902 = vrot.lane.b32.xlu1 %v6675_v27, %s6334_s6 }
 0xc3e   :  { %5907 = vrot.lane.b32.xlu0 %v6683_v34, %s6334_s6 }
 0xcb4   :  { %v2016_v31 = vpop.xlane.xlu1 %2015 }
 0xcb5   :  { %5978 = vrcp.f32 %v2016_v31  ;;  %v2013_v32 = vpop.xlane.xlu0 %2012  ;;  %v2313_v31 = vld [vmem:[#allocation13 + $0x70] sm:$0xff] }
 0xcb6   :  { %5980 = vrcp.f32 %v2013_v32  ;;  %v5567_v32 = vpack.c.bf16 %v2313_v31, %v2311_v30 }
 0xcb8   :  { %v5903_v33 = vpop.permute.xlu1 %5902 }
 0xcb9   :  { %v5905_v36 = vunpack.i.h.bf16 %v5903_v33  ;;  %v5904_v2 = vunpack.i.l.bf16 %v5903_v33  ;;  %v5908_v37 = vpop.permute.xlu0 %5907  ;;  %v6335_v33 = vmov 0.0  }
 0xcba   :  { %v5910_v38 = vunpack.i.h.bf16 %v5908_v37  ;;  %v5909_v39 = vunpack.i.l.bf16 %v5908_v37 }
 0xcbb   :  { %v5545_v40 = vpack.c.bf16 %v5905_v36, %v5904_v2 }
 0xcbc   :  { %v5549_v27 = vpack.c.bf16 %v5910_v38, %v5909_v39 }
 0xcbd   :  { %5546 = vmatprep.subr.bf16.mxu1 %v5545_v40 }
 0xcbe   :  { %5548 = vmatpush3.bf16.msra.mxu1 %v5545_v40 }
 0xcbf   :  { %v5979_v34 = vpop.eup %5978  ;;  %5550 = vmatprep.subr.bf16.mxu1 %v5549_v27 }
 0xcc0   :  { %v5981_v1 = vpop.eup %5980  ;;  %v2020_v42 = vmul.f32 %v5979_v34, %v5975_v18  ;;  %v5563_v18 = vpack.c.bf16 %v2309_v26, %v2307_v25  ;;  %v2295_v34 = vsub.s32 5, %v6610_v55 }
 0xcc1   :  { %v2019_v41 = vmul.f32 %v5981_v1, %v5977_v57  ;;  %v2312_v57 = vld [vmem:[#allocation13 + $0x68] sm:$0xff] }
 0xcc2   :  { %5552 = vmatpush3.bf16.msra.mxu1 %v5549_v27  ;;  %v5565_v29 = vpack.c.bf16 %v2314_v28, %v2312_v57  ;;  %v2289_v27 = vsub.s32 4, %v6610_v55 }
 0xcc3   :  { %5157 = vmatprep.mubr.msk.f32.mxu1 %vm781_vm8, %v2019_v41  ;;  %5554 = vmatprep.subr.bf16.mxu1 %v5553_v13 }
 0xcc4   :  { %v2290_v41 = vrot.slane %v6860_v47, %v2289_v27 }
 0xcc5   :  { %5158 = vmatmul.mubr.msk.f32.vlgmr.msra.gmra.mrb[18].mxu1 %vm781_vm8, %v2020_v42 }
 0xcc6   :  { %5556 = vmatpush1.bf16.msra.mxu1 %v5555_v16  ;;  %2393 = vmatprep.mubr.f32.mxu1 %v6335_v33 }
 0xcc7   :  { %5558 = vmatprep.subr.bf16.mxu1 %v5557_v20 }
 0xcca   :  { %5560 = vmatpush1.bf16.msra.mxu1 %v5559_v22  ;;  %v2217_v22 = vadd.s32 8, %v6610_v55 }
 0xccb   :  { %5562 = vmatprep.subr.bf16.mxu1 %v5561_v35 }
 0xccc   :  { %v2231_v35 = vand.u32 1, %v2217_v22 }
 0xcce   :  { %5564 = vmatpush1.bf16.msra.mxu1 %v5563_v18  ;;  %vm2257_vm13 = vcmp.eq.s32.totalorder %v2231_v35, %v2248_v24  ;;  %v6338_v18 = vmov -1e+30  }
 0xccf   :  { %5566 = vmatprep.subr.bf16.mxu1 %v5565_v29  ;;  %v6924_v57 = vsel %vm2256_vm12, 0.0, %v6338_v18  ;;  %v6926_v30 = vsel %vm2257_vm13, 0.0, %v6338_v18 }
 0xcd2   :  { %5568 = vmatpush1.bf16.msra.mxu1 %v5567_v32 }
 0xd98   :  { %v5159_v43 = vpop.f32.mrb[18].mxu1 }
 0xd99   :  { %v2117_v44 = vpop.f32.mrb[19].mxu1 }
 0xd9a   :  { %5162 = vmatprep.mubr.msk.f32.mxu0 %vm437_vm6, %v2117_v44  ;;  %v2296_v44 = vrot.slane %v6860_v47, %v2295_v34 }
 0xd9b   :  { %5163 = vmatmul.mubr.msk.f32.vlgmr.msra.gmra.mrb[12].mxu0 %vm437_vm6, %v5159_v43 }
 0xe6e   :  { %v5164_v49 = vpop.f32.mrb[12].mxu0 }
 0xe6f   :  { %v6865_v50 = vadd.f32 %v5164_v49, %v2212_v48  ;;  %v2198_v51 = vpop.f32.mrb[13].mxu0 }
 0xe70   :  { %v6867_v52 = vadd.f32 %v2212_v48, %v2198_v51 }
 0xe71   :  { %v2263_v53 = vsel %vm781_vm8, %v6865_v50, 0.0 }
 0xe72   :  { %2264 = vadd.xlane.f32.xlu0 %v2263_v53  ;;  %v2260_v58 = vsel %vm781_vm8, %v6867_v52, 0.0 }
 0xe73   :  { %2261 = vadd.xlane.f32.xlu1 %v2260_v58 }
 0xeff   :  { %v2265_v59 = vpop.xlane.xlu0 %2264 }
 0xf00   :  { %v2268_v60 = vmul.f32 0.015625, %v2265_v59  ;;  %v2262_v61 = vpop.xlane.xlu1 %2261  ;;  %v2317_v59 = vsub.s32 6, %v6610_v55 }
 0xf01   :  { %v2267_v62 = vmul.f32 0.015625, %v2262_v61  ;;  %v195_v61 = vld [vmem:[#allocation2 + $0x8] sm:$0xff] }
 0xf02   :  { %v2270_v63 = vsub.f32 %v6865_v50, %v2268_v60  ;;  %v2318_v60 = vrot.slane %v6860_v47, %v2317_v59 }
 0xf03   :  { %v2269_v0 = vsub.f32 %v6867_v52, %v2267_v62 }
 0xf04   :  { %v2272_v5 = vmul.f32 %v2270_v63, %v2270_v63 }
 0xf05   :  { %v2271_v6 = vmul.f32 %v2269_v0, %v2269_v0 }
 0xf06   :  { %v2276_v7 = vsel %vm781_vm8, %v2272_v5, 0.0  ;;  %v2322_v5 = vrot.slane %v195_v61, %v2317_v59 }
 0xf07   :  { %2277 = vadd.xlane.f32.xlu1 %v2276_v7  ;;  %v2273_v10 = vsel %vm781_vm8, %v2271_v6, 0.0 }
 0xf08   :  { %2274 = vadd.xlane.f32.xlu0 %v2273_v10 }
 0xf94   :  { %v2278_v36 = vpop.xlane.xlu1 %2277 }
 0xf95   :  { %v2280_v2 = vmul.f32 0.015625, %v2278_v36  ;;  %v2275_v37 = vpop.xlane.xlu0 %2274 }
 0xf96   :  { %v2279_v38 = vmul.f32 0.015625, %v2275_v37 }
 0xf97   :  { %v2282_v39 = vadd.f32 1e-05, %v2280_v2 }
 0xf98   :  { %v2281_v40 = vadd.f32 1e-05, %v2279_v38 }
 0xf99   :  { %5982 = vrsqrt.f32 %v2282_v39 }
 0xf9a   :  { %5984 = vrsqrt.f32 %v2281_v40 }
 0xfa3   :  { %v5983_v1 = vpop.eup %5982 }
 0xfa4   :  { %v5985_v42 = vpop.eup %5984  ;;  %v2286_v48 = vmul.f32 %v5983_v1, %v2270_v63 }
 0xfa5   :  { %v2285_v43 = vmul.f32 %v5985_v42, %v2269_v0 }
 0xfa6   :  { %v2292_v53 = vmul.f32 %v2290_v41, %v2286_v48 }
 0xfa7   :  { %v2291_v49 = vmul.f32 %v2290_v41, %v2285_v43 }
 0xfa8   :  { %v2298_v58 = vadd.f32 %v2296_v44, %v2292_v53 }
 0xfa9   :  { %v2297_v51 = vadd.f32 %v2296_v44, %v2291_v49 }
 0xfab   :  { %4578 = vmatmul.mubr.msk.f32.vlgmr.msra.gmra.mrb[20].mxu1 %vm781_vm8, %v2297_v51 }
 0xfac   :  { %2399 = vmatprep.mubr.f32.mxu1 %v6335_v33 }
 0xfaf   :  { %4579 = vmatmul.mubr.msk.f32.gmra.mrb[22].mxu1 %vm781_vm8, %v2298_v58 }
0x107e   :  { %v2395_v62 = vpop.f32.mrb[20].mxu1 }
0x107f   :  { %v6889_v0 = vadd.f32 %v2395_v62, %v2318_v60  ;;  %v2397_v63 = vpop.f32.mrb[21].mxu1 }
0x1080   :  { %v2398_v11 = vadd.f32 %v2397_v63, %v2322_v5 }
0x1081   :  { %5169 = vmatprep.mubr.msk.f32.mxu0 %vm2420_vm10, %v6889_v0 }
0x1082   :  { %v2401_v6 = vpop.f32.mrb[22].mxu1 }
0x1083   :  { %v6893_v7 = vadd.f32 %v2401_v6, %v2318_v60  ;;  %v2403_v10 = vpop.f32.mrb[23].mxu1 }
0x1084   :  { %v2404_v12 = vadd.f32 %v2403_v10, %v2322_v5 }
0x1085   :  { %v6897_v13 = vpack.i.bf16 %v6893_v7, %v6889_v0 }
0x1086   :  { %v5575_v15 = vpack.c.bf16 %v2404_v12, %v2398_v11  ;;  %v6899_v14 = vpack.i.bf16 %v2404_v12, %v2398_v11 }
0x1087   :  { %5912 = vrot.lane.b32.xlu0 %v6897_v13, %s6336_s7 }
0x108b   :  { %2611 = vrot.lane.b32.xlu0 %v6889_v0, %s6324_s0 }
0x108f   :  { %2613 = vrot.lane.b32.xlu0 %v6893_v7, %s6324_s0 }
0x1093   :  { %5922 = vrot.lane.b32.xlu0 %v6897_v13, %s6337_s25 }
0x1097   :  { %2979 = vrot.lane.b32.xlu0 %v6889_v0, %s6331_s26 }
0x10f9   :  { %v5913_v16 = vpop.permute.xlu0 %5912 }
0x10fa   :  { %v5915_v17 = vunpack.i.h.bf16 %v5913_v16  ;;  %v5914_v19 = vunpack.i.l.bf16 %v5913_v16 }
0x10fc   :  { %v5569_v21 = vpack.c.bf16 %v5915_v17, %v5914_v19 }
0x10fd   :  { %v2612_v44 = vpop.permute.xlu0 %2611 }
0x10fe   :  { %5571 = vmatprep.subr.msk.bf16.mxu0 %vm6911_vm11, %v5569_v21 }
0x10ff   :  { %5574 = vmatpush3.bf16.xpose.msk.msra.mxu0 %vm6911_vm11, %v5569_v21 }
0x1100   :  { %5576 = vmatprep.subr.bf16.mxu0 %v5575_v15 }
0x1101   :  { %v2614_v51 = vpop.permute.xlu0 %2613 }
0x1105   :  { %v5923_v61 = vpop.permute.xlu0 %5922 }
0x1106   :  { %5170 = vmatmul.mubr.msk.f32.vlgmr.msra.gmra.mrb[18].mxu0 %vm2420_vm10, %v6893_v7  ;;  %v5925_v5 = vunpack.i.h.bf16 %v5923_v61  ;;  %v5924_v6 = vunpack.i.l.bf16 %v5923_v61 }
0x1107   :  { %5578 = vmatpush3.bf16.msra.mxu0 %v5575_v15 }
0x1108   :  { %v5597_v12 = vpack.c.bf16 %v5925_v5, %v5924_v6 }
0x1109   :  { %v2980_v15 = vpop.permute.xlu0 %2979 }
0x11d9   :  { %v5171_v25 = vpop.f32.mrb[18].mxu0 }
0x11da   :  { %v2495_v26 = vpop.f32.mrb[19].mxu0  ;;  %v2505_v28 = vmul.f32 0.25, %v5171_v25 }
0x11db   :  { %v2504_v29 = vmul.f32 0.25, %v2495_v26 }
0x11dc   :  { %v2507_v32 = vadd.f32 %v2505_v28, %v6926_v30 }
0x11dd   :  { %v2506_v31 = vadd.f32 %v2504_v29, %v6924_v57 }
0x11de   :  { %v2511_v36 = vsel %vm2420_vm10, %v2507_v32, -inf }
0x11df   :  { %v2508_v54 = vsel %vm2420_vm10, %v2506_v31, -inf }
0x11e0   :  { %2509 = vmax.xlane.f32.xlu1 %v2508_v54 }
0x11e4   :  { %2512 = vmax.xlane.f32.xlu1 %v2511_v36 }
0x126d   :  { %v2510_v2 = vpop.xlane.xlu1 %2509 }
0x126e   :  { %v2514_v37 = vsub.f32 %v2506_v31, %v2510_v2 }
0x1270   :  { %v2516_v40 = vmul.f32 1.442695, %v2514_v37 }
0x1271   :  { %v2513_v38 = vpop.xlane.xlu1 %2512 }
0x1272   :  { %v2515_v39 = vsub.f32 %v2507_v32, %v2513_v38 }
0x1274   :  { %v2518_v34 = vmul.f32 1.442695, %v2515_v39 }
0x1276   :  { %5986 = vpow2.f32 %v2518_v34 }
0x1277   :  { %5988 = vpow2.f32 %v2516_v40 }
0x1280   :  { %v5987_v1 = vpop.eup %5986 }
0x1281   :  { %v2523_v41 = vsel %vm2420_vm10, %v5987_v1, 0.0  ;;  %v5989_v42 = vpop.eup %5988 }
0x1282   :  { %2524 = vadd.xlane.f32.xlu1 %v2523_v41  ;;  %v2520_v43 = vsel %vm2420_vm10, %v5989_v42, 0.0 }
0x1286   :  { %2521 = vadd.xlane.f32.xlu1 %v2520_v43 }
0x1297   :  { %5917 = vrot.lane.b32.xlu1 %v6897_v13, %s6339_s28 }
0x129b   :  { %2981 = vrot.lane.b32.xlu1 %v6893_v7, %s6331_s26 }
0x130f   :  { %v2525_v48 = vpop.xlane.xlu1 %2524 }
0x1310   :  { %5990 = vrcp.f32 %v2525_v48 }
0x1313   :  { %v2522_v49 = vpop.xlane.xlu1 %2521 }
0x1314   :  { %5992 = vrcp.f32 %v2522_v49 }
0x1317   :  { %v5918_v53 = vpop.permute.xlu1 %5917 }
0x1318   :  { %v5920_v58 = vunpack.i.h.bf16 %v5918_v53  ;;  %v5919_v59 = vunpack.i.l.bf16 %v5918_v53 }
0x131a   :  { %v5579_v60 = vpack.c.bf16 %v5920_v58, %v5919_v59  ;;  %v5991_v62 = vpop.eup %5990 }
0x131b   :  { %v2529_v11 = vmul.f32 %v5991_v62, %v5987_v1  ;;  %v2982_v16 = vpop.permute.xlu1 %2981 }
0x131c   :  { %5581 = vmatprep.subr.msk.bf16.mxu0 %vm6911_vm11, %v5579_v60 }
0x131e   :  { %v5993_v63 = vpop.eup %5992 }
0x131f   :  { %v2528_v10 = vmul.f32 %v5993_v63, %v5989_v42 }
0x1321   :  { %5176 = vmatprep.mubr.msk.f32.mxu0 %vm2420_vm10, %v2528_v10 }
0x1322   :  { %5177 = vmatmul.mubr.msk.f32.vlgmr.msra.gmra.mrb[20].mxu0 %vm2420_vm10, %v2529_v11 }
0x1323   :  { %5584 = vmatpush3.bf16.xpose.msk.msra.mxu0 %vm6911_vm11, %v5579_v60  ;;  %5183 = vmatprep.mubr.msk.f32.mxu0 %vm2420_vm10, %v2612_v44 }
0x1324   :  { %5599 = vmatprep.subr.msk.bf16.mxu0 %vm6911_vm11, %v5597_v12 }
0x132a   :  { %5184 = vmatmul.mubr.msk.f32.vlgmr.msra.gmra.mrb[22].mxu0 %vm2420_vm10, %v2614_v51 }
0x132b   :  { %5602 = vmatpush3.bf16.xpose.msk.msra.mxu0 %vm6911_vm11, %v5597_v12  ;;  %5211 = vmatprep.mubr.msk.f32.mxu0 %vm2420_vm10, %v2980_v15 }
0x1332   :  { %5212 = vmatmul.mubr.msk.f32.vlgmr.msra.gmra.mrb[24].mxu0 %vm2420_vm10, %v2982_v16 }
0x13f5   :  { %v6951_v17 = vpop.f32.mrb[20].mxu0 }
0x13f6   :  { %v6953_v19 = vpop.f32.mrb[21].mxu0 }
0x13fd   :  { %v5185_v21 = vpop.f32.mrb[22].mxu0 }
0x13fe   :  { %v2703_v8 = vmul.f32 0.25, %v5185_v21  ;;  %v2693_v22 = vpop.f32.mrb[23].mxu0 }
0x13ff   :  { %v2702_v23 = vmul.f32 0.25, %v2693_v22 }
0x1400   :  { %v2705_v24 = vadd.f32 %v2703_v8, %v6926_v30 }
0x1401   :  { %v2704_v35 = vadd.f32 %v2702_v23, %v6924_v57 }
0x1402   :  { %v2709_v25 = vsel %vm2420_vm10, %v2705_v24, -inf }
0x1403   :  { %2710 = vmax.xlane.f32.xlu1 %v2709_v25  ;;  %v2706_v26 = vsel %vm2420_vm10, %v2704_v35, -inf }
0x1404   :  { %2707 = vmax.xlane.f32.xlu0 %v2706_v26  ;;  %v2406_v26 = vld [vmem:[#allocation14] sm:$0xff] }
0x1405   :  { %v5213_v18 = vpop.f32.mrb[24].mxu0 }
0x1406   :  { %v3061_v28 = vpop.f32.mrb[25].mxu0  ;;  %v3071_v29 = vmul.f32 0.25, %v5213_v18  ;;  %v2407_v18 = vld [vmem:[#allocation14 + $0x8] sm:$0xff] }
0x1407   :  { %v3070_v44 = vmul.f32 0.25, %v3061_v28  ;;  %v5593_v28 = vpack.c.bf16 %v2407_v18, %v2406_v26  ;;  %v3557_v18 = vsub.s32 7, %v6610_v55 }
0x1408   :  { %v3073_v31 = vadd.f32 %v3071_v29, %v6926_v30 }
0x1409   :  { %v3072_v48 = vadd.f32 %v3070_v44, %v6924_v57 }
0x140a   :  { %v3077_v54 = vsel %vm2420_vm10, %v3073_v31, -inf }
0x140b   :  { %v3074_v49 = vsel %vm2420_vm10, %v3072_v48, -inf }
0x1414   :  { %5927 = vrot.lane.b32.xlu1 %v6899_v14, %s6324_s0 }
0x1418   :  { %3266 = vrot.lane.b32.xlu1 %v6889_v0, %s6333_s3 }
0x141c   :  { %3268 = vrot.lane.b32.xlu1 %v6893_v7, %s6333_s3 }
0x1440   :  { %3078 = vmax.xlane.f32.xlu1 %v3077_v54 }
0x1451   :  { %5937 = vrot.lane.b32.xlu1 %v6899_v14, %s6331_s26 }
0x1455   :  { %5942 = vrot.lane.b32.xlu1 %v6899_v14, %s6333_s3 }
0x1490   :  { %v2711_v32 = vpop.xlane.xlu1 %2710 }
0x1491   :  { %v2713_v36 = vsub.f32 %v2705_v24, %v2711_v32  ;;  %v2708_v2 = vpop.xlane.xlu0 %2707  ;;  %v2408_v24 = vld [vmem:[#allocation14 + $0x10] sm:$0xff] }
0x1492   :  { %v2712_v37 = vsub.f32 %v2704_v35, %v2708_v2  ;;  %v2409_v35 = vld [vmem:[#allocation14 + $0x18] sm:$0xff] }
0x1493   :  { %v2716_v0 = vmul.f32 1.442695, %v2713_v36  ;;  %v5589_v25 = vpack.c.bf16 %v2409_v35, %v2408_v24 }
0x1494   :  { %v2714_v38 = vmul.f32 1.442695, %v2712_v37  ;;  %v5928_v39 = vpop.permute.xlu1 %5927 }
0x1495   :  { %v5930_v7 = vunpack.i.h.bf16 %v5928_v39  ;;  %v5929_v40 = vunpack.i.l.bf16 %v5928_v39 }
0x1496   :  { %5994 = vpow2.f32 %v2714_v38 }
0x1497   :  { %v5585_v34 = vpack.c.bf16 %v5930_v7, %v5929_v40  ;;  %5996 = vpow2.f32 %v2716_v0 }
0x1498   :  { %v3267_v1 = vpop.permute.xlu1 %3266 }
0x1499   :  { %5586 = vmatprep.subr.bf16.mxu1 %v5585_v34  ;;  %5232 = vmatprep.mubr.msk.f32.mxu0 %vm2420_vm10, %v3267_v1  ;;  %v2411_v1 = vld [vmem:[#allocation14 + $0x28] sm:$0xff] }
0x149a   :  { %5588 = vmatpush3.bf16.msra.mxu1 %v5585_v34  ;;  %v2410_v34 = vld [vmem:[#allocation14 + $0x20] sm:$0xff] }
0x149b   :  { %5590 = vmatprep.subr.bf16.mxu1 %v5589_v25 }
0x149c   :  { %v3269_v6 = vpop.permute.xlu1 %3268 }
0x14a0   :  { %v5995_v41 = vpop.eup %5994 }
0x14a1   :  { %v2718_v14 = vsel %vm2420_vm10, %v5995_v41, 0.0  ;;  %v5997_v42 = vpop.eup %5996 }
0x14a2   :  { %2719 = vadd.xlane.f32.xlu0 %v2718_v14  ;;  %v2721_v43 = vsel %vm2420_vm10, %v5997_v42, 0.0 }
0x14a6   :  { %2722 = vadd.xlane.f32.xlu0 %v2721_v43 }
0x14bc   :  { %5932 = vrot.lane.b32.xlu0 %v6897_v13, %s6318_s2  ;;  %s6342_s2 = smov [#allocation20]  }
0x14bd   :  { %s4492_s29 = sshll.u32 %s6342_s2, 4  ;;  %s4493_s29 = int_to_ptr.vmem [resolvable:$true] %s4492_s29 }
0x14be   :  { %s6273_s5 = scalar_lea.vmem %s4493_s29, 32  ;;  %p6278_p5 = scmp.lt.s32.totalorder %s4493_s29, %s4493_s29 }
0x14bf   :  { %p6274_p4 = scmp.ne.s32.totalorder %s4493_s29, %s6273_s5  ;;  %p6279_p6 = scmp.lt.s32.totalorder %s6273_s5, %s6273_s5 }
0x14c1   :  { %p6280_p7 = por %p6279_p6, %p6278_p5 }
0x14c3   :  { %p6281_p8 = pnand %p6280_p7, %p6274_p4 }
0x14cd   :  { %v3079_v10 = vpop.xlane.xlu1 %3078 }
0x14ce   :  { %v3081_v11 = vsub.f32 %v3073_v31, %v3079_v10 }
0x14d0   :  { %v3084_v16 = vmul.f32 1.442695, %v3081_v11  ;;  %v2412_v11 = vld [vmem:[#allocation14 + $0x30] sm:$0xff] }
0x14d1   :  { %v5938_v31 = vpop.permute.xlu1 %5937 }
0x14d2   :  { %v5940_v32 = vunpack.i.h.bf16 %v5938_v31  ;;  %v5939_v36 = vunpack.i.l.bf16 %v5938_v31 }
0x14d4   :  { %v5603_v0 = vpack.c.bf16 %v5940_v32, %v5939_v36 }
0x14db   :  { %3075 = vmax.xlane.f32.xlu0 %v3074_v49 }
0x152f   :  { %v2720_v51 = vpop.xlane.xlu0 %2719 }
0x1530   :  { %5998 = vrcp.f32 %v2720_v51 }
0x1533   :  { %v2723_v53 = vpop.xlane.xlu0 %2722 }
0x1534   :  { %6000 = vrcp.f32 %v2723_v53 }
0x1537   :  { %v5933_v58 = vpop.permute.xlu0 %5932 }
0x1538   :  { %v5935_v59 = vunpack.i.h.bf16 %v5933_v58  ;;  %v5934_v60 = vunpack.i.l.bf16 %v5933_v58 }
0x153a   :  { %v5999_v61 = vpop.eup %5998  ;;  %v5611_v62 = vpack.c.bf16 %v5935_v59, %v5934_v60 }
0x153b   :  { %v2726_v63 = vmul.f32 %v5999_v61, %v5995_v41 }
0x153c   :  { %5613 = vmatprep.subr.msk.bf16.mxu0 %vm6911_vm11, %v5611_v62 }
0x153d   :  { %5190 = vmatprep.mubr.msk.f32.mxu1 %vm2420_vm10, %v2726_v63  ;;  %5616 = vmatpush3.bf16.xpose.msk.msra.mxu0 %vm6911_vm11, %v5611_v62 }
0x153e   :  { %v6001_v13 = vpop.eup %6000 }
0x153f   :  { %v2727_v5 = vmul.f32 %v6001_v13, %v5997_v42  ;;  %v5943_v42 = vpop.permute.xlu1 %5942 }
0x1540   :  { %v5945_v53 = vunpack.i.h.bf16 %v5943_v42 }
0x1541   :  { %5191 = vmatmul.mubr.msk.f32.vlgmr.msra.gmra.mrb[24].mxu1 %vm2420_vm10, %v2727_v5 }
0x1542   :  { %5592 = vmatpush3.bf16.msra.mxu1 %v5589_v25 }
0x1543   :  { %5594 = vmatprep.subr.bf16.mxu1 %v5593_v28 }
0x1544   :  { %5233 = vmatmul.mubr.msk.f32.vlgmr.msra.gmra.mrb[26].mxu0 %vm2420_vm10, %v3269_v6 }
0x1545   :  { %3693 = vmatprep.mubr.f32.mxu0 %v6335_v33 }
0x1568   :  { %v3076_v12 = vpop.xlane.xlu0 %3075 }
0x1569   :  { %v3080_v15 = vsub.f32 %v3072_v48, %v3076_v12  ;;  %v5607_v48 = vpack.c.bf16 %v2411_v1, %v2410_v34  ;;  %v2413_v12 = vld [vmem:[#allocation14 + $0x38] sm:$0xff] }
0x156b   :  { %v3082_v21 = vmul.f32 1.442695, %v3080_v15 }
0x156d   :  { %6002 = vpow2.f32 %v3082_v21  ;;  %v5621_v21 = vpack.c.bf16 %v2413_v12, %v2412_v11  ;;  %v3613_v11 = vld [vmem:[#allocation16 + $0x70] sm:$0xff] }
0x156e   :  { %6004 = vpow2.f32 %v3084_v16 }
0x1577   :  { %v6003_v8 = vpop.eup %6002 }
0x1578   :  { %v3086_v20 = vsel %vm2420_vm10, %v6003_v8, 0.0  ;;  %v6005_v22 = vpop.eup %6004 }
0x1579   :  { %3087 = vadd.xlane.f32.xlu0 %v3086_v20  ;;  %v3089_v23 = vsel %vm2420_vm10, %v6005_v22, 0.0 }
0x157d   :  { %3090 = vadd.xlane.f32.xlu0 %v3089_v23 }
0x1606   :  { %v3088_v29 = vpop.xlane.xlu0 %3087 }
0x1607   :  { %6006 = vrcp.f32 %v3088_v29 }
0x160a   :  { %v3091_v54 = vpop.xlane.xlu0 %3090 }
0x160b   :  { %6008 = vrcp.f32 %v3091_v54 }
0x1611   :  { %v6007_v41 = vpop.eup %6006 }
0x1612   :  { %v3094_v51 = vmul.f32 %v6007_v41, %v6003_v8 }
0x1614   :  { %v5192_v2 = vpop.f32.mrb[24].mxu1 }
0x1615   :  { %v2808_v37 = vpop.f32.mrb[25].mxu1  ;;  %v6009_v49 = vpop.eup %6008 }
0x1616   :  { %5197 = vmatprep.mubr.msk.f32.mxu1 %vm2420_vm10, %v2808_v37  ;;  %v3095_v58 = vmul.f32 %v6009_v49, %v6005_v22 }
0x1617   :  { %5198 = vmatmul.mubr.msk.f32.vlgmr.msra.gmra.mrb[26].mxu1 %vm2420_vm10, %v5192_v2  ;;  %v5234_v38 = vpop.f32.mrb[26].mxu0 }
0x1618   :  { %5596 = vmatpush3.bf16.msra.mxu1 %v5593_v28  ;;  %5204 = vmatprep.mubr.msk.f32.mxu1 %vm2420_vm10, %v6953_v19  ;;  %v3348_v39 = vpop.f32.mrb[27].mxu0  ;;  %v3358_v7 = vmul.f32 0.25, %v5234_v38  ;;  %v5944_v19 = vunpack.i.l.bf16 %v5943_v42  ;;  %v3558_v28 = vrot.slane %v6860_v47, %v3557_v18  ;;  %v3602_v42 = vld [vmem:[#allocation16 + $0x18] sm:$0xff] }
0x1619   :  { %5604 = vmatprep.subr.bf16.mxu1 %v5603_v0  ;;  %v3357_v40 = vmul.f32 0.25, %v3348_v39 }
0x161a   :  { %v3360_v43 = vadd.f32 %v3358_v7, %v6926_v30  ;;  %v5617_v30 = vpack.c.bf16 %v5945_v53, %v5944_v19  ;;  %v3606_v53 = vld [vmem:[#allocation16 + $0x38] sm:$0xff] }
0x161b   :  { %v3359_v14 = vadd.f32 %v3357_v40, %v6924_v57 }
0x161c   :  { %v3364_v57 = vsel %vm2420_vm10, %v3360_v43, -inf }
0x161d   :  { %v3361_v44 = vsel %vm2420_vm10, %v3359_v14, -inf }
0x161e   :  { %3362 = vmax.xlane.f32.xlu0 %v3361_v44  ;;  %v3599_v44 = vld [vmem:[#allocation16] sm:$0xff] }
0x161f   :  { %5205 = vmatmul.mubr.msk.f32.vlgmr.msra.gmra.mrb[26].mxu1 %vm2420_vm10, %v6951_v17 }
0x1620   :  { %5606 = vmatpush3.bf16.msra.mxu1 %v5603_v0  ;;  %5218 = vmatprep.mubr.msk.f32.mxu1 %vm2420_vm10, %v3094_v51  ;;  %v3604_v51 = vld [vmem:[#allocation16 + $0x28] sm:$0xff] }
0x1621   :  { %5608 = vmatprep.subr.bf16.mxu1 %v5607_v48  ;;  %v5629_v19 = vpack.c.bf16 %v3606_v53, %v3604_v51  ;;  %v3748_v53 = vld [vmem:[#allocation17 + $0x30] sm:$0xff] }
0x1622   :  { %3365 = vmax.xlane.f32.xlu0 %v3364_v57  ;;  %v3605_v57 = vld [vmem:[#allocation16 + $0x30] sm:$0xff] }
0x1623   :  { %5219 = vmatmul.mubr.msk.f32.vlgmr.msra.gmra.mrb[28].mxu1 %vm2420_vm10, %v3095_v58  ;;  %v3603_v58 = vld [vmem:[#allocation16 + $0x20] sm:$0xff] }
0x1624   :  { %5610 = vmatpush3.bf16.msra.mxu1 %v5607_v48  ;;  %v3601_v48 = vld [vmem:[#allocation16 + $0x10] sm:$0xff] }
0x1625   :  { %5618 = vmatprep.subr.bf16.mxu1 %v5617_v30  ;;  %v5627_v49 = vpack.c.bf16 %v3601_v48, %v3599_v44  ;;  %v3764_v48 = vld [vmem:[#allocation17 + $0xb0] sm:$0xff] }
0x16ab   :  { %v3363_v59 = vpop.xlane.xlu0 %3362 }
0x16ac   :  { %v3367_v60 = vsub.f32 %v3359_v14, %v3363_v59  ;;  %v3600_v14 = vld [vmem:[#allocation16 + $0x8] sm:$0xff] }
0x16ad   :  { %v3608_v59 = vld [vmem:[#allocation16 + $0x48] sm:$0xff] }
0x16ae   :  { %v3369_v61 = vmul.f32 1.442695, %v3367_v60  ;;  %v3610_v60 = vld [vmem:[#allocation16 + $0x58] sm:$0xff] }
0x16af   :  { %v3366_v62 = vpop.xlane.xlu0 %3365 }
0x16b0   :  { %6010 = vpow2.f32 %v3369_v61  ;;  %v3368_v63 = vsub.f32 %v3360_v43, %v3366_v62  ;;  %v5625_v43 = vpack.c.bf16 %v3602_v42, %v3600_v14  ;;  %v5633_v61 = vpack.c.bf16 %v3610_v60, %v3608_v59  ;;  %v3607_v62 = vld [vmem:[#allocation16 + $0x40] sm:$0xff] }
0x16b1   :  { %v3746_v42 = vld [vmem:[#allocation17 + $0x20] sm:$0xff] }
0x16b2   :  { %v3371_v17 = vmul.f32 1.442695, %v3368_v63  ;;  %5626 = vmatprep.subr.bf16.mxu0 %v5625_v43  ;;  %v3609_v63 = vld [vmem:[#allocation16 + $0x50] sm:$0xff]  ;;  %v3747_v43 = vld [vmem:[#allocation17 + $0x28] sm:$0xff]  ;;  %v3750_v60 = vld [vmem:[#allocation17 + $0x40] sm:$0xff] }
0x16b3   :  { %5628 = vmatpush1.bf16.msra.mxu0 %v5627_v49  ;;  %v5651_v44 = vpack.c.bf16 %v3747_v43, %v3746_v42  ;;  %v3765_v49 = vld [vmem:[#allocation17 + $0xb8] sm:$0xff] }
0x16b4   :  { %6012 = vpow2.f32 %v3371_v17  ;;  %5630 = vmatprep.subr.bf16.mxu0 %v5629_v19  ;;  %v5635_v17 = vpack.c.bf16 %v3609_v63, %v3607_v62  ;;  %v5653_v51 = vpack.c.bf16 %v3765_v49, %v3764_v48  ;;  %v3749_v19 = vld [vmem:[#allocation17 + $0x38] sm:$0xff]  ;;  %v3768_v63 = vld [vmem:[#allocation17 + $0xd0] sm:$0xff] }
0x16ba   :  { %v6011_v13 = vpop.eup %6010 }
0x16bb   :  { %v3373_v5 = vsel %vm2420_vm10, %v6011_v13, 0.0 }
0x16bc   :  { %3374 = vadd.xlane.f32.xlu0 %v3373_v5  ;;  %v3614_v5 = vld [vmem:[#allocation16 + $0x78] sm:$0xff] }
0x16be   :  { %v6013_v6 = vpop.eup %6012 }
0x16bf   :  { %v3376_v10 = vsel %vm2420_vm10, %v6013_v6, 0.0 }
0x16c0   :  { %3377 = vadd.xlane.f32.xlu0 %v3376_v10 }
0x16f6   :  { %v5220_v15 = vpop.f32.mrb[28].mxu1 }
0x16f7   :  { %v3174_v16 = vpop.f32.mrb[29].mxu1 }
0x16f8   :  { %5225 = vmatprep.mubr.msk.f32.mxu1 %vm2420_vm10, %v3174_v16 }
0x16f9   :  { %5226 = vmatmul.mubr.msk.f32.vlgmr.msra.gmra.mrb[26].mxu1 %vm2420_vm10, %v5220_v15 }
0x16fa   :  { %5620 = vmatpush3.bf16.msra.mxu1 %v5617_v30  ;;  %v5631_v30 = vpack.c.bf16 %v3605_v57, %v3603_v58  ;;  %v5655_v58 = vpack.c.bf16 %v3749_v19, %v3748_v53  ;;  %v3766_v57 = vld [vmem:[#allocation17 + $0xc0] sm:$0xff] }
0x16fb   :  { %5622 = vmatprep.subr.bf16.mxu1 %v5621_v21 }
0x16fc   :  { %5632 = vmatpush1.bf16.msra.mxu0 %v5631_v30  ;;  %v3767_v30 = vld [vmem:[#allocation17 + $0xc8] sm:$0xff] }
0x16fd   :  { %5634 = vmatprep.subr.bf16.mxu0 %v5633_v61  ;;  %v5657_v59 = vpack.c.bf16 %v3767_v30, %v3766_v57  ;;  %v3751_v61 = vld [vmem:[#allocation17 + $0x48] sm:$0xff] }
0x16fe   :  { %v5659_v62 = vpack.c.bf16 %v3751_v61, %v3750_v60 }
0x1700   :  { %5636 = vmatpush1.bf16.msra.mxu0 %v5635_v17  ;;  %v3769_v17 = vld [vmem:[#allocation17 + $0xd8] sm:$0xff] }
0x1749   :  { %v3375_v8 = vpop.xlane.xlu0 %3374 }
0x174a   :  { %6014 = vrcp.f32 %v3375_v8 }
0x174d   :  { %v3378_v20 = vpop.xlane.xlu0 %3377 }
0x174e   :  { %6016 = vrcp.f32 %v3378_v20 }
0x1754   :  { %v6015_v22 = vpop.eup %6014 }
0x1755   :  { %v3381_v23 = vmul.f32 %v6015_v22, %v6011_v13  ;;  %v3612_v13 = vld [vmem:[#allocation16 + $0x68] sm:$0xff] }
0x1756   :  { %v5637_v10 = vpack.c.bf16 %v3614_v5, %v3612_v13  ;;  %v3752_v13 = vld [vmem:[#allocation17 + $0x50] sm:$0xff]  ;;  %v5661_v5 = vpack.c.bf16 %v3769_v17, %v3768_v63 }
0x1757   :  { %5239 = vmatprep.mubr.msk.f32.mxu1 %vm2420_vm10, %v3381_v23  ;;  %v7024_v23 = vld [vmem:[#allocation2 + $0x10] sm:$0xff] }
0x1758   :  { %v6017_v24 = vpop.eup %6016  ;;  %5638 = vmatprep.subr.bf16.mxu0 %v5637_v10  ;;  %v3770_v10 = vld [vmem:[#allocation17 + $0xe0] sm:$0xff] }
0x1759   :  { %v3382_v35 = vmul.f32 %v6017_v24, %v6013_v6  ;;  %v3611_v6 = vld [vmem:[#allocation16 + $0x60] sm:$0xff]  ;;  %v3590_v24 = vrot.slane %v7024_v23, %v247_v56  ;;  %v3759_v56 = vld [vmem:[#allocation17 + $0x88] sm:$0xff] }
0x175a   :  { %v5639_v12 = vpack.c.bf16 %v3613_v11, %v3611_v6  ;;  %v3753_v6 = vld [vmem:[#allocation17 + $0x58] sm:$0xff]  ;;  %v3771_v11 = vld [vmem:[#allocation17 + $0xe8] sm:$0xff] }
0x175b   :  { %5240 = vmatmul.mubr.msk.f32.vlgmr.msra.gmra.mrb[30].mxu1 %vm2420_vm10, %v3382_v35 }
0x175c   :  { %5624 = vmatpush3.bf16.msra.mxu1 %v5621_v21  ;;  %5640 = vmatpush1.bf16.msra.mxu0 %v5639_v12  ;;  %v5663_v12 = vpack.c.bf16 %v3753_v6, %v3752_v13 }
0x182e   :  { %v5241_v25 = vpop.f32.mrb[30].mxu1 }
0x182f   :  { %v3461_v26 = vpop.f32.mrb[31].mxu1 }
0x1830   :  { %5246 = vmatprep.mubr.msk.f32.mxu1 %vm2420_vm10, %v3461_v26 }
0x1831   :  { %5247 = vmatmul.mubr.msk.f32.vlgmr.msra.gmra.mrb[26].mxu1 %vm2420_vm10, %v5241_v25  ;;  %v3596_v25 = vrot.slane %v7024_v23, %v685_v4  ;;  %v3760_v4 = vld [vmem:[#allocation17 + $0x90] sm:$0xff] }
0x1904   :  { %v5248_v29 = vpop.f32.mrb[26].mxu1 }
0x1905   :  { %v3554_v31 = vadd.f32 %v5248_v29, %v6865_v50  ;;  %v3542_v54 = vpop.f32.mrb[27].mxu1 }
0x1906   :  { %v3553_v32 = vadd.f32 %v3542_v54, %v6867_v52 }
0x1907   :  { %v7012_v36 = vadd.f32 %v3558_v28, %v3554_v31 }
0x1908   :  { %v7014_v2 = vadd.f32 %v3558_v28, %v3553_v32 }
0x1909   :  { %v3564_v37 = vsel %vm781_vm8, %v7012_v36, 0.0 }
0x190a   :  { %3565 = vadd.xlane.f32.xlu1 %v3564_v37  ;;  %v3561_v0 = vsel %vm781_vm8, %v7014_v2, 0.0  ;;  %v3758_v37 = vld [vmem:[#allocation17 + $0x80] sm:$0xff] }
0x190b   :  { %3562 = vadd.xlane.f32.xlu0 %v3561_v0  ;;  %v5641_v0 = vpack.c.bf16 %v3759_v56, %v3758_v37 }
0x190d   :  { %5642 = vmatprep.subr.bf16.mxu1 %v5641_v0 }
0x1997   :  { %v3566_v38 = vpop.xlane.xlu1 %3565 }
0x1998   :  { %v3568_v47 = vmul.f32 0.015625, %v3566_v38  ;;  %v3563_v39 = vpop.xlane.xlu0 %3562  ;;  %v3742_v38 = vld [vmem:[#allocation17] sm:$0xff] }
0x1999   :  { %v3567_v7 = vmul.f32 0.015625, %v3563_v39 }
0x199a   :  { %v3570_v50 = vsub.f32 %v7012_v36, %v3568_v47  ;;  %v3743_v47 = vld [vmem:[#allocation17 + $0x8] sm:$0xff] }
0x199b   :  { %v3569_v52 = vsub.f32 %v7014_v2, %v3567_v7  ;;  %v5643_v39 = vpack.c.bf16 %v3743_v47, %v3742_v38  ;;  %v3761_v7 = vld [vmem:[#allocation17 + $0x98] sm:$0xff] }
0x199c   :  { %v3572_v1 = vmul.f32 %v3570_v50, %v3570_v50 }
0x199d   :  { %v3571_v40 = vmul.f32 %v3569_v52, %v3569_v52  ;;  %5644 = vmatpush3.bf16.msra.mxu1 %v5643_v39 }
0x199e   :  { %v3576_v41 = vsel %vm781_vm8, %v3572_v1, 0.0  ;;  %v3762_v1 = vld [vmem:[#allocation17 + $0xa0] sm:$0xff] }
0x199f   :  { %v3573_v34 = vsel %vm781_vm8, %v3571_v40, 0.0  ;;  %v3745_v40 = vld [vmem:[#allocation17 + $0x18] sm:$0xff] }
0x19a0   :  { %3574 = vadd.xlane.f32.xlu0 %v3573_v34 }
0x19a4   :  { %3577 = vadd.xlane.f32.xlu0 %v3576_v41  ;;  %v3763_v41 = vld [vmem:[#allocation17 + $0xa8] sm:$0xff] }
0x19a5   :  { %v5649_v14 = vpack.c.bf16 %v3763_v41, %v3762_v1 }
0x1a2d   :  { %v3575_v15 = vpop.xlane.xlu0 %3574 }
0x1a2e   :  { %v3579_v16 = vmul.f32 0.015625, %v3575_v15  ;;  %v5665_v15 = vpack.c.bf16 %v3771_v11, %v3770_v10 }
0x1a30   :  { %v3581_v21 = vadd.f32 1e-05, %v3579_v16  ;;  %v3754_v16 = vld [vmem:[#allocation17 + $0x60] sm:$0xff] }
0x1a31   :  { %v3578_v8 = vpop.xlane.xlu0 %3577 }
0x1a32   :  { %6018 = vrsqrt.f32 %v3581_v21  ;;  %v3580_v20 = vmul.f32 0.015625, %v3578_v8  ;;  %v3755_v21 = vld [vmem:[#allocation17 + $0x68] sm:$0xff]  ;;  %v3772_v8 = vld [vmem:[#allocation17 + $0xf0] sm:$0xff] }
0x1a34   :  { %v3582_v22 = vadd.f32 1e-05, %v3580_v20  ;;  %v3773_v20 = vld [vmem:[#allocation17 + $0xf8] sm:$0xff] }
0x1a36   :  { %6020 = vrsqrt.f32 %v3582_v22  ;;  %v5667_v22 = vpack.c.bf16 %v3755_v21, %v3754_v16  ;;  %v3859_v21 = vld [vmem:[#allocation19 + $0x20] sm:$0xff] }
0x1a3c   :  { %v6019_v35 = vpop.eup %6018 }
0x1a3d   :  { %v3585_v26 = vmul.f32 %v6019_v35, %v3569_v52  ;;  %v5645_v52 = vpack.c.bf16 %v3761_v7, %v3760_v4  ;;  %v3756_v35 = vld [vmem:[#allocation17 + $0x70] sm:$0xff] }
0x1a3f   :  { %v3591_v18 = vmul.f32 %v3590_v24, %v3585_v26  ;;  %5646 = vmatprep.subr.bf16.mxu1 %v5645_v52 }
0x1a40   :  { %v6021_v28 = vpop.eup %6020 }
0x1a41   :  { %v3597_v29 = vadd.f32 %v3596_v25, %v3591_v18  ;;  %v3586_v31 = vmul.f32 %v6021_v28, %v3570_v50  ;;  %v3744_v50 = vld [vmem:[#allocation17 + $0x10] sm:$0xff]  ;;  %v197_v18 = vld [vmem:[#allocation2 + $0x18] sm:$0xff]  ;;  %v3618_v28 = vrot.slane %v7024_v23, %v6653_v9 }
0x1a42   :  { %v5647_v34 = vpack.c.bf16 %v3745_v40, %v3744_v50 }
0x1a43   :  { %4612 = vmatmul.mubr.msk.f32.vlgmr.msra.gmra.mrb[28].mxu0 %vm781_vm8, %v3597_v29  ;;  %v3592_v54 = vmul.f32 %v3590_v24, %v3586_v31  ;;  %v5669_v24 = vpack.c.bf16 %v3773_v20, %v3772_v8  ;;  %v3622_v29 = vrot.slane %v197_v18, %v6653_v9  ;;  %v3860_v8 = vld [vmem:[#allocation19 + $0x28] sm:$0xff]  ;;  %v3867_v20 = vld [vmem:[#allocation19 + $0x60] sm:$0xff]  ;;  %v3862_v18 = vld [vmem:[#allocation19 + $0x38] sm:$0xff] }
0x1a44   :  { %3699 = vmatprep.mubr.f32.mxu0 %v6335_v33  ;;  %5648 = vmatpush3.bf16.msra.mxu1 %v5647_v34 }
0x1a45   :  { %v3598_v32 = vadd.f32 %v3596_v25, %v3592_v54  ;;  %5650 = vmatprep.subr.bf16.mxu1 %v5649_v14  ;;  %v3757_v25 = vld [vmem:[#allocation17 + $0x78] sm:$0xff] }
0x1a46   :  { %v5671_v26 = vpack.c.bf16 %v3757_v25, %v3756_v35  ;;  %v6340_v35 = vmov 0.0|0.0  }
0x1a47   :  { %4613 = vmatmul.mubr.msk.f32.gmra.mrb[30].mxu0 %vm781_vm8, %v3598_v32  ;;  %5673 = vmatprep.subr.bf16.mxu0 %v6340_v35 }
0x1a48   :  { %5652 = vmatpush3.bf16.msra.mxu1 %v5651_v44  ;;  %5257 = vmatprep.mubr.msk.f32.mxu0 %vm6341_vm14, %v6335_v33 }
0x1a49   :  { %5654 = vmatprep.subr.bf16.mxu1 %v5653_v51 }
0x1a4c   :  { %5656 = vmatpush3.bf16.msra.mxu1 %v5655_v58 }
0x1a4d   :  { %5658 = vmatprep.subr.bf16.mxu1 %v5657_v59 }
0x1a50   :  { %5660 = vmatpush3.bf16.msra.mxu1 %v5659_v62 }
0x1a51   :  { %5662 = vmatprep.subr.bf16.mxu1 %v5661_v5 }
0x1a54   :  { %5664 = vmatpush3.bf16.msra.mxu1 %v5663_v12 }
0x1a55   :  { %5666 = vmatprep.subr.bf16.mxu1 %v5665_v15 }
0x1a58   :  { %5668 = vmatpush3.bf16.msra.mxu1 %v5667_v22  ;;  %v5674_v22 = vpack.c.bf16 %v3860_v8, %v3859_v21  ;;  %v3879_v8 = vld [vmem:[#allocation19 + $0xc0] sm:$0xff] }
0x1a59   :  { %5670 = vmatprep.subr.bf16.mxu1 %v5669_v24  ;;  %v3868_v24 = vld [vmem:[#allocation19 + $0x68] sm:$0xff] }
0x1a5a   :  { %v5692_v25 = vpack.c.bf16 %v3868_v24, %v3867_v20  ;;  %5675 = vmatpush3.bf16.msra.mxu0 %v5674_v22  ;;  %v3880_v20 = vld [vmem:[#allocation19 + $0xc8] sm:$0xff]  ;;  %v3881_v24 = vld [vmem:[#allocation19 + $0xd0] sm:$0xff] }
0x1a5b   :  { %5676 = vmatprep.subr.bf16.mxu0 %v6340_v35  ;;  %v5710_v22 = vpack.c.bf16 %v3880_v20, %v3879_v8 }
0x1a5c   :  { %5672 = vmatpush3.bf16.msra.mxu1 %v5671_v26  ;;  %v3861_v26 = vld [vmem:[#allocation19 + $0x30] sm:$0xff] }
0x1a5d   :  { %5691 = vmatprep.subr.bf16.mxu1 %v6340_v35 }
0x1b16   :  { %v3695_v31 = vpop.f32.mrb[28].mxu0 }
0x1b17   :  { %v3696_v54 = vadd.f32 %v3695_v31, %v3618_v28  ;;  %v3697_v32 = vpop.f32.mrb[29].mxu0  ;;  %v3870_v31 = vld [vmem:[#allocation19 + $0x78] sm:$0xff] }
0x1b18   :  { %v3698_v37 = vadd.f32 %v3697_v32, %v3622_v29 }
0x1b19   :  { %v3706_v56 = vmul.f32 %v3696_v54, %v3696_v54 }
0x1b1a   :  { %v3707_v0 = vmul.f32 %v3698_v37, %v3698_v37  ;;  %v3701_v38 = vpop.f32.mrb[30].mxu0 }
0x1b1b   :  { %v3710_v47 = vmul.f32 %v3706_v56, %v3696_v54  ;;  %v3702_v39 = vadd.f32 %v3701_v38, %v3618_v28  ;;  %v3703_v4 = vpop.f32.mrb[31].mxu0  ;;  %v3869_v28 = vld [vmem:[#allocation19 + $0x70] sm:$0xff]  ;;  %v3855_v38 = vld [vmem:[#allocation19] sm:$0xff] }
0x1b1c   :  { %v3711_v7 = vmul.f32 %v3707_v0, %v3698_v37  ;;  %v3704_v52 = vadd.f32 %v3703_v4, %v3622_v29  ;;  %v5677_v29 = vpack.c.bf16 %v3862_v18, %v3861_v26  ;;  %v3856_v4 = vld [vmem:[#allocation19 + $0x8] sm:$0xff] }
0x1b1d   :  { %v3714_v50 = vmul.f32 0.044715, %v3710_v47  ;;  %v3708_v40 = vmul.f32 %v3702_v39, %v3702_v39 }
0x1b1e   :  { %v3715_v34 = vmul.f32 0.044715, %v3711_v7  ;;  %v3709_v1 = vmul.f32 %v3704_v52, %v3704_v52  ;;  %5678 = vmatpush3.bf16.msra.mxu0 %v5677_v29  ;;  %v3875_v7 = vld [vmem:[#allocation19 + $0xa0] sm:$0xff] }
0x1b1f   :  { %v3718_v41 = vadd.f32 %v3714_v50, %v3696_v54  ;;  %v3712_v14 = vmul.f32 %v3708_v40, %v3702_v39  ;;  %5679 = vmatprep.subr.bf16.mxu0 %v6340_v35 }
0x1b20   :  { %v3719_v42 = vadd.f32 %v3715_v34, %v3698_v37  ;;  %v3713_v9 = vmul.f32 %v3709_v1, %v3704_v52  ;;  %v5680_v1 = vpack.c.bf16 %v3856_v4, %v3855_v38 }
0x1b21   :  { %v3722_v43 = vmul.f32 0.7978846, %v3718_v41  ;;  %v3716_v44 = vmul.f32 0.044715, %v3712_v14  ;;  %v3857_v14 = vld [vmem:[#allocation19 + $0x10] sm:$0xff] }
0x1b22   :  { %v3723_v48 = vmul.f32 0.7978846, %v3719_v42  ;;  %v3717_v49 = vmul.f32 0.044715, %v3713_v9 }
0x1b23   :  { %6022 = vtanh.f32 %v3722_v43  ;;  %v3720_v51 = vadd.f32 %v3716_v44, %v3702_v39  ;;  %v3858_v44 = vld [vmem:[#allocation19 + $0x18] sm:$0xff] }
0x1b24   :  { %v3721_v53 = vadd.f32 %v3717_v49, %v3704_v52  ;;  %6024 = vtanh.f32 %v3723_v48  ;;  %v3878_v48 = vld [vmem:[#allocation19 + $0xb8] sm:$0xff]  ;;  %v5683_v49 = vpack.c.bf16 %v3858_v44, %v3857_v14  ;;  %v4480_v14 = vrot.slane %v7024_v23, %v2289_v27 }
0x1b25   :  { %v3724_v19 = vmul.f32 0.7978846, %v3720_v51 }
0x1b26   :  { %v3725_v58 = vmul.f32 0.7978846, %v3721_v53  ;;  %v3863_v53 = vld [vmem:[#allocation19 + $0x40] sm:$0xff] }
0x1b27   :  { %6026 = vtanh.f32 %v3724_v19  ;;  %v3864_v19 = vld [vmem:[#allocation19 + $0x48] sm:$0xff] }
0x1b28   :  { %6028 = vtanh.f32 %v3725_v58  ;;  %v3883_v58 = vld [vmem:[#allocation19 + $0xe0] sm:$0xff] }
0x1b2d   :  { %v6023_v57 = vpop.eup %6022 }
0x1b2e   :  { %v6025_v30 = vpop.eup %6024  ;;  %v3730_v59 = vadd.f32 1.0, %v6023_v57  ;;  %v3884_v57 = vld [vmem:[#allocation19 + $0xe8] sm:$0xff] }
0x1b2f   :  { %v3731_v60 = vadd.f32 1.0, %v6025_v30  ;;  %v5686_v30 = vpack.c.bf16 %v3864_v19, %v3863_v53 }
0x1b30   :  { %v3734_v61 = vmul.f32 0.5, %v3730_v59  ;;  %v5716_v59 = vpack.c.bf16 %v3884_v57, %v3883_v58 }
0x1b31   :  { %v6027_v62 = vpop.eup %6026  ;;  %v3735_v63 = vmul.f32 0.5, %v3731_v60  ;;  %v3865_v60 = vld [vmem:[#allocation19 + $0x50] sm:$0xff] }
0x1b32   :  { %v6029_v17 = vpop.eup %6028  ;;  %v3732_v13 = vadd.f32 1.0, %v6027_v62  ;;  %v3738_v10 = vmul.f32 %v3734_v61, %v3696_v54  ;;  %v5695_v54 = vpack.c.bf16 %v3870_v31, %v3869_v28  ;;  %v3866_v61 = vld [vmem:[#allocation19 + $0x58] sm:$0xff]  ;;  %v3885_v62 = vld [vmem:[#allocation19 + $0xf0] sm:$0xff] }
0x1b33   :  { %v3739_v5 = vmul.f32 %v3735_v63, %v3698_v37  ;;  %v3733_v6 = vadd.f32 1.0, %v6029_v17  ;;  %v3777_v37 = vrot.slane %v7024_v23, %v2211_v45  ;;  %v3877_v45 = vld [vmem:[#allocation19 + $0xb0] sm:$0xff]  ;;  %v3886_v63 = vld [vmem:[#allocation19 + $0xf8] sm:$0xff]  ;;  %v5689_v17 = vpack.c.bf16 %v3866_v61, %v3865_v60 }
0x1b34   :  { %v3736_v11 = vmul.f32 0.5, %v3732_v13  ;;  %v5707_v51 = vpack.c.bf16 %v3878_v48, %v3877_v45  ;;  %v5719_v13 = vpack.c.bf16 %v3886_v63, %v3885_v62 }
0x1b35   :  { %3842 = vmatprep.mubr.f32.mxu1 %v3739_v5  ;;  %v3737_v12 = vmul.f32 0.5, %v3733_v6  ;;  %v3871_v5 = vld [vmem:[#allocation19 + $0x80] sm:$0xff]  ;;  %v3872_v6 = vld [vmem:[#allocation19 + $0x88] sm:$0xff] }
0x1b36   :  { %3843 = vmatmul.mubr.f32.vlgmr.msra.gmra.mrb[32].mxu1 %v3738_v10  ;;  %v3740_v16 = vmul.f32 %v3736_v11, %v3702_v39  ;;  %v5698_v10 = vpack.c.bf16 %v3872_v6, %v3871_v5 }
0x1b37   :  { %v3741_v15 = vmul.f32 %v3737_v12, %v3704_v52  ;;  %5693 = vmatpush3.bf16.msra.mxu1 %v5692_v25  ;;  %v3876_v52 = vld [vmem:[#allocation19 + $0xa8] sm:$0xff]  ;;  %v3882_v25 = vld [vmem:[#allocation19 + $0xd8] sm:$0xff] }
0x1b38   :  { %5694 = vmatprep.subr.bf16.mxu1 %v6340_v35  ;;  %v5704_v41 = vpack.c.bf16 %v3876_v52, %v3875_v7  ;;  %v5713_v26 = vpack.c.bf16 %v3882_v25, %v3881_v24 }
0x1b39   :  { %3847 = vmatprep.mubr.f32.mxu1 %v3741_v15  ;;  %v3873_v15 = vld [vmem:[#allocation19 + $0x90] sm:$0xff] }
0x1b3a   :  { %3848 = vmatmul.mubr.f32.gmra.mrb[34].mxu1 %v3740_v16  ;;  %v3874_v16 = vld [vmem:[#allocation19 + $0x98] sm:$0xff] }
0x1b3b   :  { %5696 = vmatpush3.bf16.msra.mxu1 %v5695_v54  ;;  %5290 = vmatprep.mubr.msk.f32.mxu1 %vm6341_vm14, %v6335_v33  ;;  %v5701_v21 = vpack.c.bf16 %v3874_v16, %v3873_v15 }
0x1b3c   :  { %5703 = vmatprep.subr.bf16.mxu1 %v6340_v35 }
0x1c09   :  { %v4849_v32 = vpop.f32.mrb[32].mxu1 }
0x1c0a   :  { %v4850_v56 = vpop.f32.mrb[33].mxu1 }
0x1c0b   :  { %v4851_v0 = vadd.f32 %v4850_v56, %v4849_v32 }
0x1c0d   :  { %v3845_v47 = vadd.f32 %v4851_v0, %v3777_v37  ;;  %v4852_v39 = vpop.f32.mrb[34].mxu1 }
0x1c0e   :  { %v4853_v50 = vpop.f32.mrb[35].mxu1 }
0x1c0f   :  { %v3853_v40 = vadd.f32 %v3845_v47, %v7014_v2  ;;  %v4854_v34 = vadd.f32 %v4853_v50, %v4852_v39 }
0x1c11   :  { %v3888_v42 = vrot.slane %v3853_v40, 2  ;;  %v4107_v9 = vrot.slane %v3853_v40, 6  ;;  %v3850_v43 = vadd.f32 %v4854_v34, %v3777_v37  ;;  %v4033_v11 = vrot.slane %v3853_v40, 4 }
0x1c13   :  { %5258 = vmatmul.mubr.msk.f32.vlgmr.msra.gmra.mrb[32].mxu0 %vm687_vm7, %v3888_v42  ;;  %5291 = vmatmul.mubr.msk.f32.vlgmr.msra.gmra.mrb[36].mxu1 %vm687_vm7, %v4107_v9  ;;  %v3854_v2 = vadd.f32 %v3850_v43, %v7012_v36 }
0x1c14   :  { %5681 = vmatpush3.bf16.msra.mxu0 %v5680_v1  ;;  %5705 = vmatpush3.bf16.msra.mxu1 %v5704_v41 }
0x1c15   :  { %5682 = vmatprep.subr.bf16.mxu0 %v6340_v35  ;;  %5706 = vmatprep.subr.bf16.mxu1 %v6340_v35  ;;  %v4255_v36 = vrot.slane %v3854_v2, 2  ;;  %v4403_v12 = vrot.slane %v3854_v2, 6  ;;  %v4329_v18 = vrot.slane %v3854_v2, 4 }
0x1c16   :  { %5268 = vmatprep.mubr.msk.f32.mxu0 %vm6341_vm14, %v6335_v33  ;;  %5312 = vmatprep.mubr.msk.f32.mxu1 %vm6341_vm14, %v6335_v33 }
0x1c18   :  { %5684 = vmatpush3.bf16.msra.mxu0 %v5683_v49  ;;  %5708 = vmatpush3.bf16.msra.mxu1 %v5707_v51 }
0x1c19   :  { %5685 = vmatprep.subr.bf16.mxu0 %v6340_v35  ;;  %5715 = vmatprep.subr.bf16.mxu1 %v6340_v35 }
0x1c1b   :  { %5269 = vmatmul.mubr.msk.f32.vlgmr.msra.gmra.mrb[34].mxu0 %vm687_vm7, %v3853_v40  ;;  %5313 = vmatmul.mubr.msk.f32.vlgmr.msra.gmra.mrb[38].mxu1 %vm687_vm7, %v4255_v36 }
0x1c1c   :  { %5687 = vmatpush3.bf16.msra.mxu0 %v5686_v30  ;;  %5717 = vmatpush3.bf16.msra.mxu1 %v5716_v59 }
0x1c1d   :  { %5688 = vmatprep.subr.bf16.mxu0 %v6340_v35  ;;  %5718 = vmatprep.subr.bf16.mxu1 %v6340_v35 }
0x1c1e   :  { %5279 = vmatprep.mubr.msk.f32.mxu0 %vm6341_vm14, %v6335_v33  ;;  %5334 = vmatprep.mubr.msk.f32.mxu1 %vm6341_vm14, %v6335_v33 }
0x1c20   :  { %5690 = vmatpush3.bf16.msra.mxu0 %v5689_v17  ;;  %5720 = vmatpush3.bf16.msra.mxu1 %v5719_v13 }
0x1c21   :  { %5697 = vmatprep.subr.bf16.mxu0 %v6340_v35 }
0x1c23   :  { %5280 = vmatmul.mubr.msk.f32.vlgmr.msra.gmra.mrb[36].mxu0 %vm687_vm7, %v4033_v11  ;;  %5335 = vmatmul.mubr.msk.f32.vlgmr.msra.gmra.mrb[40].mxu1 %vm687_vm7, %v4403_v12 }
0x1c24   :  { %5699 = vmatpush3.bf16.msra.mxu0 %v5698_v10  ;;  %5301 = vmatprep.mubr.msk.f32.mxu0 %vm6341_vm14, %v6335_v33 }
0x1c25   :  { %5700 = vmatprep.subr.bf16.mxu0 %v6340_v35 }
0x1c28   :  { %5702 = vmatpush3.bf16.msra.mxu0 %v5701_v21 }
0x1c29   :  { %5709 = vmatprep.subr.bf16.mxu0 %v6340_v35 }
0x1c2b   :  { %5302 = vmatmul.mubr.msk.f32.vlgmr.msra.gmra.mrb[38].mxu0 %vm687_vm7, %v3854_v2 }
0x1c2c   :  { %5711 = vmatpush3.bf16.msra.mxu0 %v5710_v22  ;;  %5323 = vmatprep.mubr.msk.f32.mxu0 %vm6341_vm14, %v6335_v33 }
0x1c2d   :  { %5712 = vmatprep.subr.bf16.mxu0 %v6340_v35 }
0x1c30   :  { %5714 = vmatpush3.bf16.msra.mxu0 %v5713_v26 }
0x1c33   :  { %5324 = vmatmul.mubr.msk.f32.vlgmr.msra.gmra.mrb[40].mxu0 %vm687_vm7, %v4329_v18 }
0x1ce6   :  { %v3957_v28 = vpop.f32.mrb[32].mxu0  ;;  %v4176_v29 = vpop.f32.mrb[36].mxu1 }
0x1ce7   :  { %v5259_v31 = vpop.f32.mrb[33].mxu0  ;;  %v5292_v54 = vpop.f32.mrb[37].mxu1 }
0x1cee   :  { %v4029_v32 = vpop.f32.mrb[34].mxu0  ;;  %v4324_v37 = vpop.f32.mrb[38].mxu1 }
0x1cef   :  { %v4030_v56 = vadd.f32 %v4029_v32, %v3957_v28  ;;  %v5270_v0 = vpop.f32.mrb[35].mxu0  ;;  %v5314_v38 = vpop.f32.mrb[39].mxu1 }
0x1cf6   :  { %v4102_v47 = vpop.f32.mrb[36].mxu0  ;;  %v4472_v39 = vpop.f32.mrb[40].mxu1 }
0x1cf7   :  { %v4106_v4 = vadd.f32 %v4102_v47, %v4030_v56  ;;  %v5281_v7 = vpop.f32.mrb[37].mxu0  ;;  %v5336_v33 = vpop.f32.mrb[41].mxu1 }
0x1cf9   :  { %v4180_v52 = vadd.f32 %v4176_v29, %v4106_v4 }
0x1cfe   :  { %v4250_v35 = vpop.f32.mrb[38].mxu0 }
0x1cff   :  { %v4254_v50 = vadd.f32 %v4250_v35, %v4180_v52  ;;  %v5303_v40 = vpop.f32.mrb[39].mxu0 }
0x1d01   :  { %v4328_v34 = vadd.f32 %v4324_v37, %v4254_v50 }
0x1d06   :  { %v4398_v1 = vpop.f32.mrb[40].mxu0 }
0x1d07   :  { %v4402_v41 = vadd.f32 %v4398_v1, %v4328_v34  ;;  %v5325_v42 = vpop.f32.mrb[41].mxu0 }
0x1d09   :  { %v4476_v9 = vadd.f32 %v4472_v39, %v4402_v41 }
0x1d0b   :  { %v4481_v43 = vadd.f32 %v4480_v14, %v4476_v9 }
0x1d0d   :  { %v4482_v44 = vmul.f32 %v4481_v43, %v6602_v46 }
0x1d0f   :  { %v4483_v45 = vadd.f32 %v4482_v44, %v6595_v3 }
0x1d11   :  { %4485 = vst.msk [vmem:[#allocation20] sm:$0x3] %vm4484_vm15, %v4483_v45 }
0x1d12   :  { %6284 = shalt.err (!%p6281_p8)
}
0x1d13   :  { %s6285_s11 = scalar_lea.hbm %s7113_s13, 32 }
0x1d14   :  { %p6286_p9 = scmp.ne.s32.totalorder %s7113_s13, %s6285_s11  ;;  %p6289_p10 = scmp.lt.u32.totalorder %s6285_s11, %s7113_s13 }
0x1d16   :  { %p6291_p11 = pnand %p6289_p10, %p6286_p9 }
0x1d18   :  { %6294 = shalt.err (!%p6291_p11)
}
0x1d19   :  { %4495 = dma.vmem_to_hbm [thread:$0]  %s4493_s29, 32, %s7113_s13, [#allocation4]  }
0x1d1a   :  { %6307 = dma.done.wait [#allocation4], 32  }
0x1d1b   :  { %6308 = vsyncadd [#allocation4], 4294967264 }
0x1d1c   :  { %4499 = vsyncpa [#allocation3], 1 }
0x1d1d   :  { %4500 = vsyncpa [#allocation6], 1 }
0x1d1e   :  { %4501 = vsyncpa [#allocation9], 1 }
0x1d1f   :  { %4502 = vsyncpa [#allocation12], 1 }
0x1d20   :  { %4503 = vsyncpa [#allocation15], 1 }
0x1d21   :  { %4504 = vsyncpa [#allocation18], 1 }
0x1d22   :  { %4505 = vsyncpa [#allocation4], 1 }

</bundles_post_ra>
